<compile_context>
chip_gen: v7x
topology: tpu7x:2x2x1
jax: 0.10.0
libtpu: 0.0.40
codegen_flags: <defaults>
</compile_context>

<pallas_src>
import math

import jax
import jax.numpy as jnp
from jax.experimental import pallas as pl
from jax.experimental.pallas import tpu as pltpu


_VMEM_LIMIT = 32 * 1024 * 1024  # fits v7x (64 MiB physical) and v5e/v6e


def _cparams(sem):
    return pltpu.CompilerParams(dimension_semantics=sem,
                                vmem_limit_bytes=_VMEM_LIMIT)


def _pick_tile(m, cap):
    """Largest multiple-of-8 divisor of m that is <= cap (else m itself)."""
    if m <= cap:
        return m
    t = (cap // 8) * 8
    while t >= 8:
        if m % t == 0:
            return t
        t -= 8
    return m


# ----------------------------------------------------------------------------
# fused BN+ReLU -> 3x3 conv (+bias, +optional residual) kernel
# ----------------------------------------------------------------------------
def _make_conv3x3_kernel(h, w, has_residual):
    """One grid step = one image.  The zero-padded bf16 activation is loaded,
    the inference BN affine + ReLU + interior mask applied once into a VMEM
    scratch, then the 9 shifted-tap matmuls run on the MXU with resident bf16
    weights and an f32 accumulator.  Bias and the residual are epilogue adds.
    """
    hp, wp = h + 2, w + 2

    def _accumulate(xp_ref, w_ref, scale_ref, shift_ref, act_ref):
        x = xp_ref[0].astype(jnp.float32)                     # (hp, wp, cin)
        scale = scale_ref[...].reshape(1, 1, -1)
        shift = shift_ref[...].reshape(1, 1, -1)
        act = jnp.maximum(x * scale + shift, 0.0)
        # zero the padding ring: the conv must see zero-padded *post*-BN input
        row = jax.lax.broadcasted_iota(jnp.int32, (hp, wp), 0)
        col = jax.lax.broadcasted_iota(jnp.int32, (hp, wp), 1)
        inside = (row >= 1) & (row <= h) & (col >= 1) & (col <= w)
        act = act * inside.astype(jnp.float32)[:, :, None]
        act_ref[...] = act

        cin = act_ref.shape[-1]
        cout = w_ref.shape[-1]
        acc = jnp.zeros((h * w, cout), jnp.float32)
        for t in range(9):                                    # unrolled taps
            kh, kw = t // 3, t % 3
            a_t = act_ref[kh:kh + h, kw:kw + w, :].reshape(h * w, cin)
            acc = acc + jnp.dot(a_t.astype(jnp.bfloat16), w_ref[t],
                                preferred_element_type=jnp.float32)
        return acc

    if has_residual:
        def kernel(xp_ref, w_ref, scale_ref, shift_ref, bias_ref, res_ref,
                   o_ref, act_ref):
            acc = _accumulate(xp_ref, w_ref, scale_ref, shift_ref, act_ref)
            out = (acc + bias_ref[...]).reshape(h, w, -1)
            out = out + res_ref[0].astype(jnp.float32)
            o_ref[0] = out.astype(o_ref.dtype)
    else:
        def kernel(xp_ref, w_ref, scale_ref, shift_ref, bias_ref,
                   o_ref, act_ref):
            acc = _accumulate(xp_ref, w_ref, scale_ref, shift_ref, act_ref)
            out = (acc + bias_ref[...]).reshape(h, w, -1)
            o_ref[0] = out.astype(o_ref.dtype)

    return kernel


@jax.jit
def conv3x3_bn(x, conv, bn, residual):
    """y = conv3x3(relu(bn(x))) [+ residual], stride 1, pad 1 (NHWC, f32 out).

    `residual` may be None (a separate jit cache entry / kernel variant).
    """
    n, h, w, cin = x.shape
    wt = conv["w"]
    cout = wt.shape[-1]
    eps = 1e-5
    inv = jax.lax.rsqrt(bn["var"] + eps)
    scale = (bn["gamma"] * inv).reshape(1, cin).astype(jnp.float32)
    shift = (bn["beta"] - bn["mean"] * bn["gamma"] * inv).reshape(1, cin)
    shift = shift.astype(jnp.float32)
    bias = (jnp.zeros((1, cout), jnp.float32) if conv["b"] is None
            else conv["b"].reshape(1, cout).astype(jnp.float32))

    xp = jnp.pad(x, ((0, 0), (1, 1), (1, 1), (0, 0))).astype(jnp.bfloat16)
    wmat = wt.reshape(9, cin, cout).astype(jnp.bfloat16)

    in_specs = [
        pl.BlockSpec((1, h + 2, w + 2, cin), lambda i: (i, 0, 0, 0)),
        pl.BlockSpec((9, cin, cout), lambda i: (0, 0, 0)),   # resident weights
        pl.BlockSpec((1, cin), lambda i: (0, 0)),
        pl.BlockSpec((1, cin), lambda i: (0, 0)),
        pl.BlockSpec((1, cout), lambda i: (0, 0)),
    ]
    args = [xp, wmat, scale, shift, bias]
    if residual is not None:
        in_specs.append(pl.BlockSpec((1, h, w, cout), lambda i: (i, 0, 0, 0)))
        args.append(residual)

    return pl.pallas_call(
        _make_conv3x3_kernel(h, w, residual is not None),
        out_shape=jax.ShapeDtypeStruct((n, h, w, cout), jnp.float32),
        grid=(n,),
        in_specs=in_specs,
        out_specs=pl.BlockSpec((1, h, w, cout), lambda i: (i, 0, 0, 0)),
        scratch_shapes=[pltpu.VMEM((h + 2, w + 2, cin), jnp.float32)],
        compiler_params=_cparams(("parallel",)),
    )(*args)


# ----------------------------------------------------------------------------
# plain matmul + bias kernel (stem im2col and 1x1 shortcut convs)
# ----------------------------------------------------------------------------
def _matmul_bias_kernel(a_ref, w_ref, b_ref, o_ref):
    o_ref[...] = (jnp.dot(a_ref[...], w_ref[...],
                          preferred_element_type=jnp.float32)
                  + b_ref[...]).astype(o_ref.dtype)


def _matmul_bias(a, w, bias):
    m, k = a.shape
    ncol = w.shape[1]
    tm = _pick_tile(m, 4096)
    return pl.pallas_call(
        _matmul_bias_kernel,
        out_shape=jax.ShapeDtypeStruct((m, ncol), jnp.float32),
        grid=(m // tm,),
        in_specs=[pl.BlockSpec((tm, k), lambda i: (i, 0)),
                  pl.BlockSpec((k, ncol), lambda i: (0, 0)),
                  pl.BlockSpec((1, ncol), lambda i: (0, 0))],
        out_specs=pl.BlockSpec((tm, ncol), lambda i: (i, 0)),
        compiler_params=_cparams(("parallel",)),
    )(a, w, bias)


@jax.jit
def stem_conv(x, conv):
    """7x7 stride-2 pad-3 conv, bias=False.  Cin=3, so the 49 taps are folded
    into the contraction dim (K=147) -> one well-shaped MXU matmul; the bf16
    im2col tensor is small."""
    n, h, w, cin = x.shape
    ho, wo = h // 2, w // 2
    cout = conv["w"].shape[-1]
    xp = jnp.pad(x, ((0, 0), (3, 3), (3, 3), (0, 0)))
    cols = []
    for kh in range(7):
        for kw in range(7):
            cols.append(xp[:, kh:kh + 2 * ho - 1:2, kw:kw + 2 * wo - 1:2, :])
    a = jnp.concatenate(cols, axis=-1).reshape(n * ho * wo, 49 * cin)
    a = a.astype(jnp.bfloat16)
    wmat = conv["w"].reshape(49 * cin, cout).astype(jnp.bfloat16)
    bias = jnp.zeros((1, cout), jnp.float32)
    return _matmul_bias(a, wmat, bias).reshape(n, ho, wo, cout)


@jax.jit
def conv1x1(x, conv):
    """1x1 conv (stride already applied by the caller via subsampling)."""
    n, h, w, cin = x.shape
    cout = conv["w"].shape[-1]
    a = x.reshape(n * h * w, cin).astype(jnp.bfloat16)
    wmat = conv["w"].reshape(cin, cout).astype(jnp.bfloat16)
    bias = conv["b"].reshape(1, cout).astype(jnp.float32)
    return _matmul_bias(a, wmat, bias).reshape(n, h, w, cout)


# ----------------------------------------------------------------------------
# 3x3 stride-2 pad-1 max-pool: 4 unstrided phase views + in-kernel 9-tap max
# ----------------------------------------------------------------------------
def _make_maxpool_kernel(ho, wo):
    def kernel(xph_ref, o_ref):
        r = None
        for kh in range(3):
            for kw in range(3):
                p = (kh % 2) * 2 + (kw % 2)
                v = xph_ref[p, 0, kh // 2:kh // 2 + ho, kw // 2:kw // 2 + wo, :]
                r = v if r is None else jnp.maximum(r, v)
        o_ref[0] = r.astype(o_ref.dtype)
    return kernel


@jax.jit
def maxpool3x3_s2(x):
    n, h, w, c = x.shape
    ho, wo = h // 2, w // 2
    xp = jnp.pad(x, ((0, 0), (1, 1), (1, 1), (0, 0)),
                 constant_values=-jnp.inf)
    # split the stride-2 access pattern into 4 unstrided phase views
    phases = jnp.stack([xp[:, r::2, s::2, :] for r in (0, 1) for s in (0, 1)],
                       axis=0)                     # (4, n, ho+1, wo+1, c)
    return pl.pallas_call(
        _make_maxpool_kernel(ho, wo),
        out_shape=jax.ShapeDtypeStruct((n, ho, wo, c), jnp.float32),
        grid=(n,),
        in_specs=[pl.BlockSpec((4, 1, ho + 1, wo + 1, c),
                               lambda i: (0, i, 0, 0, 0))],
        out_specs=pl.BlockSpec((1, ho, wo, c), lambda i: (i, 0, 0, 0)),
        compiler_params=_cparams(("parallel",)),
    )(phases)


# ----------------------------------------------------------------------------
# head: AvgPool2d(8) -> flatten -> relu -> fc  (matches the PyTorch reference)
# ----------------------------------------------------------------------------
def _head_kernel(x_ref, w_ref, b_ref, o_ref):
    pooled = jnp.mean(x_ref[...], axis=1)           # AvgPool2d(8) + flatten
    feat = jnp.maximum(pooled, 0.0)                 # f.relu
    o_ref[...] = (jnp.dot(feat, w_ref[...],
                          preferred_element_type=jnp.float32)
                  + b_ref[...]).astype(o_ref.dtype)


@jax.jit
def head(x, fc_w, fc_b):
    n, h, w, c = x.shape
    xr = x.reshape(n, h * w, c)
    nc = fc_w.shape[1]
    return pl.pallas_call(
        _head_kernel,
        out_shape=jax.ShapeDtypeStruct((n, nc), jnp.float32),
        grid=(1,),
        in_specs=[pl.BlockSpec((n, h * w, c), lambda i: (0, 0, 0)),
                  pl.BlockSpec((c, nc), lambda i: (0, 0)),
                  pl.BlockSpec((1, nc), lambda i: (0, 0))],
        out_specs=pl.BlockSpec((n, nc), lambda i: (0, 0)),
        compiler_params=_cparams(("arbitrary",)),
    )(xr, fc_w, fc_b)


# ----------------------------------------------------------------------------
# network glue (pure data movement in JAX, all compute in Pallas kernels)
# ----------------------------------------------------------------------------
UNIT_CFG = ([(64, 64, 1)] * 3 + [(64, 128, 2)] + [(128, 128, 1)] * 3 +
            [(128, 256, 2)] + [(256, 256, 1)] * 5 + [(256, 512, 2)] +
            [(512, 512, 1)] * 2)


def unit_forward(x, p, stride):
    # shortcut uses the raw (pre-BN) x, as in the PyTorch reference
    if p["shortcut"] is not None:
        xs = x[:, ::stride, ::stride, :] if stride != 1 else x
        shortcut = conv1x1(xs, p["shortcut"])
    else:
        shortcut = x
    # conv1: bn1+relu fused into the conv kernel.  Stride-2 is realized as the
    # equivalent stride-1 conv followed by a spatial subsample (tiny layers).
    y = conv3x3_bn(x, p["conv1"], p["bn1"], None)
    if stride != 1:
        y = y[:, ::stride, ::stride, :]
    # conv2: bn2+relu fused, residual added in the conv epilogue.
    return conv3x3_bn(y, p["conv2"], p["bn2"], shortcut)


def preresnet34_forward(x_nchw, params):
    x = jnp.transpose(x_nchw, (0, 2, 3, 1)).astype(jnp.float32)  # NCHW -> NHWC
    x = stem_conv(x, params["stem"])              # (N, 128, 128,  64)
    x = maxpool3x3_s2(x)                          # (N,  64,  64,  64)
    for p, (_, _, stride) in zip(params["units"], UNIT_CFG):
        x = unit_forward(x, p, stride)            # -> (N, 8, 8, 512)
    return head(x, params["fc_w"], params["fc_b"])


# ----------------------------------------------------------------------------
# deterministic parameter initialization (synthetic weights)
# ----------------------------------------------------------------------------
def init_conv(key, k, cin, cout, use_bias=True):
    kw, kb = jax.random.split(key)
    fan_in = k * k * cin
    w = jax.random.normal(kw, (k, k, cin, cout), jnp.float32) / math.sqrt(fan_in)
    b = (jax.random.normal(kb, (cout,), jnp.float32) * 0.01) if use_bias else None
    return {"w": w, "b": b}


def init_bn(key, c):
    k1, k2, k3, k4 = jax.random.split(key, 4)
    return {
        "gamma": 1.0 + 0.1 * jax.random.normal(k1, (c,), jnp.float32),
        "beta": 0.1 * jax.random.normal(k2, (c,), jnp.float32),
        "mean": 0.1 * jax.random.normal(k3, (c,), jnp.float32),
        "var": 0.5 + jax.random.uniform(k4, (c,), jnp.float32),
    }


def init_preresnet34(key, num_class):
    keys = jax.random.split(key, len(UNIT_CFG) + 2)
    params = {"stem": init_conv(keys[0], 7, 3, 64, use_bias=False), "units": []}
    for k, (cin, cout, s) in zip(keys[1:-1], UNIT_CFG):
        ks = jax.random.split(k, 5)
        params["units"].append({
            "bn1": init_bn(ks[0], cin),
            "conv1": init_conv(ks[1], 3, cin, cout),
            "bn2": init_bn(ks[2], cout),
            "conv2": init_conv(ks[3], 3, cout, cout),
            "shortcut": (init_conv(ks[4], 1, cin, cout)
                         if (s != 1 or cin != cout) else None),
        })
    kfc_w, kfc_b = jax.random.split(keys[-1])
    params["fc_w"] = (jax.random.normal(kfc_w, (512, num_class), jnp.float32)
                      / math.sqrt(512.0))
    params["fc_b"] = (jax.random.normal(kfc_b, (num_class,), jnp.float32)
                      * 0.01).reshape(1, num_class)
    return params


# ----------------------------------------------------------------------------
if __name__ == "__main__":
    num_class = 10
    key = jax.random.PRNGKey(0)
    kparams, kx = jax.random.split(key)

    params = init_preresnet34(kparams, num_class)
    # 256x256 is the minimum spatial size consistent with the module's final
    # AvgPool2d(kernel_size=8): spatial shrinks 32x before the avgpool.
    x = jax.random.normal(kx, (2, 3, 256, 256), jnp.float32)

    y = preresnet34_forward(x, params)
    y = jax.block_until_ready(y)

    assert y.shape == (2, num_class), y.shape
    assert bool(jnp.all(jnp.isfinite(y)))
    print("KERNEL_OK")
</pallas_src>

<mosaic_0001>
module attributes {stable_mosaic.version = 11 : i64} {
  func.func @_matmul_bias_kernel(%arg0: i32, %arg1: memref<4096x147xbf16, #tpu.memory_space<vmem>>, %arg2: memref<147x64xbf16, #tpu.memory_space<vmem>>, %arg3: memref<1x64xf32, #tpu.memory_space<vmem>>, %arg4: memref<4096x64xf32, #tpu.memory_space<vmem>>) attributes {dimension_semantics = [#tpu.dimension_semantics<parallel>], iteration_bounds = array<i64: 8>, scalar_prefetch = 0 : i64, scratch_operands = 0 : i64, tpu.core_type = #tpu.core_type<tc>, window_params = [{transform_indices = @transform_0, window_bounds = array<i64: 4096, 147>}, {pipeline_mode = #tpu.pipeline_mode<synchronous>, transform_indices = @transform_1, window_bounds = array<i64: 147, 64>}, {pipeline_mode = #tpu.pipeline_mode<synchronous>, transform_indices = @transform_2, window_bounds = array<i64: 1, 64>}, {transform_indices = @transform_3, window_bounds = array<i64: 4096, 64>}]} {
    %c0 = arith.constant 0 : index
    %c0_0 = arith.constant 0 : index
    %0 = vector.load %arg1[%c0, %c0_0] : memref<4096x147xbf16, #tpu.memory_space<vmem>>, vector<4096x147xbf16>
    %c0_1 = arith.constant 0 : index
    %c0_2 = arith.constant 0 : index
    %1 = vector.load %arg2[%c0_1, %c0_2] : memref<147x64xbf16, #tpu.memory_space<vmem>>, vector<147x64xbf16>
    %cst = arith.constant dense<0.000000e+00> : vector<4096x64xf32>
    %2 = tpu.matmul %0, %1, %cst {dimension_numbers = #tpu.dot_dimension_numbers<[1], [0], [0], [1], [0, 0, 1, 1], [], []>} : vector<4096x147xbf16>, vector<147x64xbf16>, vector<4096x64xf32> -> vector<4096x64xf32>
    %c0_3 = arith.constant 0 : index
    %c0_4 = arith.constant 0 : index
    %3 = vector.load %arg3[%c0_3, %c0_4] : memref<1x64xf32, #tpu.memory_space<vmem>>, vector<1x64xf32>
    %4 = vector.broadcast %3 : vector<1x64xf32> to vector<4096x64xf32>
    %5 = arith.addf %2, %4 : vector<4096x64xf32>
    %c0_5 = arith.constant 0 : index
    %c0_6 = arith.constant 0 : index
    %6 = vector.load %arg4[%c0_5, %c0_6] : memref<4096x64xf32, #tpu.memory_space<vmem>>, vector<4096x64xf32>
    tpu.vector_store %arg4[%c0_5, %c0_6], %5 {strides = array<i32>} : memref<4096x64xf32, #tpu.memory_space<vmem>>, vector<4096x64xf32>,
    return
  }
  func.func @transform_0(%arg0: i32) -> (i32, i32) {
    %c0_i32 = arith.constant 0 : i32
    %c0_i32_0 = arith.constant 0 : i32
    return %arg0, %c0_i32 : i32, i32
  }
  func.func @transform_1(%arg0: i32) -> (i32, i32) {
    %c0_i32 = arith.constant 0 : i32
    %c0_i32_0 = arith.constant 0 : i32
    %c0_i32_1 = arith.constant 0 : i32
    return %c0_i32, %c0_i32_0 : i32, i32
  }
  func.func @transform_2(%arg0: i32) -> (i32, i32) {
    %c0_i32 = arith.constant 0 : i32
    %c0_i32_0 = arith.constant 0 : i32
    %c0_i32_1 = arith.constant 0 : i32
    return %c0_i32, %c0_i32_0 : i32, i32
  }
  func.func @transform_3(%arg0: i32) -> (i32, i32) {
    %c0_i32 = arith.constant 0 : i32
    %c0_i32_0 = arith.constant 0 : i32
    return %arg0, %c0_i32 : i32, i32
  }
}

</mosaic_0001>

<bundles_post_ra>
// kernel: stem_conv.1
= control target key start
LH: loop header
LB: loop body
LE: loop exit
PB: predicated region body
PF: predicated region fallthrough
CT: control target
= control target key end

     0   :  { %8 = vsyncpa [#allocation3], 0  ;;  %s10727_s0 = inlined_call_operand.vmem [shape: bf16[32768,147], index: 0, kind: input, shape index: {}]   ;;  %s10728_s1 = inlined_call_operand.hbm [shape: bf16[147,64], index: 1, kind: input, shape index: {}]   ;;  %s10729_s2 = inlined_call_operand.hbm [shape: f32[1,64], index: 2, kind: input, shape index: {}]   ;;  %s10730_s3 = inlined_call_operand.vmem [shape: f32[32768,64], index: 3, kind: output, shape index: {}]  }
   0x1   :  { %9 = vsyncpa [#allocation5], 0  ;;  %s8283_s12 = smov 0  }
   0x2 LB: > { %s6553_s13 = sadd.s32 4294967295, %s8255_s12   ;;  %p6555_p0 = scmp.ge.s32.totalorder %s8255_s12, 1  ;;  %s8255_s12 = sphi %s8283_s12, %s15_s12  }
   0x3   : > { %p114_p1 = scmp.lt.s32.totalorder %s8255_s12, 9  ;;  %s8257_s14 = smov [#allocation2]  }
   0x4   : > { %s126_s15 = sshll.u32 %s8257_s14, 4  ;;  %p8297_p3 = scmp.eq.s32.totalorder %s6553_s13, 0  ;;  %s127_s15 = int_to_ptr.vmem [resolvable:$true] %s126_s15 }
   0x5   : > { %p8291_p2 = pnand %p6555_p0, %p114_p1  ;;  %s8258_s18 = smov [#allocation4]  }
   0x6   : > { %s10735_s17 = scalar_select %p8297_p3, 1, 0 }
   0x7   : > { %s10734_s16 = scalar_select %p8291_p2, 1, 0 }
   0x8   : > { %p7377_p4 = pneg %p8291_p2  ;;  %s140_s19 = sshll.u32 %s8258_s18, 4  ;;  %s8309_s19 = int_to_ptr.vmem [resolvable:$true] %s140_s19 }
   0x9   : > { %s8185_s23 = scalar_lea.hbm %s10728_s1, 1216 }
   0xa   : > { %p8305_p5 = pnand %p8297_p3, %p7377_p4  ;;  %p8186_p6 = scmp.ne.s32.totalorder %s10728_s1, %s8185_s23 }
   0xb   : > { %p8192_p10 = scmp.lt.u32.totalorder %s8185_s23, %s10728_s1 }
   0xc   : > { %p8187_p7 = pneg %p8305_p5 }
   0xe   : > { %p8188_p8 = pnand %p8187_p7, %p8186_p6 }
  0x10   : > { %p8189_p9 = pneg %p8188_p8 }
  0x12   : > { %p8194_p11 = pnand %p8192_p10, %p8189_p9 }
  0x14   : > { %8197 = shalt.err (!%p8194_p11)
}
  0x15   : > { %s8198_s28 = scalar_lea.vmem %s127_s15, 1216  ;;  %p8206_p1 = scmp.lt.s32.totalorder %s127_s15, %s127_s15 }
  0x16   : > { %p8199_p12 = scmp.ne.s32.totalorder %s127_s15, %s8198_s28  ;;  %p8207_p4 = scmp.lt.s32.totalorder %s8198_s28, %s8198_s28 }
  0x18   : > { %p8201_p13 = pnand %p8199_p12, %p8187_p7  ;;  %p8208_p3 = por %p8207_p4, %p8206_p1 }
  0x1a   : > { %p8202_p0 = pneg %p8201_p13 }
  0x1c   : > { %p8209_p2 = pnand %p8208_p3, %p8202_p0 }
  0x1e   : > { %8212 = shalt.err (!%p8209_p2)
}
  0x1f   : > { %s8259_s29 = smov 64   ;;  %s8260_s30 = smov 4  }
  0x20   : > { %7380 = dma.hbm_to_vmem [thread:$0]  (!%p8305_p5), %s10728_s1, 1216, %s127_s15, [#allocation3], %s8259_s29, %s8259_s29, %s8260_s30  }
  0x21   : > { %s8213_s8 = scalar_lea.hbm %s10729_s2, 16 }
  0x22   : > { %p8214_p6 = scmp.ne.s32.totalorder %s10729_s2, %s8213_s8  ;;  %p8220_p8 = scmp.lt.u32.totalorder %s8213_s8, %s10729_s2 }
  0x24   : > { %p8216_p2 = pnand %p8214_p6, %p8187_p7 }
  0x26   : > { %p8217_p3 = pneg %p8216_p2 }
  0x28   : > { %p8222_p9 = pnand %p8220_p8, %p8217_p3 }
  0x2a   : > { %8225 = shalt.err (!%p8222_p9)
}
  0x2b   : > { %s8226_s15 = scalar_lea.vmem %s8309_s19, 16  ;;  %s8233_s18 = scalar_lea.vmem %s8309_s19, 32 }
  0x2c   : > { %p8227_p10 = scmp.ne.s32.totalorder %s8309_s19, %s8226_s15  ;;  %p8234_p13 = scmp.lt.s32.totalorder %s8309_s19, %s8309_s19 }
  0x2d   : > { %p8235_p0 = scmp.lt.s32.totalorder %s8233_s18, %s8226_s15 }
  0x2e   : > { %p8229_p11 = pnand %p8227_p10, %p8187_p7 }
  0x2f   : > { %p8236_p1 = por %p8235_p0, %p8234_p13 }
  0x30   : > { %p8230_p12 = pneg %p8229_p11 }
  0x32   : > { %p8237_p4 = pnand %p8236_p1, %p8230_p12 }
  0x34   : > { %8240 = shalt.err (!%p8237_p4)
}
  0x35   : > { %7383 = dma.hbm_to_vmem [thread:$0]  (!%p8305_p5), %s10729_s2, 16, %s8309_s19, [#allocation5]  }
  0x36   : > { %p10737_p6 = scmp.ne.s32.totalorder %s10734_s16, 0 }
  0x37   : > { %p10738_p7 = scmp.ne.s32.totalorder (!%p10737_p6), %s10735_s17, 0 }
  0x38   : > { %163 = sbr.rel (%p10737_p6) target bundleno = 1340 (0x53c), region = 32 }
  0x3f   : > { %8246 = dma.done.wait (%p10738_p7), [#allocation3], 1216  }
  0x40   : > { %8248 = vsyncadd (%p10738_p7), [#allocation3], 4294966080 }
  0x41   : > { %8250 = dma.done.wait (%p10738_p7), [#allocation5], 16  }
  0x42   : > { %8252 = vsyncadd (%p10738_p7), [#allocation5], 4294967280  ;;  %v8261_v0 = vmov 0   ;;  %s6562_s16 = sshll.u32 %s6553_s13, 9  ;;  %v7402_v1 = vld [vmem:[#allocation2] sm:$0xff]   ;;  %v7403_v2 = vld [vmem:[#allocation2 + $0x8] sm:$0xff]  }
  0x43   : > { %3881 = vmatprep.subr.bf16.mxu0 %v8261_v0  ;;  %7349 = vmatprep.subr.bf16.mxu1 %v8261_v0  ;;  %p193_p5 = scmp.lt.s32.totalorder %s6562_s16, 4095  ;;  %v7404_v3 = vld [vmem:[#allocation2 + $0x10] sm:$0xff]   ;;  %vm3105_vm0 = vcmask 154624   ;;  %v7405_v4 = vld [vmem:[#allocation2 + $0x18] sm:$0xff]   ;;  %v7406_v7 = vld [vmem:[#allocation2 + $0x20] sm:$0xff]   ;;  %vm3874_vm1 = vcmask 1040384  }
  0x44   : > { %3882 = vmatpush1.bf16.msra.mxu0 %v7402_v1  ;;  %7359 = vmatpush1.bf16.msra.mxu1 %v7402_v1  ;;  %v7407_v8 = vld [vmem:[#allocation2 + $0x28] sm:$0xff]   ;;  %v7408_v9 = vld [vmem:[#allocation2 + $0x30] sm:$0xff]   ;;  %v7409_v10 = vld [vmem:[#allocation2 + $0x38] sm:$0xff]   ;;  %vm3875_vm2 = vcmask 1041408   ;;  %v8262_v11 = vmov 65535   ;;  %vm5962_vm3 = vcmask 523264  }
  0x45   : > { %s10740_s16 = smov (!%p193_p5, %s6562_s16), 4095  ;;  %3883 = vmatprep.subr.bf16.mxu0 %v8261_v0  ;;  %7350 = vmatprep.subr.bf16.mxu1 %v8261_v0  ;;  %v3876_v12 = vsel %vm3874_vm1, 4294967295, %v8262_v11  ;;  %v7410_v13 = vld [vmem:[#allocation2 + $0x40] sm:$0xff]   ;;  %v7411_v14 = vld [vmem:[#allocation2 + $0x48] ss:$0 sps:$4 sm:$0x33]  }
  0x46   : > { %s7348_s17 = sshll.u32 %s10740_s16, 3  ;;  %v3877_v15 = vsel %vm3875_vm2, %v3876_v12, 0 }
  0x47   : > { %s8385_s20 = scalar_lea.vmem %s10727_s0, %s7348_s17  ;;  %v3879_v16 = vand.u32 %v7411_v14, %v3877_v15  ;;  %s8574_s25 = scalar_lea.vmem %s10730_s3, %s7348_s17 }
  0x48   : > { %3884 = vmatpush1.bf16.msra.mxu0 %v7403_v2  ;;  %7360 = vmatpush1.bf16.msra.mxu1 %v7403_v2  ;;  %v7414_v5 = vld [vmem:[%s8385_s20 + $0x4] ss:$8 sps:$4 sm:$0xff]   ;;  %v7412_v17 = vld [vmem:[%s8385_s20] ss:$8 sps:$4 sm:$0xff]   ;;  %v7418_v19 = vld [vmem:[%s8385_s20 + $0x14] ss:$8 sps:$4 sm:$0xff]  }
  0x49   : > { %3885 = vmatprep.subr.bf16.mxu0 %v8261_v0  ;;  %7351 = vmatprep.subr.bf16.mxu1 %v8261_v0  ;;  %v7417_v6 = vld [vmem:[%s8385_s20 + $0x804] ss:$8 sps:$4 sm:$0xff]   ;;  %v7415_v18 = vld [vmem:[%s8385_s20 + $0x800] ss:$8 sps:$4 sm:$0xff]   ;;  %v7420_v20 = vld [vmem:[%s8385_s20 + $0x814] ss:$8 sps:$4 sm:$0xff]  }
  0x4a   : > { %7090 = vmatprep.mubr.msk.bf16.mxu0 %vm3105_vm0, %v7414_v5  ;;  %7218 = vmatprep.mubr.msk.bf16.mxu1 %vm3105_vm0, %v7417_v6  ;;  %v7422_v21 = vld [vmem:[%s8385_s20 + $0x10] ss:$8 sps:$4 sm:$0xff]   ;;  %v7424_v23 = vld [vmem:[%s8385_s20 + $0x24] ss:$8 sps:$4 sm:$0xff]   ;;  %v7428_v25 = vld [vmem:[%s8385_s20 + $0x20] ss:$8 sps:$4 sm:$0xff]  }
  0x4b   : > { %v7423_v22 = vld [vmem:[%s8385_s20 + $0x810] ss:$8 sps:$4 sm:$0xff]   ;;  %v7426_v24 = vld [vmem:[%s8385_s20 + $0x824] ss:$8 sps:$4 sm:$0xff]   ;;  %v7429_v26 = vld [vmem:[%s8385_s20 + $0x820] ss:$8 sps:$4 sm:$0xff]  }
  0x4c   : > { %3886 = vmatpush1.bf16.msra.mxu0 %v7404_v3  ;;  %7361 = vmatpush1.bf16.msra.mxu1 %v7404_v3  ;;  %v7430_v27 = vld [vmem:[%s8385_s20 + $0x34] ss:$8 sps:$4 sm:$0xff]   ;;  %v7434_v29 = vld [vmem:[%s8385_s20 + $0x30] ss:$8 sps:$4 sm:$0xff]   ;;  %v7436_v31 = vld [vmem:[%s8385_s20 + $0x44] ss:$8 sps:$4 sm:$0xff]  }
  0x4d   : > { %3887 = vmatprep.subr.bf16.mxu0 %v8261_v0  ;;  %7352 = vmatprep.subr.bf16.mxu1 %v8261_v0  ;;  %v7432_v28 = vld [vmem:[%s8385_s20 + $0x834] ss:$8 sps:$4 sm:$0xff]   ;;  %v7435_v30 = vld [vmem:[%s8385_s20 + $0x830] ss:$8 sps:$4 sm:$0xff]   ;;  %v7438_v32 = vld [vmem:[%s8385_s20 + $0x844] ss:$8 sps:$4 sm:$0xff]  }
  0x4e   : > { %v7440_v33 = vld [vmem:[%s8385_s20 + $0x40] ss:$8 sps:$4 sm:$0xff]   ;;  %v7442_v35 = vld [vmem:[%s8385_s20 + $0x54] ss:$8 sps:$4 sm:$0xff]   ;;  %v7446_v37 = vld [vmem:[%s8385_s20 + $0x50] ss:$8 sps:$4 sm:$0xff]  }
  0x4f   : > { %v7441_v34 = vld [vmem:[%s8385_s20 + $0x840] ss:$8 sps:$4 sm:$0xff]   ;;  %v7444_v36 = vld [vmem:[%s8385_s20 + $0x854] ss:$8 sps:$4 sm:$0xff]   ;;  %v7447_v38 = vld [vmem:[%s8385_s20 + $0x850] ss:$8 sps:$4 sm:$0xff]  }
  0x50   : > { %3888 = vmatpush1.bf16.msra.mxu0 %v7405_v4  ;;  %7362 = vmatpush1.bf16.msra.mxu1 %v7405_v4  ;;  %v7448_v39 = vld [vmem:[%s8385_s20 + $0x64] ss:$8 sps:$4 sm:$0xff]   ;;  %v7452_v41 = vld [vmem:[%s8385_s20 + $0x60] ss:$8 sps:$4 sm:$0xff]   ;;  %v7454_v43 = vld [vmem:[%s8385_s20 + $0x74] ss:$8 sps:$4 sm:$0xff]  }
  0x51   : > { %3889 = vmatprep.subr.bf16.mxu0 %v8261_v0  ;;  %7353 = vmatprep.subr.bf16.mxu1 %v8261_v0  ;;  %v7450_v40 = vld [vmem:[%s8385_s20 + $0x864] ss:$8 sps:$4 sm:$0xff]   ;;  %v7453_v42 = vld [vmem:[%s8385_s20 + $0x860] ss:$8 sps:$4 sm:$0xff]   ;;  %v7456_v44 = vld [vmem:[%s8385_s20 + $0x874] ss:$8 sps:$4 sm:$0xff]  }
  0x52   : > { %v7458_v45 = vld [vmem:[%s8385_s20 + $0x70] ss:$8 sps:$4 sm:$0xff]   ;;  %v7460_v47 = vld [vmem:[%s8385_s20 + $0x84] ss:$8 sps:$4 sm:$0xff]   ;;  %v7464_v49 = vld [vmem:[%s8385_s20 + $0x80] ss:$8 sps:$4 sm:$0xff]  }
  0x53   : > { %v7459_v46 = vld [vmem:[%s8385_s20 + $0x870] ss:$8 sps:$4 sm:$0xff]   ;;  %v7462_v48 = vld [vmem:[%s8385_s20 + $0x884] ss:$8 sps:$4 sm:$0xff]   ;;  %v7465_v50 = vld [vmem:[%s8385_s20 + $0x880] ss:$8 sps:$4 sm:$0xff]  }
  0x54   : > { %3890 = vmatpush1.bf16.msra.mxu0 %v7406_v7  ;;  %7363 = vmatpush1.bf16.msra.mxu1 %v7406_v7  ;;  %v7466_v51 = vld [vmem:[%s8385_s20 + $0x94] ss:$8 sps:$4 sm:$0xff]   ;;  %v7470_v53 = vld [vmem:[%s8385_s20 + $0x90] ss:$8 sps:$4 sm:$0xff]   ;;  %v7472_v55 = vld [vmem:[%s8385_s20 + $0xa4] ss:$8 sps:$4 sm:$0xff]  }
  0x55   : > { %3891 = vmatprep.subr.bf16.mxu0 %v8261_v0  ;;  %7354 = vmatprep.subr.bf16.mxu1 %v8261_v0  ;;  %v7468_v52 = vld [vmem:[%s8385_s20 + $0x894] ss:$8 sps:$4 sm:$0xff]   ;;  %v7471_v54 = vld [vmem:[%s8385_s20 + $0x890] ss:$8 sps:$4 sm:$0xff]   ;;  %v7474_v56 = vld [vmem:[%s8385_s20 + $0x8a4] ss:$8 sps:$4 sm:$0xff]  }
  0x56   : > { %v7476_v57 = vld [vmem:[%s8385_s20 + $0xa0] ss:$8 sps:$4 sm:$0xff]   ;;  %v7478_v59 = vld [vmem:[%s8385_s20 + $0xb4] ss:$8 sps:$4 sm:$0xff]   ;;  %v7482_v61 = vld [vmem:[%s8385_s20 + $0xb0] ss:$8 sps:$4 sm:$0xff]  }
  0x57   : > { %v7477_v58 = vld [vmem:[%s8385_s20 + $0x8a0] ss:$8 sps:$4 sm:$0xff]   ;;  %v7480_v60 = vld [vmem:[%s8385_s20 + $0x8b4] ss:$8 sps:$4 sm:$0xff]   ;;  %v7483_v62 = vld [vmem:[%s8385_s20 + $0x8b0] ss:$8 sps:$4 sm:$0xff]  }
  0x58   : > { %3892 = vmatpush1.bf16.msra.mxu0 %v7407_v8  ;;  %7364 = vmatpush1.bf16.msra.mxu1 %v7407_v8  ;;  %v7484_v63 = vld [vmem:[%s8385_s20 + $0xc4] ss:$8 sps:$4 sm:$0xff]   ;;  %v7488_v1 = vld [vmem:[%s8385_s20 + $0xc0] ss:$8 sps:$4 sm:$0xff]   ;;  %v7490_v3 = vld [vmem:[%s8385_s20 + $0xd4] ss:$8 sps:$4 sm:$0xff]  }
  0x59   : > { %3893 = vmatprep.subr.bf16.mxu0 %v8261_v0  ;;  %7355 = vmatprep.subr.bf16.mxu1 %v8261_v0  ;;  %v7489_v2 = vld [vmem:[%s8385_s20 + $0x8c0] ss:$8 sps:$4 sm:$0xff]   ;;  %v7492_v4 = vld [vmem:[%s8385_s20 + $0x8d4] ss:$8 sps:$4 sm:$0xff]   ;;  %v7494_v5 = vld [vmem:[%s8385_s20 + $0xd0] ss:$8 sps:$4 sm:$0xff]  }
  0x5a   : > { %v7495_v6 = vld [vmem:[%s8385_s20 + $0x8d0] ss:$8 sps:$4 sm:$0xff]   ;;  %v7496_v7 = vld [vmem:[%s8385_s20 + $0xe4] ss:$8 sps:$4 sm:$0xff]   ;;  %v7502_v11 = vld [vmem:[%s8385_s20 + $0xf4] ss:$8 sps:$4 sm:$0xff]  }
  0x5b   : > { %v7498_v8 = vld [vmem:[%s8385_s20 + $0x8e4] ss:$8 sps:$4 sm:$0xff]   ;;  %v7504_v12 = vld [vmem:[%s8385_s20 + $0x8f4] ss:$8 sps:$4 sm:$0xff]   ;;  %v7507_v14 = vld [vmem:[%s8385_s20 + $0x8f0] ss:$8 sps:$4 sm:$0xff]  }
  0x5c   : > { %3894 = vmatpush1.bf16.msra.mxu0 %v7408_v9  ;;  %7365 = vmatpush1.bf16.msra.mxu1 %v7408_v9  ;;  %v7500_v9 = vld [vmem:[%s8385_s20 + $0xe0] ss:$8 sps:$4 sm:$0xff]   ;;  %v7508_v15 = vld [vmem:[%s8385_s20 + $0x104] ss:$8 sps:$4 sm:$0xff]  }
  0x5d   : > { %3895 = vmatprep.subr.bf16.mxu0 %v8261_v0  ;;  %7356 = vmatprep.subr.bf16.mxu1 %v8261_v0 }
  0x60   : > { %3896 = vmatpush1.bf16.msra.mxu0 %v7409_v10  ;;  %7366 = vmatpush1.bf16.msra.mxu1 %v7409_v10  ;;  %v7501_v10 = vld [vmem:[%s8385_s20 + $0x8e0] ss:$8 sps:$4 sm:$0xff]  }
  0x61   : > { %3897 = vmatprep.subr.bf16.mxu0 %v8261_v0  ;;  %7357 = vmatprep.subr.bf16.mxu1 %v8261_v0 }
  0x64   : > { %3898 = vmatpush1.bf16.msra.mxu0 %v7410_v13  ;;  %7367 = vmatpush1.bf16.msra.mxu1 %v7410_v13  ;;  %v7506_v13 = vld [vmem:[%s8385_s20 + $0xf0] ss:$8 sps:$4 sm:$0xff]  }
  0x65   : > { %3899 = vmatprep.subr.bf16.mxu0 %v8261_v0  ;;  %7358 = vmatprep.subr.bf16.mxu1 %v8261_v0  ;;  %v7486_v0 = vld [vmem:[%s8385_s20 + $0x8c4] ss:$8 sps:$4 sm:$0xff]  }
  0x68   : > { %3900 = vmatpush1.bf16.msra.mxu0 %v3879_v16  ;;  %7368 = vmatpush1.bf16.msra.mxu1 %v3879_v16  ;;  %v7510_v16 = vld [vmem:[%s8385_s20 + $0x904] ss:$8 sps:$4 sm:$0xff]  }
  0x6b   : > { %3914 = vmatmul.mubr.bf16.vlgmr.msra.gmra.mrb[0].mxu0 %v7412_v17  ;;  %4938 = vmatmul.mubr.bf16.vlgmr.msra.gmra.mrb[0].mxu1 %v7415_v18  ;;  %v7512_v17 = vld [vmem:[%s8385_s20 + $0x100] ss:$8 sps:$4 sm:$0xff]  }
  0x6c   : > { %7091 = vmatprep.mubr.msk.bf16.mxu0 %vm3105_vm0, %v7418_v19  ;;  %7219 = vmatprep.mubr.msk.bf16.mxu1 %vm3105_vm0, %v7420_v20  ;;  %v7513_v18 = vld [vmem:[%s8385_s20 + $0x900] ss:$8 sps:$4 sm:$0xff]   ;;  %v7514_v19 = vld [vmem:[%s8385_s20 + $0x114] ss:$8 sps:$4 sm:$0xff]  }
  0x6d   : > { %v7516_v20 = vld [vmem:[%s8385_s20 + $0x914] ss:$8 sps:$4 sm:$0xff]  }
  0x73   : > { %3922 = vmatmul.mubr.bf16.gmra.mrb[4].mxu0 %v7422_v21  ;;  %4946 = vmatmul.mubr.bf16.gmra.mrb[4].mxu1 %v7423_v22  ;;  %v7518_v21 = vld [vmem:[%s8385_s20 + $0x110] ss:$8 sps:$4 sm:$0xff]  }
  0x74   : > { %7092 = vmatprep.mubr.msk.bf16.mxu0 %vm3105_vm0, %v7424_v23  ;;  %7220 = vmatprep.mubr.msk.bf16.mxu1 %vm3105_vm0, %v7426_v24  ;;  %v7519_v22 = vld [vmem:[%s8385_s20 + $0x910] ss:$8 sps:$4 sm:$0xff]   ;;  %v7520_v23 = vld [vmem:[%s8385_s20 + $0x124] ss:$8 sps:$4 sm:$0xff]  }
  0x75   : > { %v7522_v24 = vld [vmem:[%s8385_s20 + $0x924] ss:$8 sps:$4 sm:$0xff]  }
  0x7b   : > { %3930 = vmatmul.mubr.bf16.gmra.mrb[8].mxu0 %v7428_v25  ;;  %4954 = vmatmul.mubr.bf16.gmra.mrb[8].mxu1 %v7429_v26  ;;  %v7524_v25 = vld [vmem:[%s8385_s20 + $0x120] ss:$8 sps:$4 sm:$0xff]  }
  0x7c   : > { %7093 = vmatprep.mubr.msk.bf16.mxu0 %vm3105_vm0, %v7430_v27  ;;  %7221 = vmatprep.mubr.msk.bf16.mxu1 %vm3105_vm0, %v7432_v28  ;;  %v7525_v26 = vld [vmem:[%s8385_s20 + $0x920] ss:$8 sps:$4 sm:$0xff]   ;;  %v7526_v27 = vld [vmem:[%s8385_s20 + $0x134] ss:$8 sps:$4 sm:$0xff]  }
  0x7d   : > { %v7528_v28 = vld [vmem:[%s8385_s20 + $0x934] ss:$8 sps:$4 sm:$0xff]  }
  0x83   : > { %3938 = vmatmul.mubr.bf16.gmra.mrb[12].mxu0 %v7434_v29  ;;  %4962 = vmatmul.mubr.bf16.gmra.mrb[12].mxu1 %v7435_v30  ;;  %v7530_v29 = vld [vmem:[%s8385_s20 + $0x130] ss:$8 sps:$4 sm:$0xff]  }
  0x84   : > { %7094 = vmatprep.mubr.msk.bf16.mxu0 %vm3105_vm0, %v7436_v31  ;;  %7222 = vmatprep.mubr.msk.bf16.mxu1 %vm3105_vm0, %v7438_v32  ;;  %v7531_v30 = vld [vmem:[%s8385_s20 + $0x930] ss:$8 sps:$4 sm:$0xff]   ;;  %v7532_v31 = vld [vmem:[%s8385_s20 + $0x144] ss:$8 sps:$4 sm:$0xff]  }
  0x85   : > { %v7534_v32 = vld [vmem:[%s8385_s20 + $0x944] ss:$8 sps:$4 sm:$0xff]  }
  0x8b   : > { %3946 = vmatmul.mubr.bf16.gmra.mrb[16].mxu0 %v7440_v33  ;;  %4970 = vmatmul.mubr.bf16.gmra.mrb[16].mxu1 %v7441_v34  ;;  %v7536_v33 = vld [vmem:[%s8385_s20 + $0x140] ss:$8 sps:$4 sm:$0xff]  }
  0x8c   : > { %7095 = vmatprep.mubr.msk.bf16.mxu0 %vm3105_vm0, %v7442_v35  ;;  %7223 = vmatprep.mubr.msk.bf16.mxu1 %vm3105_vm0, %v7444_v36  ;;  %v7537_v34 = vld [vmem:[%s8385_s20 + $0x940] ss:$8 sps:$4 sm:$0xff]   ;;  %v7538_v35 = vld [vmem:[%s8385_s20 + $0x154] ss:$8 sps:$4 sm:$0xff]  }
  0x8d   : > { %v7540_v36 = vld [vmem:[%s8385_s20 + $0x954] ss:$8 sps:$4 sm:$0xff]  }
  0x93   : > { %3954 = vmatmul.mubr.bf16.gmra.mrb[20].mxu0 %v7446_v37  ;;  %4978 = vmatmul.mubr.bf16.gmra.mrb[20].mxu1 %v7447_v38  ;;  %v7542_v37 = vld [vmem:[%s8385_s20 + $0x150] ss:$8 sps:$4 sm:$0xff]  }
  0x94   : > { %7096 = vmatprep.mubr.msk.bf16.mxu0 %vm3105_vm0, %v7448_v39  ;;  %7224 = vmatprep.mubr.msk.bf16.mxu1 %vm3105_vm0, %v7450_v40  ;;  %v7543_v38 = vld [vmem:[%s8385_s20 + $0x950] ss:$8 sps:$4 sm:$0xff]   ;;  %v7544_v39 = vld [vmem:[%s8385_s20 + $0x164] ss:$8 sps:$4 sm:$0xff]  }
  0x95   : > { %v7546_v40 = vld [vmem:[%s8385_s20 + $0x964] ss:$8 sps:$4 sm:$0xff]  }
  0x9b   : > { %3962 = vmatmul.mubr.bf16.gmra.mrb[24].mxu0 %v7452_v41  ;;  %4986 = vmatmul.mubr.bf16.gmra.mrb[24].mxu1 %v7453_v42  ;;  %v7548_v41 = vld [vmem:[%s8385_s20 + $0x160] ss:$8 sps:$4 sm:$0xff]  }
  0x9c   : > { %7097 = vmatprep.mubr.msk.bf16.mxu0 %vm3105_vm0, %v7454_v43  ;;  %7225 = vmatprep.mubr.msk.bf16.mxu1 %vm3105_vm0, %v7456_v44  ;;  %v7549_v42 = vld [vmem:[%s8385_s20 + $0x960] ss:$8 sps:$4 sm:$0xff]   ;;  %v7550_v43 = vld [vmem:[%s8385_s20 + $0x174] ss:$8 sps:$4 sm:$0xff]  }
  0x9d   : > { %v7552_v44 = vld [vmem:[%s8385_s20 + $0x974] ss:$8 sps:$4 sm:$0xff]  }
  0xa3   : > { %3970 = vmatmul.mubr.bf16.gmra.mrb[28].mxu0 %v7458_v45  ;;  %4994 = vmatmul.mubr.bf16.gmra.mrb[28].mxu1 %v7459_v46  ;;  %v7554_v45 = vld [vmem:[%s8385_s20 + $0x170] ss:$8 sps:$4 sm:$0xff]  }
  0xa4   : > { %7098 = vmatprep.mubr.msk.bf16.mxu0 %vm3105_vm0, %v7460_v47  ;;  %7226 = vmatprep.mubr.msk.bf16.mxu1 %vm3105_vm0, %v7462_v48  ;;  %v7555_v46 = vld [vmem:[%s8385_s20 + $0x970] ss:$8 sps:$4 sm:$0xff]   ;;  %v7556_v47 = vld [vmem:[%s8385_s20 + $0x184] ss:$8 sps:$4 sm:$0xff]  }
  0xa5   : > { %v7558_v48 = vld [vmem:[%s8385_s20 + $0x984] ss:$8 sps:$4 sm:$0xff]  }
  0xab   : > { %3978 = vmatmul.mubr.bf16.gmra.mrb[32].mxu0 %v7464_v49  ;;  %5002 = vmatmul.mubr.bf16.gmra.mrb[32].mxu1 %v7465_v50  ;;  %v7560_v49 = vld [vmem:[%s8385_s20 + $0x180] ss:$8 sps:$4 sm:$0xff]  }
  0xac   : > { %7099 = vmatprep.mubr.msk.bf16.mxu0 %vm3105_vm0, %v7466_v51  ;;  %7227 = vmatprep.mubr.msk.bf16.mxu1 %vm3105_vm0, %v7468_v52  ;;  %v7561_v50 = vld [vmem:[%s8385_s20 + $0x980] ss:$8 sps:$4 sm:$0xff]   ;;  %v7562_v51 = vld [vmem:[%s8385_s20 + $0x194] ss:$8 sps:$4 sm:$0xff]  }
  0xad   : > { %v7564_v52 = vld [vmem:[%s8385_s20 + $0x994] ss:$8 sps:$4 sm:$0xff]  }
  0xb3   : > { %3986 = vmatmul.mubr.bf16.gmra.mrb[36].mxu0 %v7470_v53  ;;  %5010 = vmatmul.mubr.bf16.gmra.mrb[36].mxu1 %v7471_v54  ;;  %v7566_v53 = vld [vmem:[%s8385_s20 + $0x190] ss:$8 sps:$4 sm:$0xff]  }
  0xb4   : > { %7100 = vmatprep.mubr.msk.bf16.mxu0 %vm3105_vm0, %v7472_v55  ;;  %7228 = vmatprep.mubr.msk.bf16.mxu1 %vm3105_vm0, %v7474_v56  ;;  %v7567_v54 = vld [vmem:[%s8385_s20 + $0x990] ss:$8 sps:$4 sm:$0xff]   ;;  %v7568_v55 = vld [vmem:[%s8385_s20 + $0x1a4] ss:$8 sps:$4 sm:$0xff]  }
  0xb5   : > { %v7570_v56 = vld [vmem:[%s8385_s20 + $0x9a4] ss:$8 sps:$4 sm:$0xff]  }
  0xbb   : > { %3994 = vmatmul.mubr.bf16.gmra.mrb[40].mxu0 %v7476_v57  ;;  %5018 = vmatmul.mubr.bf16.gmra.mrb[40].mxu1 %v7477_v58  ;;  %v7572_v57 = vld [vmem:[%s8385_s20 + $0x1a0] ss:$8 sps:$4 sm:$0xff]  }
  0xbc   : > { %7101 = vmatprep.mubr.msk.bf16.mxu0 %vm3105_vm0, %v7478_v59  ;;  %7229 = vmatprep.mubr.msk.bf16.mxu1 %vm3105_vm0, %v7480_v60  ;;  %v7573_v58 = vld [vmem:[%s8385_s20 + $0x9a0] ss:$8 sps:$4 sm:$0xff]   ;;  %v7574_v59 = vld [vmem:[%s8385_s20 + $0x1b4] ss:$8 sps:$4 sm:$0xff]  }
  0xbd   : > { %v7576_v60 = vld [vmem:[%s8385_s20 + $0x9b4] ss:$8 sps:$4 sm:$0xff]  }
  0xc3   : > { %4002 = vmatmul.mubr.bf16.gmra.mrb[44].mxu0 %v7482_v61  ;;  %5026 = vmatmul.mubr.bf16.gmra.mrb[44].mxu1 %v7483_v62  ;;  %v8565_v61 = vld [vmem:[#allocation4] ss:$0 sm:$0xff] }
  0xc4   : > { %7102 = vmatprep.mubr.msk.bf16.mxu0 %vm3105_vm0, %v7484_v63  ;;  %7230 = vmatprep.mubr.msk.bf16.mxu1 %vm3105_vm0, %v7486_v0 }
  0xcb   : > { %4010 = vmatmul.mubr.bf16.gmra.mrb[48].mxu0 %v7488_v1  ;;  %5034 = vmatmul.mubr.bf16.gmra.mrb[48].mxu1 %v7489_v2 }
  0xcc   : > { %7103 = vmatprep.mubr.msk.bf16.mxu0 %vm3105_vm0, %v7490_v3  ;;  %7231 = vmatprep.mubr.msk.bf16.mxu1 %vm3105_vm0, %v7492_v4  ;;  %v7578_v4 = vld [vmem:[%s8385_s20 + $0x1b0] ss:$8 sps:$4 sm:$0xff]  }
  0xd3   : > { %4018 = vmatmul.mubr.bf16.gmra.mrb[52].mxu0 %v7494_v5  ;;  %5042 = vmatmul.mubr.bf16.gmra.mrb[52].mxu1 %v7495_v6  ;;  %v7579_v5 = vld [vmem:[%s8385_s20 + $0x9b0] ss:$8 sps:$4 sm:$0xff]  }
  0xd4   : > { %7104 = vmatprep.mubr.msk.bf16.mxu0 %vm3105_vm0, %v7496_v7  ;;  %7232 = vmatprep.mubr.msk.bf16.mxu1 %vm3105_vm0, %v7498_v8  ;;  %v7580_v8 = vld [vmem:[%s8385_s20 + $0x1c4] ss:$8 sps:$4 sm:$0xff]  }
  0xdb   : > { %4026 = vmatmul.mubr.bf16.gmra.mrb[56].mxu0 %v7500_v9  ;;  %5050 = vmatmul.mubr.bf16.gmra.mrb[56].mxu1 %v7501_v10  ;;  %v7582_v9 = vld [vmem:[%s8385_s20 + $0x9c4] ss:$8 sps:$4 sm:$0xff]  }
  0xdc   : > { %7105 = vmatprep.mubr.msk.bf16.mxu0 %vm3105_vm0, %v7502_v11  ;;  %7233 = vmatprep.mubr.msk.bf16.mxu1 %vm3105_vm0, %v7504_v12 }
  0xe3   : > { %4034 = vmatmul.mubr.bf16.gmra.mrb[60].mxu0 %v7506_v13  ;;  %5058 = vmatmul.mubr.bf16.gmra.mrb[60].mxu1 %v7507_v14 }
  0xe4   : > { %7106 = vmatprep.mubr.msk.bf16.mxu0 %vm3105_vm0, %v7508_v15  ;;  %7234 = vmatprep.mubr.msk.bf16.mxu1 %vm3105_vm0, %v7510_v16 }
  0xeb   : > { %4042 = vmatmul.mubr.bf16.gmra.mrb[64].mxu0 %v7512_v17  ;;  %5066 = vmatmul.mubr.bf16.gmra.mrb[64].mxu1 %v7513_v18 }
  0xec   : > { %7107 = vmatprep.mubr.msk.bf16.mxu0 %vm3105_vm0, %v7514_v19  ;;  %7235 = vmatprep.mubr.msk.bf16.mxu1 %vm3105_vm0, %v7516_v20  ;;  %v7584_v20 = vld [vmem:[%s8385_s20 + $0x1c0] ss:$8 sps:$4 sm:$0xff]  }
  0xf3   : > { %4050 = vmatmul.mubr.bf16.gmra.mrb[68].mxu0 %v7518_v21  ;;  %5074 = vmatmul.mubr.bf16.gmra.mrb[68].mxu1 %v7519_v22  ;;  %v7585_v21 = vld [vmem:[%s8385_s20 + $0x9c0] ss:$8 sps:$4 sm:$0xff]  }
  0xf4   : > { %7108 = vmatprep.mubr.msk.bf16.mxu0 %vm3105_vm0, %v7520_v23  ;;  %7236 = vmatprep.mubr.msk.bf16.mxu1 %vm3105_vm0, %v7522_v24  ;;  %v7586_v24 = vld [vmem:[%s8385_s20 + $0x1d4] ss:$8 sps:$4 sm:$0xff]  }
  0xfb   : > { %4058 = vmatmul.mubr.bf16.gmra.mrb[72].mxu0 %v7524_v25  ;;  %5082 = vmatmul.mubr.bf16.gmra.mrb[72].mxu1 %v7525_v26  ;;  %v7588_v25 = vld [vmem:[%s8385_s20 + $0x9d4] ss:$8 sps:$4 sm:$0xff]  }
  0xfc   : > { %7109 = vmatprep.mubr.msk.bf16.mxu0 %vm3105_vm0, %v7526_v27  ;;  %7237 = vmatprep.mubr.msk.bf16.mxu1 %vm3105_vm0, %v7528_v28 }
 0x103   : > { %4066 = vmatmul.mubr.bf16.gmra.mrb[76].mxu0 %v7530_v29  ;;  %5090 = vmatmul.mubr.bf16.gmra.mrb[76].mxu1 %v7531_v30 }
 0x104   : > { %7110 = vmatprep.mubr.msk.bf16.mxu0 %vm3105_vm0, %v7532_v31  ;;  %7238 = vmatprep.mubr.msk.bf16.mxu1 %vm3105_vm0, %v7534_v32 }
 0x10b   : > { %4074 = vmatmul.mubr.bf16.gmra.mrb[80].mxu0 %v7536_v33  ;;  %5098 = vmatmul.mubr.bf16.gmra.mrb[80].mxu1 %v7537_v34 }
 0x10c   : > { %7111 = vmatprep.mubr.msk.bf16.mxu0 %vm3105_vm0, %v7538_v35  ;;  %7239 = vmatprep.mubr.msk.bf16.mxu1 %vm3105_vm0, %v7540_v36  ;;  %v7590_v36 = vld [vmem:[%s8385_s20 + $0x1d0] ss:$8 sps:$4 sm:$0xff]  }
 0x113   : > { %4082 = vmatmul.mubr.bf16.gmra.mrb[84].mxu0 %v7542_v37  ;;  %5106 = vmatmul.mubr.bf16.gmra.mrb[84].mxu1 %v7543_v38  ;;  %v7591_v37 = vld [vmem:[%s8385_s20 + $0x9d0] ss:$8 sps:$4 sm:$0xff]  }
 0x114   : > { %7112 = vmatprep.mubr.msk.bf16.mxu0 %vm3105_vm0, %v7544_v39  ;;  %7240 = vmatprep.mubr.msk.bf16.mxu1 %vm3105_vm0, %v7546_v40  ;;  %v7592_v40 = vld [vmem:[%s8385_s20 + $0x1e4] ss:$8 sps:$4 sm:$0xff]  }
 0x11b   : > { %4090 = vmatmul.mubr.bf16.gmra.mrb[88].mxu0 %v7548_v41  ;;  %5114 = vmatmul.mubr.bf16.gmra.mrb[88].mxu1 %v7549_v42  ;;  %v7594_v41 = vld [vmem:[%s8385_s20 + $0x9e4] ss:$8 sps:$4 sm:$0xff]  }
 0x11c   : > { %7113 = vmatprep.mubr.msk.bf16.mxu0 %vm3105_vm0, %v7550_v43  ;;  %7241 = vmatprep.mubr.msk.bf16.mxu1 %vm3105_vm0, %v7552_v44 }
 0x123   : > { %4098 = vmatmul.mubr.bf16.gmra.mrb[92].mxu0 %v7554_v45  ;;  %5122 = vmatmul.mubr.bf16.gmra.mrb[92].mxu1 %v7555_v46 }
 0x124   : > { %7114 = vmatprep.mubr.msk.bf16.mxu0 %vm3105_vm0, %v7556_v47  ;;  %7242 = vmatprep.mubr.msk.bf16.mxu1 %vm3105_vm0, %v7558_v48 }
 0x12b   : > { %4106 = vmatmul.mubr.bf16.gmra.mrb[96].mxu0 %v7560_v49  ;;  %5130 = vmatmul.mubr.bf16.gmra.mrb[96].mxu1 %v7561_v50 }
 0x12c   : > { %7115 = vmatprep.mubr.msk.bf16.mxu0 %vm3105_vm0, %v7562_v51  ;;  %7243 = vmatprep.mubr.msk.bf16.mxu1 %vm3105_vm0, %v7564_v52  ;;  %v7596_v52 = vld [vmem:[%s8385_s20 + $0x1e0] ss:$8 sps:$4 sm:$0xff]  }
 0x133   : > { %4114 = vmatmul.mubr.bf16.gmra.mrb[100].mxu0 %v7566_v53  ;;  %5138 = vmatmul.mubr.bf16.gmra.mrb[100].mxu1 %v7567_v54  ;;  %v7597_v53 = vld [vmem:[%s8385_s20 + $0x9e0] ss:$8 sps:$4 sm:$0xff]  }
 0x134   : > { %7116 = vmatprep.mubr.msk.bf16.mxu0 %vm3105_vm0, %v7568_v55  ;;  %7244 = vmatprep.mubr.msk.bf16.mxu1 %vm3105_vm0, %v7570_v56  ;;  %v7598_v56 = vld [vmem:[%s8385_s20 + $0x1f4] ss:$8 sps:$4 sm:$0xff]  }
 0x13b   : > { %4122 = vmatmul.mubr.bf16.gmra.mrb[104].mxu0 %v7572_v57  ;;  %5146 = vmatmul.mubr.bf16.gmra.mrb[104].mxu1 %v7573_v58  ;;  %v7600_v57 = vld [vmem:[%s8385_s20 + $0x9f4] ss:$8 sps:$4 sm:$0xff]  }
 0x13c   : > { %7117 = vmatprep.mubr.msk.bf16.mxu0 %vm3105_vm0, %v7574_v59  ;;  %7245 = vmatprep.mubr.msk.bf16.mxu1 %vm3105_vm0, %v7576_v60 }
 0x13e   : > { %v3915_v62 = vpop.f32.mrb[0].mxu0  ;;  %v4939_v63 = vpop.f32.mrb[0].mxu1 }
 0x13f   : > { %v3916_v0 = vadd.f32 %v8565_v61, %v3915_v62  ;;  %v4940_v1 = vadd.f32 %v8565_v61, %v4939_v63  ;;  %v3917_v2 = vpop.f32.mrb[1].mxu0  ;;  %v4941_v3 = vpop.f32.mrb[1].mxu1 }
 0x140   : > { %v3918_v6 = vpop.f32.mrb[2].mxu0  ;;  %v4942_v7 = vpop.f32.mrb[2].mxu1 }
 0x141   : > { %5963 = vst.msk [vmem:[%s8574_s25] sm:$0xff] %vm5962_vm3, %v3916_v0  ;;  %6219 = vst.msk [vmem:[%s8574_s25 + $0x800] sm:$0xff] %vm5962_vm3, %v4940_v1  ;;  %v3919_v10 = vadd.f32 %v8565_v61, %v3918_v6  ;;  %v4943_v11 = vadd.f32 %v8565_v61, %v4942_v7  ;;  %v3920_v12 = vpop.f32.mrb[3].mxu0  ;;  %v4944_v13 = vpop.f32.mrb[3].mxu1  ;;  %v7603_v6 = vld [vmem:[%s8385_s20 + $0x9f0] ss:$8 sps:$4 sm:$0xff]  }
 0x143   : > { %5964 = vst.msk [vmem:[%s8574_s25 + $0x8] sm:$0xff] %vm5962_vm3, %v3919_v10  ;;  %6220 = vst.msk [vmem:[%s8574_s25 + $0x808] sm:$0xff] %vm5962_vm3, %v4943_v11  ;;  %4130 = vmatmul.mubr.bf16.gmra.mrb[108].mxu0 %v7578_v4  ;;  %5154 = vmatmul.mubr.bf16.gmra.mrb[108].mxu1 %v7579_v5  ;;  %v7602_v5 = vld [vmem:[%s8385_s20 + $0x1f0] ss:$8 sps:$4 sm:$0xff]   ;;  %v7606_v10 = vld [vmem:[%s8385_s20 + $0xa04] ss:$8 sps:$4 sm:$0xff]  }
 0x144   : > { %7118 = vmatprep.mubr.msk.bf16.mxu0 %vm3105_vm0, %v7580_v8  ;;  %7246 = vmatprep.mubr.msk.bf16.mxu1 %vm3105_vm0, %v7582_v9  ;;  %v7604_v9 = vld [vmem:[%s8385_s20 + $0x204] ss:$8 sps:$4 sm:$0xff]  }
 0x146   : > { %v3923_v14 = vpop.f32.mrb[4].mxu0  ;;  %v4947_v15 = vpop.f32.mrb[4].mxu1 }
 0x147   : > { %v3924_v16 = vadd.f32 %v8565_v61, %v3923_v14  ;;  %v4948_v17 = vadd.f32 %v8565_v61, %v4947_v15  ;;  %v3925_v18 = vpop.f32.mrb[5].mxu0  ;;  %v4949_v19 = vpop.f32.mrb[5].mxu1 }
 0x148   : > { %v3926_v22 = vpop.f32.mrb[6].mxu0  ;;  %v4950_v23 = vpop.f32.mrb[6].mxu1 }
 0x149   : > { %5965 = vst.msk [vmem:[%s8574_s25 + $0x10] sm:$0xff] %vm5962_vm3, %v3924_v16  ;;  %6221 = vst.msk [vmem:[%s8574_s25 + $0x810] sm:$0xff] %vm5962_vm3, %v4948_v17  ;;  %v3927_v26 = vadd.f32 %v8565_v61, %v3926_v22  ;;  %v4951_v27 = vadd.f32 %v8565_v61, %v4950_v23  ;;  %v3928_v28 = vpop.f32.mrb[7].mxu0  ;;  %v4952_v29 = vpop.f32.mrb[7].mxu1  ;;  %v7609_v22 = vld [vmem:[%s8385_s20 + $0xa00] ss:$8 sps:$4 sm:$0xff]  }
 0x14b   : > { %5966 = vst.msk [vmem:[%s8574_s25 + $0x18] sm:$0xff] %vm5962_vm3, %v3927_v26  ;;  %6222 = vst.msk [vmem:[%s8574_s25 + $0x818] sm:$0xff] %vm5962_vm3, %v4951_v27  ;;  %4138 = vmatmul.mubr.bf16.gmra.mrb[112].mxu0 %v7584_v20  ;;  %5162 = vmatmul.mubr.bf16.gmra.mrb[112].mxu1 %v7585_v21  ;;  %v7608_v21 = vld [vmem:[%s8385_s20 + $0x200] ss:$8 sps:$4 sm:$0xff]   ;;  %v7612_v26 = vld [vmem:[%s8385_s20 + $0xa14] ss:$8 sps:$4 sm:$0xff]  }
 0x14c   : > { %7119 = vmatprep.mubr.msk.bf16.mxu0 %vm3105_vm0, %v7586_v24  ;;  %7247 = vmatprep.mubr.msk.bf16.mxu1 %vm3105_vm0, %v7588_v25  ;;  %v7610_v25 = vld [vmem:[%s8385_s20 + $0x214] ss:$8 sps:$4 sm:$0xff]  }
 0x14e   : > { %v3931_v30 = vpop.f32.mrb[8].mxu0  ;;  %v4955_v31 = vpop.f32.mrb[8].mxu1 }
 0x14f   : > { %v3932_v32 = vadd.f32 %v8565_v61, %v3931_v30  ;;  %v4956_v33 = vadd.f32 %v8565_v61, %v4955_v31  ;;  %v3933_v34 = vpop.f32.mrb[9].mxu0  ;;  %v4957_v35 = vpop.f32.mrb[9].mxu1 }
 0x150   : > { %v3934_v38 = vpop.f32.mrb[10].mxu0  ;;  %v4958_v39 = vpop.f32.mrb[10].mxu1 }
 0x151   : > { %5967 = vst.msk [vmem:[%s8574_s25 + $0x20] sm:$0xff] %vm5962_vm3, %v3932_v32  ;;  %6223 = vst.msk [vmem:[%s8574_s25 + $0x820] sm:$0xff] %vm5962_vm3, %v4956_v33  ;;  %v3935_v42 = vadd.f32 %v8565_v61, %v3934_v38  ;;  %v4959_v43 = vadd.f32 %v8565_v61, %v4958_v39  ;;  %v3936_v44 = vpop.f32.mrb[11].mxu0  ;;  %v4960_v45 = vpop.f32.mrb[11].mxu1  ;;  %v7615_v38 = vld [vmem:[%s8385_s20 + $0xa10] ss:$8 sps:$4 sm:$0xff]  }
 0x153   : > { %5968 = vst.msk [vmem:[%s8574_s25 + $0x28] sm:$0xff] %vm5962_vm3, %v3935_v42  ;;  %6224 = vst.msk [vmem:[%s8574_s25 + $0x828] sm:$0xff] %vm5962_vm3, %v4959_v43  ;;  %4146 = vmatmul.mubr.bf16.gmra.mrb[116].mxu0 %v7590_v36  ;;  %5170 = vmatmul.mubr.bf16.gmra.mrb[116].mxu1 %v7591_v37  ;;  %v7614_v37 = vld [vmem:[%s8385_s20 + $0x210] ss:$8 sps:$4 sm:$0xff]   ;;  %v7618_v42 = vld [vmem:[%s8385_s20 + $0xa24] ss:$8 sps:$4 sm:$0xff]  }
 0x154   : > { %7120 = vmatprep.mubr.msk.bf16.mxu0 %vm3105_vm0, %v7592_v40  ;;  %7248 = vmatprep.mubr.msk.bf16.mxu1 %vm3105_vm0, %v7594_v41  ;;  %v7616_v41 = vld [vmem:[%s8385_s20 + $0x224] ss:$8 sps:$4 sm:$0xff]  }
 0x156   : > { %v3939_v46 = vpop.f32.mrb[12].mxu0  ;;  %v4963_v47 = vpop.f32.mrb[12].mxu1 }
 0x157   : > { %v3940_v48 = vadd.f32 %v8565_v61, %v3939_v46  ;;  %v4964_v49 = vadd.f32 %v8565_v61, %v4963_v47  ;;  %v3941_v50 = vpop.f32.mrb[13].mxu0  ;;  %v4965_v51 = vpop.f32.mrb[13].mxu1 }
 0x158   : > { %v3942_v54 = vpop.f32.mrb[14].mxu0  ;;  %v4966_v55 = vpop.f32.mrb[14].mxu1 }
 0x159   : > { %5969 = vst.msk [vmem:[%s8574_s25 + $0x30] sm:$0xff] %vm5962_vm3, %v3940_v48  ;;  %6225 = vst.msk [vmem:[%s8574_s25 + $0x830] sm:$0xff] %vm5962_vm3, %v4964_v49  ;;  %v3943_v58 = vadd.f32 %v8565_v61, %v3942_v54  ;;  %v4967_v59 = vadd.f32 %v8565_v61, %v4966_v55  ;;  %v3944_v60 = vpop.f32.mrb[15].mxu0  ;;  %v4968_v62 = vpop.f32.mrb[15].mxu1  ;;  %v7621_v54 = vld [vmem:[%s8385_s20 + $0xa20] ss:$8 sps:$4 sm:$0xff]  }
 0x15b   : > { %5970 = vst.msk [vmem:[%s8574_s25 + $0x38] sm:$0xff] %vm5962_vm3, %v3943_v58  ;;  %6226 = vst.msk [vmem:[%s8574_s25 + $0x838] sm:$0xff] %vm5962_vm3, %v4967_v59  ;;  %4154 = vmatmul.mubr.bf16.gmra.mrb[120].mxu0 %v7596_v52  ;;  %5178 = vmatmul.mubr.bf16.gmra.mrb[120].mxu1 %v7597_v53  ;;  %v7620_v53 = vld [vmem:[%s8385_s20 + $0x220] ss:$8 sps:$4 sm:$0xff]   ;;  %v7624_v58 = vld [vmem:[%s8385_s20 + $0xa34] ss:$8 sps:$4 sm:$0xff]  }
 0x15c   : > { %7121 = vmatprep.mubr.msk.bf16.mxu0 %vm3105_vm0, %v7598_v56  ;;  %7249 = vmatprep.mubr.msk.bf16.mxu1 %vm3105_vm0, %v7600_v57  ;;  %v7622_v57 = vld [vmem:[%s8385_s20 + $0x234] ss:$8 sps:$4 sm:$0xff]  }
 0x15e   : > { %v3947_v63 = vpop.f32.mrb[16].mxu0  ;;  %v4971_v0 = vpop.f32.mrb[16].mxu1 }
 0x15f   : > { %v3948_v1 = vadd.f32 %v8565_v61, %v3947_v63  ;;  %v4972_v2 = vadd.f32 %v8565_v61, %v4971_v0  ;;  %v3949_v3 = vpop.f32.mrb[17].mxu0  ;;  %v4973_v4 = vpop.f32.mrb[17].mxu1 }
 0x160   : > { %v3950_v7 = vpop.f32.mrb[18].mxu0  ;;  %v4974_v8 = vpop.f32.mrb[18].mxu1 }
 0x161   : > { %5971 = vst.msk [vmem:[%s8574_s25 + $0x40] sm:$0xff] %vm5962_vm3, %v3948_v1  ;;  %6227 = vst.msk [vmem:[%s8574_s25 + $0x840] sm:$0xff] %vm5962_vm3, %v4972_v2  ;;  %v3951_v11 = vadd.f32 %v8565_v61, %v3950_v7  ;;  %v4975_v12 = vadd.f32 %v8565_v61, %v4974_v8  ;;  %v3952_v13 = vpop.f32.mrb[19].mxu0  ;;  %v4976_v14 = vpop.f32.mrb[19].mxu1  ;;  %v7627_v7 = vld [vmem:[%s8385_s20 + $0xa30] ss:$8 sps:$4 sm:$0xff]  }
 0x163   : > { %5972 = vst.msk [vmem:[%s8574_s25 + $0x48] sm:$0xff] %vm5962_vm3, %v3951_v11  ;;  %6228 = vst.msk [vmem:[%s8574_s25 + $0x848] sm:$0xff] %vm5962_vm3, %v4975_v12  ;;  %4162 = vmatmul.mubr.bf16.gmra.mrb[124].mxu0 %v7602_v5  ;;  %5186 = vmatmul.mubr.bf16.gmra.mrb[124].mxu1 %v7603_v6  ;;  %v7626_v6 = vld [vmem:[%s8385_s20 + $0x230] ss:$8 sps:$4 sm:$0xff]   ;;  %v7630_v11 = vld [vmem:[%s8385_s20 + $0xa44] ss:$8 sps:$4 sm:$0xff]  }
 0x164   : > { %7122 = vmatprep.mubr.msk.bf16.mxu0 %vm3105_vm0, %v7604_v9  ;;  %7250 = vmatprep.mubr.msk.bf16.mxu1 %vm3105_vm0, %v7606_v10  ;;  %v7628_v10 = vld [vmem:[%s8385_s20 + $0x244] ss:$8 sps:$4 sm:$0xff]  }
 0x166   : > { %v3955_v15 = vpop.f32.mrb[20].mxu0  ;;  %v4979_v16 = vpop.f32.mrb[20].mxu1 }
 0x167   : > { %v3956_v17 = vadd.f32 %v8565_v61, %v3955_v15  ;;  %v4980_v18 = vadd.f32 %v8565_v61, %v4979_v16  ;;  %v3957_v19 = vpop.f32.mrb[21].mxu0  ;;  %v4981_v20 = vpop.f32.mrb[21].mxu1 }
 0x168   : > { %v3958_v23 = vpop.f32.mrb[22].mxu0  ;;  %v4982_v24 = vpop.f32.mrb[22].mxu1 }
 0x169   : > { %5973 = vst.msk [vmem:[%s8574_s25 + $0x50] sm:$0xff] %vm5962_vm3, %v3956_v17  ;;  %6229 = vst.msk [vmem:[%s8574_s25 + $0x850] sm:$0xff] %vm5962_vm3, %v4980_v18  ;;  %v3959_v27 = vadd.f32 %v8565_v61, %v3958_v23  ;;  %v4983_v28 = vadd.f32 %v8565_v61, %v4982_v24  ;;  %v3960_v29 = vpop.f32.mrb[23].mxu0  ;;  %v4984_v30 = vpop.f32.mrb[23].mxu1  ;;  %v7633_v23 = vld [vmem:[%s8385_s20 + $0xa40] ss:$8 sps:$4 sm:$0xff]  }
 0x16b   : > { %5974 = vst.msk [vmem:[%s8574_s25 + $0x58] sm:$0xff] %vm5962_vm3, %v3959_v27  ;;  %6230 = vst.msk [vmem:[%s8574_s25 + $0x858] sm:$0xff] %vm5962_vm3, %v4983_v28  ;;  %4170 = vmatmul.mubr.bf16.gmra.mrb[128].mxu0 %v7608_v21  ;;  %5194 = vmatmul.mubr.bf16.gmra.mrb[128].mxu1 %v7609_v22  ;;  %v7632_v22 = vld [vmem:[%s8385_s20 + $0x240] ss:$8 sps:$4 sm:$0xff]   ;;  %v7636_v27 = vld [vmem:[%s8385_s20 + $0xa54] ss:$8 sps:$4 sm:$0xff]  }
 0x16c   : > { %7123 = vmatprep.mubr.msk.bf16.mxu0 %vm3105_vm0, %v7610_v25  ;;  %7251 = vmatprep.mubr.msk.bf16.mxu1 %vm3105_vm0, %v7612_v26  ;;  %v7634_v26 = vld [vmem:[%s8385_s20 + $0x254] ss:$8 sps:$4 sm:$0xff]  }
 0x16e   : > { %v3963_v31 = vpop.f32.mrb[24].mxu0  ;;  %v4987_v32 = vpop.f32.mrb[24].mxu1 }
 0x16f   : > { %v3964_v33 = vadd.f32 %v8565_v61, %v3963_v31  ;;  %v4988_v34 = vadd.f32 %v8565_v61, %v4987_v32  ;;  %v3965_v35 = vpop.f32.mrb[25].mxu0  ;;  %v4989_v36 = vpop.f32.mrb[25].mxu1 }
 0x170   : > { %v3966_v39 = vpop.f32.mrb[26].mxu0  ;;  %v4990_v40 = vpop.f32.mrb[26].mxu1 }
 0x171   : > { %5975 = vst.msk [vmem:[%s8574_s25 + $0x60] sm:$0xff] %vm5962_vm3, %v3964_v33  ;;  %6231 = vst.msk [vmem:[%s8574_s25 + $0x860] sm:$0xff] %vm5962_vm3, %v4988_v34  ;;  %v3967_v43 = vadd.f32 %v8565_v61, %v3966_v39  ;;  %v4991_v44 = vadd.f32 %v8565_v61, %v4990_v40  ;;  %v3968_v45 = vpop.f32.mrb[27].mxu0  ;;  %v4992_v46 = vpop.f32.mrb[27].mxu1  ;;  %v7639_v39 = vld [vmem:[%s8385_s20 + $0xa50] ss:$8 sps:$4 sm:$0xff]  }
 0x173   : > { %5976 = vst.msk [vmem:[%s8574_s25 + $0x68] sm:$0xff] %vm5962_vm3, %v3967_v43  ;;  %6232 = vst.msk [vmem:[%s8574_s25 + $0x868] sm:$0xff] %vm5962_vm3, %v4991_v44  ;;  %4178 = vmatmul.mubr.bf16.gmra.mrb[132].mxu0 %v7614_v37  ;;  %5202 = vmatmul.mubr.bf16.gmra.mrb[132].mxu1 %v7615_v38  ;;  %v7638_v38 = vld [vmem:[%s8385_s20 + $0x250] ss:$8 sps:$4 sm:$0xff]   ;;  %v7642_v43 = vld [vmem:[%s8385_s20 + $0xa64] ss:$8 sps:$4 sm:$0xff]  }
 0x174   : > { %7124 = vmatprep.mubr.msk.bf16.mxu0 %vm3105_vm0, %v7616_v41  ;;  %7252 = vmatprep.mubr.msk.bf16.mxu1 %vm3105_vm0, %v7618_v42  ;;  %v7640_v42 = vld [vmem:[%s8385_s20 + $0x264] ss:$8 sps:$4 sm:$0xff]  }
 0x176   : > { %v3971_v47 = vpop.f32.mrb[28].mxu0  ;;  %v4995_v48 = vpop.f32.mrb[28].mxu1 }
 0x177   : > { %v3972_v49 = vadd.f32 %v8565_v61, %v3971_v47  ;;  %v4996_v50 = vadd.f32 %v8565_v61, %v4995_v48  ;;  %v3973_v51 = vpop.f32.mrb[29].mxu0  ;;  %v4997_v52 = vpop.f32.mrb[29].mxu1 }
 0x178   : > { %v3974_v55 = vpop.f32.mrb[30].mxu0  ;;  %v4998_v56 = vpop.f32.mrb[30].mxu1 }
 0x179   : > { %5977 = vst.msk [vmem:[%s8574_s25 + $0x70] sm:$0xff] %vm5962_vm3, %v3972_v49  ;;  %6233 = vst.msk [vmem:[%s8574_s25 + $0x870] sm:$0xff] %vm5962_vm3, %v4996_v50  ;;  %v3975_v59 = vadd.f32 %v8565_v61, %v3974_v55  ;;  %v4999_v60 = vadd.f32 %v8565_v61, %v4998_v56  ;;  %v3976_v62 = vpop.f32.mrb[31].mxu0  ;;  %v5000_v63 = vpop.f32.mrb[31].mxu1  ;;  %v7645_v55 = vld [vmem:[%s8385_s20 + $0xa60] ss:$8 sps:$4 sm:$0xff]  }
 0x17b   : > { %5978 = vst.msk [vmem:[%s8574_s25 + $0x78] sm:$0xff] %vm5962_vm3, %v3975_v59  ;;  %6234 = vst.msk [vmem:[%s8574_s25 + $0x878] sm:$0xff] %vm5962_vm3, %v4999_v60  ;;  %4186 = vmatmul.mubr.bf16.gmra.mrb[136].mxu0 %v7620_v53  ;;  %5210 = vmatmul.mubr.bf16.gmra.mrb[136].mxu1 %v7621_v54  ;;  %v7644_v54 = vld [vmem:[%s8385_s20 + $0x260] ss:$8 sps:$4 sm:$0xff]   ;;  %v7648_v59 = vld [vmem:[%s8385_s20 + $0xa74] ss:$8 sps:$4 sm:$0xff]  }
 0x17c   : > { %7125 = vmatprep.mubr.msk.bf16.mxu0 %vm3105_vm0, %v7622_v57  ;;  %7253 = vmatprep.mubr.msk.bf16.mxu1 %vm3105_vm0, %v7624_v58  ;;  %v7646_v58 = vld [vmem:[%s8385_s20 + $0x274] ss:$8 sps:$4 sm:$0xff]  }
 0x17e   : > { %v3979_v0 = vpop.f32.mrb[32].mxu0  ;;  %v5003_v1 = vpop.f32.mrb[32].mxu1 }
 0x17f   : > { %v3980_v2 = vadd.f32 %v8565_v61, %v3979_v0  ;;  %v5004_v3 = vadd.f32 %v8565_v61, %v5003_v1  ;;  %v3981_v4 = vpop.f32.mrb[33].mxu0  ;;  %v5005_v5 = vpop.f32.mrb[33].mxu1 }
 0x180   : > { %v3982_v8 = vpop.f32.mrb[34].mxu0  ;;  %v5006_v9 = vpop.f32.mrb[34].mxu1 }
 0x181   : > { %5979 = vst.msk [vmem:[%s8574_s25 + $0x80] sm:$0xff] %vm5962_vm3, %v3980_v2  ;;  %6235 = vst.msk [vmem:[%s8574_s25 + $0x880] sm:$0xff] %vm5962_vm3, %v5004_v3  ;;  %v3983_v12 = vadd.f32 %v8565_v61, %v3982_v8  ;;  %v5007_v13 = vadd.f32 %v8565_v61, %v5006_v9  ;;  %v3984_v14 = vpop.f32.mrb[35].mxu0  ;;  %v5008_v15 = vpop.f32.mrb[35].mxu1  ;;  %v7651_v8 = vld [vmem:[%s8385_s20 + $0xa70] ss:$8 sps:$4 sm:$0xff]  }
 0x183   : > { %5980 = vst.msk [vmem:[%s8574_s25 + $0x88] sm:$0xff] %vm5962_vm3, %v3983_v12  ;;  %6236 = vst.msk [vmem:[%s8574_s25 + $0x888] sm:$0xff] %vm5962_vm3, %v5007_v13  ;;  %4194 = vmatmul.mubr.bf16.gmra.mrb[140].mxu0 %v7626_v6  ;;  %5218 = vmatmul.mubr.bf16.gmra.mrb[140].mxu1 %v7627_v7  ;;  %v7650_v7 = vld [vmem:[%s8385_s20 + $0x270] ss:$8 sps:$4 sm:$0xff]   ;;  %v7654_v12 = vld [vmem:[%s8385_s20 + $0xa84] ss:$8 sps:$4 sm:$0xff]  }
 0x184   : > { %7126 = vmatprep.mubr.msk.bf16.mxu0 %vm3105_vm0, %v7628_v10  ;;  %7254 = vmatprep.mubr.msk.bf16.mxu1 %vm3105_vm0, %v7630_v11  ;;  %v7652_v11 = vld [vmem:[%s8385_s20 + $0x284] ss:$8 sps:$4 sm:$0xff]  }
 0x186   : > { %v3987_v16 = vpop.f32.mrb[36].mxu0  ;;  %v5011_v17 = vpop.f32.mrb[36].mxu1 }
 0x187   : > { %v3988_v18 = vadd.f32 %v8565_v61, %v3987_v16  ;;  %v5012_v19 = vadd.f32 %v8565_v61, %v5011_v17  ;;  %v3989_v20 = vpop.f32.mrb[37].mxu0  ;;  %v5013_v21 = vpop.f32.mrb[37].mxu1 }
 0x188   : > { %v3990_v24 = vpop.f32.mrb[38].mxu0  ;;  %v5014_v25 = vpop.f32.mrb[38].mxu1 }
 0x189   : > { %5981 = vst.msk [vmem:[%s8574_s25 + $0x90] sm:$0xff] %vm5962_vm3, %v3988_v18  ;;  %6237 = vst.msk [vmem:[%s8574_s25 + $0x890] sm:$0xff] %vm5962_vm3, %v5012_v19  ;;  %v3991_v28 = vadd.f32 %v8565_v61, %v3990_v24  ;;  %v5015_v29 = vadd.f32 %v8565_v61, %v5014_v25  ;;  %v3992_v30 = vpop.f32.mrb[39].mxu0  ;;  %v5016_v31 = vpop.f32.mrb[39].mxu1  ;;  %v7657_v24 = vld [vmem:[%s8385_s20 + $0xa80] ss:$8 sps:$4 sm:$0xff]  }
 0x18b   : > { %5982 = vst.msk [vmem:[%s8574_s25 + $0x98] sm:$0xff] %vm5962_vm3, %v3991_v28  ;;  %6238 = vst.msk [vmem:[%s8574_s25 + $0x898] sm:$0xff] %vm5962_vm3, %v5015_v29  ;;  %4202 = vmatmul.mubr.bf16.gmra.mrb[144].mxu0 %v7632_v22  ;;  %5226 = vmatmul.mubr.bf16.gmra.mrb[144].mxu1 %v7633_v23  ;;  %v7656_v23 = vld [vmem:[%s8385_s20 + $0x280] ss:$8 sps:$4 sm:$0xff]   ;;  %v7660_v28 = vld [vmem:[%s8385_s20 + $0xa94] ss:$8 sps:$4 sm:$0xff]  }
 0x18c   : > { %7127 = vmatprep.mubr.msk.bf16.mxu0 %vm3105_vm0, %v7634_v26  ;;  %7255 = vmatprep.mubr.msk.bf16.mxu1 %vm3105_vm0, %v7636_v27  ;;  %v7658_v27 = vld [vmem:[%s8385_s20 + $0x294] ss:$8 sps:$4 sm:$0xff]  }
 0x18e   : > { %v3995_v32 = vpop.f32.mrb[40].mxu0  ;;  %v5019_v33 = vpop.f32.mrb[40].mxu1 }
 0x18f   : > { %v3996_v34 = vadd.f32 %v8565_v61, %v3995_v32  ;;  %v5020_v35 = vadd.f32 %v8565_v61, %v5019_v33  ;;  %v3997_v36 = vpop.f32.mrb[41].mxu0  ;;  %v5021_v37 = vpop.f32.mrb[41].mxu1 }
 0x190   : > { %v3998_v40 = vpop.f32.mrb[42].mxu0  ;;  %v5022_v41 = vpop.f32.mrb[42].mxu1 }
 0x191   : > { %5983 = vst.msk [vmem:[%s8574_s25 + $0xa0] sm:$0xff] %vm5962_vm3, %v3996_v34  ;;  %6239 = vst.msk [vmem:[%s8574_s25 + $0x8a0] sm:$0xff] %vm5962_vm3, %v5020_v35  ;;  %v3999_v44 = vadd.f32 %v8565_v61, %v3998_v40  ;;  %v5023_v45 = vadd.f32 %v8565_v61, %v5022_v41  ;;  %v4000_v46 = vpop.f32.mrb[43].mxu0  ;;  %v5024_v47 = vpop.f32.mrb[43].mxu1  ;;  %v7663_v40 = vld [vmem:[%s8385_s20 + $0xa90] ss:$8 sps:$4 sm:$0xff]  }
 0x193   : > { %5984 = vst.msk [vmem:[%s8574_s25 + $0xa8] sm:$0xff] %vm5962_vm3, %v3999_v44  ;;  %6240 = vst.msk [vmem:[%s8574_s25 + $0x8a8] sm:$0xff] %vm5962_vm3, %v5023_v45  ;;  %4210 = vmatmul.mubr.bf16.gmra.mrb[148].mxu0 %v7638_v38  ;;  %5234 = vmatmul.mubr.bf16.gmra.mrb[148].mxu1 %v7639_v39  ;;  %v7662_v39 = vld [vmem:[%s8385_s20 + $0x290] ss:$8 sps:$4 sm:$0xff]   ;;  %v7666_v44 = vld [vmem:[%s8385_s20 + $0xaa4] ss:$8 sps:$4 sm:$0xff]  }
 0x194   : > { %7128 = vmatprep.mubr.msk.bf16.mxu0 %vm3105_vm0, %v7640_v42  ;;  %7256 = vmatprep.mubr.msk.bf16.mxu1 %vm3105_vm0, %v7642_v43  ;;  %v7664_v43 = vld [vmem:[%s8385_s20 + $0x2a4] ss:$8 sps:$4 sm:$0xff]  }
 0x196   : > { %v4003_v48 = vpop.f32.mrb[44].mxu0  ;;  %v5027_v49 = vpop.f32.mrb[44].mxu1 }
 0x197   : > { %v4004_v50 = vadd.f32 %v8565_v61, %v4003_v48  ;;  %v5028_v51 = vadd.f32 %v8565_v61, %v5027_v49  ;;  %v4005_v52 = vpop.f32.mrb[45].mxu0  ;;  %v5029_v53 = vpop.f32.mrb[45].mxu1 }
 0x198   : > { %v4006_v56 = vpop.f32.mrb[46].mxu0  ;;  %v5030_v57 = vpop.f32.mrb[46].mxu1 }
 0x199   : > { %5985 = vst.msk [vmem:[%s8574_s25 + $0xb0] sm:$0xff] %vm5962_vm3, %v4004_v50  ;;  %6241 = vst.msk [vmem:[%s8574_s25 + $0x8b0] sm:$0xff] %vm5962_vm3, %v5028_v51  ;;  %v4007_v60 = vadd.f32 %v8565_v61, %v4006_v56  ;;  %v5031_v62 = vadd.f32 %v8565_v61, %v5030_v57  ;;  %v4008_v63 = vpop.f32.mrb[47].mxu0  ;;  %v5032_v0 = vpop.f32.mrb[47].mxu1  ;;  %v7669_v56 = vld [vmem:[%s8385_s20 + $0xaa0] ss:$8 sps:$4 sm:$0xff]  }
 0x19b   : > { %5986 = vst.msk [vmem:[%s8574_s25 + $0xb8] sm:$0xff] %vm5962_vm3, %v4007_v60  ;;  %6242 = vst.msk [vmem:[%s8574_s25 + $0x8b8] sm:$0xff] %vm5962_vm3, %v5031_v62  ;;  %4218 = vmatmul.mubr.bf16.gmra.mrb[152].mxu0 %v7644_v54  ;;  %5242 = vmatmul.mubr.bf16.gmra.mrb[152].mxu1 %v7645_v55  ;;  %v7668_v55 = vld [vmem:[%s8385_s20 + $0x2a0] ss:$8 sps:$4 sm:$0xff]   ;;  %v7672_v60 = vld [vmem:[%s8385_s20 + $0xab4] ss:$8 sps:$4 sm:$0xff]  }
 0x19c   : > { %7129 = vmatprep.mubr.msk.bf16.mxu0 %vm3105_vm0, %v7646_v58  ;;  %7257 = vmatprep.mubr.msk.bf16.mxu1 %vm3105_vm0, %v7648_v59  ;;  %v7670_v59 = vld [vmem:[%s8385_s20 + $0x2b4] ss:$8 sps:$4 sm:$0xff]  }
 0x19e   : > { %v4011_v1 = vpop.f32.mrb[48].mxu0  ;;  %v5035_v2 = vpop.f32.mrb[48].mxu1 }
 0x19f   : > { %v4012_v3 = vadd.f32 %v8565_v61, %v4011_v1  ;;  %v5036_v4 = vadd.f32 %v8565_v61, %v5035_v2  ;;  %v4013_v5 = vpop.f32.mrb[49].mxu0  ;;  %v5037_v6 = vpop.f32.mrb[49].mxu1 }
 0x1a0   : > { %v4014_v9 = vpop.f32.mrb[50].mxu0  ;;  %v5038_v10 = vpop.f32.mrb[50].mxu1 }
 0x1a1   : > { %5987 = vst.msk [vmem:[%s8574_s25 + $0xc0] sm:$0xff] %vm5962_vm3, %v4012_v3  ;;  %6243 = vst.msk [vmem:[%s8574_s25 + $0x8c0] sm:$0xff] %vm5962_vm3, %v5036_v4  ;;  %v4015_v13 = vadd.f32 %v8565_v61, %v4014_v9  ;;  %v5039_v14 = vadd.f32 %v8565_v61, %v5038_v10  ;;  %v4016_v15 = vpop.f32.mrb[51].mxu0  ;;  %v5040_v16 = vpop.f32.mrb[51].mxu1  ;;  %v7675_v9 = vld [vmem:[%s8385_s20 + $0xab0] ss:$8 sps:$4 sm:$0xff]  }
 0x1a3   : > { %5988 = vst.msk [vmem:[%s8574_s25 + $0xc8] sm:$0xff] %vm5962_vm3, %v4015_v13  ;;  %6244 = vst.msk [vmem:[%s8574_s25 + $0x8c8] sm:$0xff] %vm5962_vm3, %v5039_v14  ;;  %4226 = vmatmul.mubr.bf16.gmra.mrb[156].mxu0 %v7650_v7  ;;  %5250 = vmatmul.mubr.bf16.gmra.mrb[156].mxu1 %v7651_v8  ;;  %v7674_v8 = vld [vmem:[%s8385_s20 + $0x2b0] ss:$8 sps:$4 sm:$0xff]   ;;  %v7678_v13 = vld [vmem:[%s8385_s20 + $0xac4] ss:$8 sps:$4 sm:$0xff]  }
 0x1a4   : > { %7130 = vmatprep.mubr.msk.bf16.mxu0 %vm3105_vm0, %v7652_v11  ;;  %7258 = vmatprep.mubr.msk.bf16.mxu1 %vm3105_vm0, %v7654_v12  ;;  %v7676_v12 = vld [vmem:[%s8385_s20 + $0x2c4] ss:$8 sps:$4 sm:$0xff]  }
 0x1a6   : > { %v4019_v17 = vpop.f32.mrb[52].mxu0  ;;  %v5043_v18 = vpop.f32.mrb[52].mxu1 }
 0x1a7   : > { %v4020_v19 = vadd.f32 %v8565_v61, %v4019_v17  ;;  %v5044_v20 = vadd.f32 %v8565_v61, %v5043_v18  ;;  %v4021_v21 = vpop.f32.mrb[53].mxu0  ;;  %v5045_v22 = vpop.f32.mrb[53].mxu1 }
 0x1a8   : > { %v4022_v25 = vpop.f32.mrb[54].mxu0  ;;  %v5046_v26 = vpop.f32.mrb[54].mxu1 }
 0x1a9   : > { %5989 = vst.msk [vmem:[%s8574_s25 + $0xd0] sm:$0xff] %vm5962_vm3, %v4020_v19  ;;  %6245 = vst.msk [vmem:[%s8574_s25 + $0x8d0] sm:$0xff] %vm5962_vm3, %v5044_v20  ;;  %v4023_v29 = vadd.f32 %v8565_v61, %v4022_v25  ;;  %v5047_v30 = vadd.f32 %v8565_v61, %v5046_v26  ;;  %v4024_v31 = vpop.f32.mrb[55].mxu0  ;;  %v5048_v32 = vpop.f32.mrb[55].mxu1  ;;  %v7681_v25 = vld [vmem:[%s8385_s20 + $0xac0] ss:$8 sps:$4 sm:$0xff]  }
 0x1ab   : > { %5990 = vst.msk [vmem:[%s8574_s25 + $0xd8] sm:$0xff] %vm5962_vm3, %v4023_v29  ;;  %6246 = vst.msk [vmem:[%s8574_s25 + $0x8d8] sm:$0xff] %vm5962_vm3, %v5047_v30  ;;  %4234 = vmatmul.mubr.bf16.gmra.mrb[160].mxu0 %v7656_v23  ;;  %5258 = vmatmul.mubr.bf16.gmra.mrb[160].mxu1 %v7657_v24  ;;  %v7680_v24 = vld [vmem:[%s8385_s20 + $0x2c0] ss:$8 sps:$4 sm:$0xff]   ;;  %v7684_v29 = vld [vmem:[%s8385_s20 + $0xad4] ss:$8 sps:$4 sm:$0xff]  }
 0x1ac   : > { %7131 = vmatprep.mubr.msk.bf16.mxu0 %vm3105_vm0, %v7658_v27  ;;  %7259 = vmatprep.mubr.msk.bf16.mxu1 %vm3105_vm0, %v7660_v28  ;;  %v7682_v28 = vld [vmem:[%s8385_s20 + $0x2d4] ss:$8 sps:$4 sm:$0xff]  }
 0x1ae   : > { %v4027_v33 = vpop.f32.mrb[56].mxu0  ;;  %v5051_v34 = vpop.f32.mrb[56].mxu1 }
 0x1af   : > { %v4028_v35 = vadd.f32 %v8565_v61, %v4027_v33  ;;  %v5052_v36 = vadd.f32 %v8565_v61, %v5051_v34  ;;  %v4029_v37 = vpop.f32.mrb[57].mxu0  ;;  %v5053_v38 = vpop.f32.mrb[57].mxu1 }
 0x1b0   : > { %v4030_v41 = vpop.f32.mrb[58].mxu0  ;;  %v5054_v42 = vpop.f32.mrb[58].mxu1 }
 0x1b1   : > { %5991 = vst.msk [vmem:[%s8574_s25 + $0xe0] sm:$0xff] %vm5962_vm3, %v4028_v35  ;;  %6247 = vst.msk [vmem:[%s8574_s25 + $0x8e0] sm:$0xff] %vm5962_vm3, %v5052_v36  ;;  %v4031_v45 = vadd.f32 %v8565_v61, %v4030_v41  ;;  %v5055_v46 = vadd.f32 %v8565_v61, %v5054_v42  ;;  %v4032_v47 = vpop.f32.mrb[59].mxu0  ;;  %v5056_v48 = vpop.f32.mrb[59].mxu1  ;;  %v7687_v41 = vld [vmem:[%s8385_s20 + $0xad0] ss:$8 sps:$4 sm:$0xff]  }
 0x1b3   : > { %5992 = vst.msk [vmem:[%s8574_s25 + $0xe8] sm:$0xff] %vm5962_vm3, %v4031_v45  ;;  %6248 = vst.msk [vmem:[%s8574_s25 + $0x8e8] sm:$0xff] %vm5962_vm3, %v5055_v46  ;;  %4242 = vmatmul.mubr.bf16.gmra.mrb[164].mxu0 %v7662_v39  ;;  %5266 = vmatmul.mubr.bf16.gmra.mrb[164].mxu1 %v7663_v40  ;;  %v7686_v40 = vld [vmem:[%s8385_s20 + $0x2d0] ss:$8 sps:$4 sm:$0xff]   ;;  %v7690_v45 = vld [vmem:[%s8385_s20 + $0xae4] ss:$8 sps:$4 sm:$0xff]  }
 0x1b4   : > { %7132 = vmatprep.mubr.msk.bf16.mxu0 %vm3105_vm0, %v7664_v43  ;;  %7260 = vmatprep.mubr.msk.bf16.mxu1 %vm3105_vm0, %v7666_v44  ;;  %v7688_v44 = vld [vmem:[%s8385_s20 + $0x2e4] ss:$8 sps:$4 sm:$0xff]  }
 0x1b6   : > { %v4035_v49 = vpop.f32.mrb[60].mxu0  ;;  %v5059_v50 = vpop.f32.mrb[60].mxu1 }
 0x1b7   : > { %v4036_v51 = vadd.f32 %v8565_v61, %v4035_v49  ;;  %v5060_v52 = vadd.f32 %v8565_v61, %v5059_v50  ;;  %v4037_v53 = vpop.f32.mrb[61].mxu0  ;;  %v5061_v54 = vpop.f32.mrb[61].mxu1 }
 0x1b8   : > { %v4038_v57 = vpop.f32.mrb[62].mxu0  ;;  %v5062_v58 = vpop.f32.mrb[62].mxu1 }
 0x1b9   : > { %5993 = vst.msk [vmem:[%s8574_s25 + $0xf0] sm:$0xff] %vm5962_vm3, %v4036_v51  ;;  %6249 = vst.msk [vmem:[%s8574_s25 + $0x8f0] sm:$0xff] %vm5962_vm3, %v5060_v52  ;;  %v4039_v62 = vadd.f32 %v8565_v61, %v4038_v57  ;;  %v5063_v63 = vadd.f32 %v8565_v61, %v5062_v58  ;;  %v4040_v0 = vpop.f32.mrb[63].mxu0  ;;  %v5064_v1 = vpop.f32.mrb[63].mxu1  ;;  %v7693_v57 = vld [vmem:[%s8385_s20 + $0xae0] ss:$8 sps:$4 sm:$0xff]  }
 0x1bb   : > { %5994 = vst.msk [vmem:[%s8574_s25 + $0xf8] sm:$0xff] %vm5962_vm3, %v4039_v62  ;;  %6250 = vst.msk [vmem:[%s8574_s25 + $0x8f8] sm:$0xff] %vm5962_vm3, %v5063_v63  ;;  %4250 = vmatmul.mubr.bf16.gmra.mrb[168].mxu0 %v7668_v55  ;;  %5274 = vmatmul.mubr.bf16.gmra.mrb[168].mxu1 %v7669_v56  ;;  %v7692_v56 = vld [vmem:[%s8385_s20 + $0x2e0] ss:$8 sps:$4 sm:$0xff]   ;;  %v7696_v62 = vld [vmem:[%s8385_s20 + $0xaf4] ss:$8 sps:$4 sm:$0xff]  }
 0x1bc   : > { %7133 = vmatprep.mubr.msk.bf16.mxu0 %vm3105_vm0, %v7670_v59  ;;  %7261 = vmatprep.mubr.msk.bf16.mxu1 %vm3105_vm0, %v7672_v60  ;;  %v7694_v60 = vld [vmem:[%s8385_s20 + $0x2f4] ss:$8 sps:$4 sm:$0xff]  }
 0x1be   : > { %v4043_v2 = vpop.f32.mrb[64].mxu0  ;;  %v5067_v3 = vpop.f32.mrb[64].mxu1 }
 0x1bf   : > { %v4044_v4 = vadd.f32 %v8565_v61, %v4043_v2  ;;  %v5068_v5 = vadd.f32 %v8565_v61, %v5067_v3  ;;  %v4045_v6 = vpop.f32.mrb[65].mxu0  ;;  %v5069_v7 = vpop.f32.mrb[65].mxu1 }
 0x1c0   : > { %v4046_v10 = vpop.f32.mrb[66].mxu0  ;;  %v5070_v11 = vpop.f32.mrb[66].mxu1 }
 0x1c1   : > { %5995 = vst.msk [vmem:[%s8574_s25 + $0x100] sm:$0xff] %vm5962_vm3, %v4044_v4  ;;  %6251 = vst.msk [vmem:[%s8574_s25 + $0x900] sm:$0xff] %vm5962_vm3, %v5068_v5  ;;  %v4047_v14 = vadd.f32 %v8565_v61, %v4046_v10  ;;  %v5071_v15 = vadd.f32 %v8565_v61, %v5070_v11  ;;  %v4048_v16 = vpop.f32.mrb[67].mxu0  ;;  %v5072_v17 = vpop.f32.mrb[67].mxu1  ;;  %v7699_v10 = vld [vmem:[%s8385_s20 + $0xaf0] ss:$8 sps:$4 sm:$0xff]  }
 0x1c3   : > { %5996 = vst.msk [vmem:[%s8574_s25 + $0x108] sm:$0xff] %vm5962_vm3, %v4047_v14  ;;  %6252 = vst.msk [vmem:[%s8574_s25 + $0x908] sm:$0xff] %vm5962_vm3, %v5071_v15  ;;  %4258 = vmatmul.mubr.bf16.gmra.mrb[172].mxu0 %v7674_v8  ;;  %5282 = vmatmul.mubr.bf16.gmra.mrb[172].mxu1 %v7675_v9  ;;  %v7698_v9 = vld [vmem:[%s8385_s20 + $0x2f0] ss:$8 sps:$4 sm:$0xff]   ;;  %v7702_v14 = vld [vmem:[%s8385_s20 + $0xb04] ss:$8 sps:$4 sm:$0xff]  }
 0x1c4   : > { %7134 = vmatprep.mubr.msk.bf16.mxu0 %vm3105_vm0, %v7676_v12  ;;  %7262 = vmatprep.mubr.msk.bf16.mxu1 %vm3105_vm0, %v7678_v13  ;;  %v7700_v13 = vld [vmem:[%s8385_s20 + $0x304] ss:$8 sps:$4 sm:$0xff]  }
 0x1c6   : > { %v4051_v18 = vpop.f32.mrb[68].mxu0  ;;  %v5075_v19 = vpop.f32.mrb[68].mxu1 }
 0x1c7   : > { %v4052_v20 = vadd.f32 %v8565_v61, %v4051_v18  ;;  %v5076_v21 = vadd.f32 %v8565_v61, %v5075_v19  ;;  %v4053_v22 = vpop.f32.mrb[69].mxu0  ;;  %v5077_v23 = vpop.f32.mrb[69].mxu1 }
 0x1c8   : > { %v4054_v26 = vpop.f32.mrb[70].mxu0  ;;  %v5078_v27 = vpop.f32.mrb[70].mxu1  ;;  %v8955_v22 = vld [vmem:[#allocation4] ss:$0 sm:$0xff] }
 0x1c9   : > { %5997 = vst.msk [vmem:[%s8574_s25 + $0x110] sm:$0xff] %vm5962_vm3, %v4052_v20  ;;  %6253 = vst.msk [vmem:[%s8574_s25 + $0x910] sm:$0xff] %vm5962_vm3, %v5076_v21  ;;  %v4055_v30 = vadd.f32 %v8565_v61, %v4054_v26  ;;  %v5079_v31 = vadd.f32 %v8565_v61, %v5078_v27  ;;  %v4056_v32 = vpop.f32.mrb[71].mxu0  ;;  %v5080_v33 = vpop.f32.mrb[71].mxu1  ;;  %v7704_v26 = vld [vmem:[%s8385_s20 + $0x300] ss:$8 sps:$4 sm:$0xff]  }
 0x1ca   : > { %v7705_v27 = vld [vmem:[%s8385_s20 + $0xb00] ss:$8 sps:$4 sm:$0xff]  }
 0x1cb   : > { %5998 = vst.msk [vmem:[%s8574_s25 + $0x118] sm:$0xff] %vm5962_vm3, %v4055_v30  ;;  %6254 = vst.msk [vmem:[%s8574_s25 + $0x918] sm:$0xff] %vm5962_vm3, %v5079_v31  ;;  %4266 = vmatmul.mubr.bf16.gmra.mrb[176].mxu0 %v7680_v24  ;;  %5290 = vmatmul.mubr.bf16.gmra.mrb[176].mxu1 %v7681_v25  ;;  %v7706_v30 = vld [vmem:[%s8385_s20 + $0x314] ss:$8 sps:$4 sm:$0xff]  }
 0x1cc   : > { %7135 = vmatprep.mubr.msk.bf16.mxu0 %vm3105_vm0, %v7682_v28  ;;  %7263 = vmatprep.mubr.msk.bf16.mxu1 %vm3105_vm0, %v7684_v29  ;;  %v7708_v31 = vld [vmem:[%s8385_s20 + $0xb14] ss:$8 sps:$4 sm:$0xff]  }
 0x1ce   : > { %v4059_v34 = vpop.f32.mrb[72].mxu0  ;;  %v5083_v35 = vpop.f32.mrb[72].mxu1 }
 0x1cf   : > { %v4060_v36 = vadd.f32 %v8565_v61, %v4059_v34  ;;  %v5084_v37 = vadd.f32 %v8565_v61, %v5083_v35  ;;  %v4061_v38 = vpop.f32.mrb[73].mxu0  ;;  %v5085_v39 = vpop.f32.mrb[73].mxu1 }
 0x1d0   : > { %v4062_v42 = vpop.f32.mrb[74].mxu0  ;;  %v5086_v43 = vpop.f32.mrb[74].mxu1 }
 0x1d1   : > { %5999 = vst.msk [vmem:[%s8574_s25 + $0x120] sm:$0xff] %vm5962_vm3, %v4060_v36  ;;  %6255 = vst.msk [vmem:[%s8574_s25 + $0x920] sm:$0xff] %vm5962_vm3, %v5084_v37  ;;  %v4063_v46 = vadd.f32 %v8565_v61, %v4062_v42  ;;  %v5087_v47 = vadd.f32 %v8565_v61, %v5086_v43  ;;  %v4064_v48 = vpop.f32.mrb[75].mxu0  ;;  %v5088_v49 = vpop.f32.mrb[75].mxu1  ;;  %v7711_v42 = vld [vmem:[%s8385_s20 + $0xb10] ss:$8 sps:$4 sm:$0xff]  }
 0x1d3   : > { %6000 = vst.msk [vmem:[%s8574_s25 + $0x128] sm:$0xff] %vm5962_vm3, %v4063_v46  ;;  %6256 = vst.msk [vmem:[%s8574_s25 + $0x928] sm:$0xff] %vm5962_vm3, %v5087_v47  ;;  %4274 = vmatmul.mubr.bf16.gmra.mrb[180].mxu0 %v7686_v40  ;;  %5298 = vmatmul.mubr.bf16.gmra.mrb[180].mxu1 %v7687_v41  ;;  %v7710_v41 = vld [vmem:[%s8385_s20 + $0x310] ss:$8 sps:$4 sm:$0xff]   ;;  %v7714_v46 = vld [vmem:[%s8385_s20 + $0xb24] ss:$8 sps:$4 sm:$0xff]  }
 0x1d4   : > { %7136 = vmatprep.mubr.msk.bf16.mxu0 %vm3105_vm0, %v7688_v44  ;;  %7264 = vmatprep.mubr.msk.bf16.mxu1 %vm3105_vm0, %v7690_v45  ;;  %v7712_v45 = vld [vmem:[%s8385_s20 + $0x324] ss:$8 sps:$4 sm:$0xff]  }
 0x1d6   : > { %v4067_v50 = vpop.f32.mrb[76].mxu0  ;;  %v5091_v51 = vpop.f32.mrb[76].mxu1 }
 0x1d7   : > { %v4068_v52 = vadd.f32 %v8565_v61, %v4067_v50  ;;  %v5092_v53 = vadd.f32 %v8565_v61, %v5091_v51  ;;  %v4069_v54 = vpop.f32.mrb[77].mxu0  ;;  %v5093_v55 = vpop.f32.mrb[77].mxu1 }
 0x1d8   : > { %v4070_v58 = vpop.f32.mrb[78].mxu0  ;;  %v5094_v59 = vpop.f32.mrb[78].mxu1 }
 0x1d9   : > { %6001 = vst.msk [vmem:[%s8574_s25 + $0x130] sm:$0xff] %vm5962_vm3, %v4068_v52  ;;  %6257 = vst.msk [vmem:[%s8574_s25 + $0x930] sm:$0xff] %vm5962_vm3, %v5092_v53  ;;  %v4071_v63 = vadd.f32 %v8565_v61, %v4070_v58  ;;  %v5095_v0 = vadd.f32 %v8565_v61, %v5094_v59  ;;  %v4072_v1 = vpop.f32.mrb[79].mxu0  ;;  %v5096_v2 = vpop.f32.mrb[79].mxu1  ;;  %v7717_v58 = vld [vmem:[%s8385_s20 + $0xb20] ss:$8 sps:$4 sm:$0xff]  }
 0x1db   : > { %6002 = vst.msk [vmem:[%s8574_s25 + $0x138] sm:$0xff] %vm5962_vm3, %v4071_v63  ;;  %6258 = vst.msk [vmem:[%s8574_s25 + $0x938] sm:$0xff] %vm5962_vm3, %v5095_v0  ;;  %4282 = vmatmul.mubr.bf16.gmra.mrb[184].mxu0 %v7692_v56  ;;  %5306 = vmatmul.mubr.bf16.gmra.mrb[184].mxu1 %v7693_v57  ;;  %v7716_v57 = vld [vmem:[%s8385_s20 + $0x320] ss:$8 sps:$4 sm:$0xff]   ;;  %v7720_v63 = vld [vmem:[%s8385_s20 + $0xb34] ss:$8 sps:$4 sm:$0xff]  }
 0x1dc   : > { %7137 = vmatprep.mubr.msk.bf16.mxu0 %vm3105_vm0, %v7694_v60  ;;  %7265 = vmatprep.mubr.msk.bf16.mxu1 %vm3105_vm0, %v7696_v62  ;;  %v7718_v62 = vld [vmem:[%s8385_s20 + $0x334] ss:$8 sps:$4 sm:$0xff]  }
 0x1de   : > { %v4075_v3 = vpop.f32.mrb[80].mxu0  ;;  %v5099_v4 = vpop.f32.mrb[80].mxu1 }
 0x1df   : > { %v4076_v5 = vadd.f32 %v8565_v61, %v4075_v3  ;;  %v5100_v6 = vadd.f32 %v8565_v61, %v5099_v4  ;;  %v4077_v7 = vpop.f32.mrb[81].mxu0  ;;  %v5101_v8 = vpop.f32.mrb[81].mxu1 }
 0x1e0   : > { %v4078_v11 = vpop.f32.mrb[82].mxu0  ;;  %v5102_v12 = vpop.f32.mrb[82].mxu1 }
 0x1e1   : > { %6003 = vst.msk [vmem:[%s8574_s25 + $0x140] sm:$0xff] %vm5962_vm3, %v4076_v5  ;;  %6259 = vst.msk [vmem:[%s8574_s25 + $0x940] sm:$0xff] %vm5962_vm3, %v5100_v6  ;;  %v4079_v15 = vadd.f32 %v8565_v61, %v4078_v11  ;;  %v5103_v16 = vadd.f32 %v8565_v61, %v5102_v12  ;;  %v4080_v17 = vpop.f32.mrb[83].mxu0  ;;  %v5104_v18 = vpop.f32.mrb[83].mxu1  ;;  %v7723_v11 = vld [vmem:[%s8385_s20 + $0xb30] ss:$8 sps:$4 sm:$0xff]  }
 0x1e3   : > { %6004 = vst.msk [vmem:[%s8574_s25 + $0x148] sm:$0xff] %vm5962_vm3, %v4079_v15  ;;  %6260 = vst.msk [vmem:[%s8574_s25 + $0x948] sm:$0xff] %vm5962_vm3, %v5103_v16  ;;  %4290 = vmatmul.mubr.bf16.gmra.mrb[188].mxu0 %v7698_v9  ;;  %5314 = vmatmul.mubr.bf16.gmra.mrb[188].mxu1 %v7699_v10  ;;  %v7722_v10 = vld [vmem:[%s8385_s20 + $0x330] ss:$8 sps:$4 sm:$0xff]   ;;  %v7726_v15 = vld [vmem:[%s8385_s20 + $0xb44] ss:$8 sps:$4 sm:$0xff]  }
 0x1e4   : > { %7138 = vmatprep.mubr.msk.bf16.mxu0 %vm3105_vm0, %v7700_v13  ;;  %7266 = vmatprep.mubr.msk.bf16.mxu1 %vm3105_vm0, %v7702_v14  ;;  %v7724_v14 = vld [vmem:[%s8385_s20 + $0x344] ss:$8 sps:$4 sm:$0xff]  }
 0x1e6   : > { %v4083_v19 = vpop.f32.mrb[84].mxu0  ;;  %v5107_v20 = vpop.f32.mrb[84].mxu1 }
 0x1e7   : > { %v4084_v21 = vadd.f32 %v8565_v61, %v4083_v19  ;;  %v5108_v23 = vadd.f32 %v8955_v22, %v5107_v20  ;;  %v4085_v24 = vpop.f32.mrb[85].mxu0  ;;  %v5109_v25 = vpop.f32.mrb[85].mxu1 }
 0x1e8   : > { %v4086_v28 = vpop.f32.mrb[86].mxu0  ;;  %v5110_v29 = vpop.f32.mrb[86].mxu1 }
 0x1e9   : > { %6005 = vst.msk [vmem:[%s8574_s25 + $0x150] sm:$0xff] %vm5962_vm3, %v4084_v21  ;;  %6261 = vst.msk [vmem:[%s8574_s25 + $0x950] sm:$0xff] %vm5962_vm3, %v5108_v23  ;;  %v4087_v61 = vadd.f32 %v8955_v22, %v4086_v28  ;;  %v5111_v32 = vadd.f32 %v8955_v22, %v5110_v29  ;;  %v4088_v33 = vpop.f32.mrb[87].mxu0  ;;  %v5112_v34 = vpop.f32.mrb[87].mxu1  ;;  %v7729_v28 = vld [vmem:[%s8385_s20 + $0xb40] ss:$8 sps:$4 sm:$0xff]  }
 0x1eb   : > { %6006 = vst.msk [vmem:[%s8574_s25 + $0x158] sm:$0xff] %vm5962_vm3, %v4087_v61  ;;  %6262 = vst.msk [vmem:[%s8574_s25 + $0x958] sm:$0xff] %vm5962_vm3, %v5111_v32  ;;  %4298 = vmatmul.mubr.bf16.gmra.mrb[192].mxu0 %v7704_v26  ;;  %5322 = vmatmul.mubr.bf16.gmra.mrb[192].mxu1 %v7705_v27  ;;  %v7728_v27 = vld [vmem:[%s8385_s20 + $0x340] ss:$8 sps:$4 sm:$0xff]   ;;  %v7732_v61 = vld [vmem:[%s8385_s20 + $0xb54] ss:$8 sps:$4 sm:$0xff]  }
 0x1ec   : > { %7139 = vmatprep.mubr.msk.bf16.mxu0 %vm3105_vm0, %v7706_v30  ;;  %7267 = vmatprep.mubr.msk.bf16.mxu1 %vm3105_vm0, %v7708_v31  ;;  %v7730_v31 = vld [vmem:[%s8385_s20 + $0x354] ss:$8 sps:$4 sm:$0xff]  }
 0x1ee   : > { %v4091_v35 = vpop.f32.mrb[88].mxu0  ;;  %v5115_v36 = vpop.f32.mrb[88].mxu1 }
 0x1ef   : > { %v4092_v37 = vadd.f32 %v8955_v22, %v4091_v35  ;;  %v5116_v38 = vadd.f32 %v8955_v22, %v5115_v36  ;;  %v4093_v39 = vpop.f32.mrb[89].mxu0  ;;  %v5117_v40 = vpop.f32.mrb[89].mxu1 }
 0x1f0   : > { %v4094_v43 = vpop.f32.mrb[90].mxu0  ;;  %v5118_v44 = vpop.f32.mrb[90].mxu1 }
 0x1f1   : > { %6007 = vst.msk [vmem:[%s8574_s25 + $0x160] sm:$0xff] %vm5962_vm3, %v4092_v37  ;;  %6263 = vst.msk [vmem:[%s8574_s25 + $0x960] sm:$0xff] %vm5962_vm3, %v5116_v38  ;;  %v4095_v47 = vadd.f32 %v8955_v22, %v4094_v43  ;;  %v5119_v48 = vadd.f32 %v8955_v22, %v5118_v44  ;;  %v4096_v49 = vpop.f32.mrb[91].mxu0  ;;  %v5120_v50 = vpop.f32.mrb[91].mxu1  ;;  %v7735_v43 = vld [vmem:[%s8385_s20 + $0xb50] ss:$8 sps:$4 sm:$0xff]  }
 0x1f3   : > { %6008 = vst.msk [vmem:[%s8574_s25 + $0x168] sm:$0xff] %vm5962_vm3, %v4095_v47  ;;  %6264 = vst.msk [vmem:[%s8574_s25 + $0x968] sm:$0xff] %vm5962_vm3, %v5119_v48  ;;  %4306 = vmatmul.mubr.bf16.gmra.mrb[196].mxu0 %v7710_v41  ;;  %5330 = vmatmul.mubr.bf16.gmra.mrb[196].mxu1 %v7711_v42  ;;  %v7734_v42 = vld [vmem:[%s8385_s20 + $0x350] ss:$8 sps:$4 sm:$0xff]   ;;  %v7738_v47 = vld [vmem:[%s8385_s20 + $0xb64] ss:$8 sps:$4 sm:$0xff]  }
 0x1f4   : > { %7140 = vmatprep.mubr.msk.bf16.mxu0 %vm3105_vm0, %v7712_v45  ;;  %7268 = vmatprep.mubr.msk.bf16.mxu1 %vm3105_vm0, %v7714_v46  ;;  %v7736_v46 = vld [vmem:[%s8385_s20 + $0x364] ss:$8 sps:$4 sm:$0xff]  }
 0x1f6   : > { %v4099_v51 = vpop.f32.mrb[92].mxu0  ;;  %v5123_v52 = vpop.f32.mrb[92].mxu1 }
 0x1f7   : > { %v4100_v53 = vadd.f32 %v8955_v22, %v4099_v51  ;;  %v5124_v54 = vadd.f32 %v8955_v22, %v5123_v52  ;;  %v4101_v55 = vpop.f32.mrb[93].mxu0  ;;  %v5125_v56 = vpop.f32.mrb[93].mxu1 }
 0x1f8   : > { %v4102_v59 = vpop.f32.mrb[94].mxu0  ;;  %v5126_v60 = vpop.f32.mrb[94].mxu1 }
 0x1f9   : > { %6009 = vst.msk [vmem:[%s8574_s25 + $0x170] sm:$0xff] %vm5962_vm3, %v4100_v53  ;;  %6265 = vst.msk [vmem:[%s8574_s25 + $0x970] sm:$0xff] %vm5962_vm3, %v5124_v54  ;;  %v4103_v0 = vadd.f32 %v8955_v22, %v4102_v59  ;;  %v5127_v1 = vadd.f32 %v8955_v22, %v5126_v60  ;;  %v4104_v2 = vpop.f32.mrb[95].mxu0  ;;  %v5128_v3 = vpop.f32.mrb[95].mxu1  ;;  %v7741_v59 = vld [vmem:[%s8385_s20 + $0xb60] ss:$8 sps:$4 sm:$0xff]  }
 0x1fb   : > { %6010 = vst.msk [vmem:[%s8574_s25 + $0x178] sm:$0xff] %vm5962_vm3, %v4103_v0  ;;  %6266 = vst.msk [vmem:[%s8574_s25 + $0x978] sm:$0xff] %vm5962_vm3, %v5127_v1  ;;  %4314 = vmatmul.mubr.bf16.gmra.mrb[200].mxu0 %v7716_v57  ;;  %5338 = vmatmul.mubr.bf16.gmra.mrb[200].mxu1 %v7717_v58  ;;  %v7740_v58 = vld [vmem:[%s8385_s20 + $0x360] ss:$8 sps:$4 sm:$0xff]   ;;  %v7744_v0 = vld [vmem:[%s8385_s20 + $0xb74] ss:$8 sps:$4 sm:$0xff]  }
 0x1fc   : > { %7141 = vmatprep.mubr.msk.bf16.mxu0 %vm3105_vm0, %v7718_v62  ;;  %7269 = vmatprep.mubr.msk.bf16.mxu1 %vm3105_vm0, %v7720_v63  ;;  %v7742_v63 = vld [vmem:[%s8385_s20 + $0x374] ss:$8 sps:$4 sm:$0xff]  }
 0x1fe   : > { %v4107_v4 = vpop.f32.mrb[96].mxu0  ;;  %v5131_v5 = vpop.f32.mrb[96].mxu1 }
 0x1ff   : > { %v4108_v6 = vadd.f32 %v8955_v22, %v4107_v4  ;;  %v5132_v7 = vadd.f32 %v8955_v22, %v5131_v5  ;;  %v4109_v8 = vpop.f32.mrb[97].mxu0  ;;  %v5133_v9 = vpop.f32.mrb[97].mxu1 }
 0x200   : > { %v4110_v12 = vpop.f32.mrb[98].mxu0  ;;  %v5134_v13 = vpop.f32.mrb[98].mxu1 }
 0x201   : > { %6011 = vst.msk [vmem:[%s8574_s25 + $0x180] sm:$0xff] %vm5962_vm3, %v4108_v6  ;;  %6267 = vst.msk [vmem:[%s8574_s25 + $0x980] sm:$0xff] %vm5962_vm3, %v5132_v7  ;;  %v4111_v16 = vadd.f32 %v8955_v22, %v4110_v12  ;;  %v5135_v17 = vadd.f32 %v8955_v22, %v5134_v13  ;;  %v4112_v18 = vpop.f32.mrb[99].mxu0  ;;  %v5136_v19 = vpop.f32.mrb[99].mxu1  ;;  %v7747_v12 = vld [vmem:[%s8385_s20 + $0xb70] ss:$8 sps:$4 sm:$0xff]  }
 0x203   : > { %6012 = vst.msk [vmem:[%s8574_s25 + $0x188] sm:$0xff] %vm5962_vm3, %v4111_v16  ;;  %6268 = vst.msk [vmem:[%s8574_s25 + $0x988] sm:$0xff] %vm5962_vm3, %v5135_v17  ;;  %4322 = vmatmul.mubr.bf16.gmra.mrb[204].mxu0 %v7722_v10  ;;  %5346 = vmatmul.mubr.bf16.gmra.mrb[204].mxu1 %v7723_v11  ;;  %v7746_v11 = vld [vmem:[%s8385_s20 + $0x370] ss:$8 sps:$4 sm:$0xff]   ;;  %v7750_v16 = vld [vmem:[%s8385_s20 + $0xb84] ss:$8 sps:$4 sm:$0xff]  }
 0x204   : > { %7142 = vmatprep.mubr.msk.bf16.mxu0 %vm3105_vm0, %v7724_v14  ;;  %7270 = vmatprep.mubr.msk.bf16.mxu1 %vm3105_vm0, %v7726_v15  ;;  %v7748_v15 = vld [vmem:[%s8385_s20 + $0x384] ss:$8 sps:$4 sm:$0xff]  }
 0x206   : > { %v4115_v20 = vpop.f32.mrb[100].mxu0  ;;  %v5139_v21 = vpop.f32.mrb[100].mxu1 }
 0x207   : > { %v4116_v23 = vadd.f32 %v8955_v22, %v4115_v20  ;;  %v5140_v24 = vadd.f32 %v8955_v22, %v5139_v21  ;;  %v4117_v25 = vpop.f32.mrb[101].mxu0  ;;  %v5141_v26 = vpop.f32.mrb[101].mxu1 }
 0x208   : > { %v4118_v29 = vpop.f32.mrb[102].mxu0  ;;  %v5142_v30 = vpop.f32.mrb[102].mxu1 }
 0x209   : > { %6013 = vst.msk [vmem:[%s8574_s25 + $0x190] sm:$0xff] %vm5962_vm3, %v4116_v23  ;;  %6269 = vst.msk [vmem:[%s8574_s25 + $0x990] sm:$0xff] %vm5962_vm3, %v5140_v24  ;;  %v4119_v32 = vadd.f32 %v8955_v22, %v4118_v29  ;;  %v5143_v33 = vadd.f32 %v8955_v22, %v5142_v30  ;;  %v4120_v34 = vpop.f32.mrb[103].mxu0  ;;  %v5144_v35 = vpop.f32.mrb[103].mxu1  ;;  %v7753_v29 = vld [vmem:[%s8385_s20 + $0xb80] ss:$8 sps:$4 sm:$0xff]  }
 0x20b   : > { %6014 = vst.msk [vmem:[%s8574_s25 + $0x198] sm:$0xff] %vm5962_vm3, %v4119_v32  ;;  %6270 = vst.msk [vmem:[%s8574_s25 + $0x998] sm:$0xff] %vm5962_vm3, %v5143_v33  ;;  %4330 = vmatmul.mubr.bf16.gmra.mrb[208].mxu0 %v7728_v27  ;;  %5354 = vmatmul.mubr.bf16.gmra.mrb[208].mxu1 %v7729_v28  ;;  %v7752_v28 = vld [vmem:[%s8385_s20 + $0x380] ss:$8 sps:$4 sm:$0xff]   ;;  %v7756_v32 = vld [vmem:[%s8385_s20 + $0xb94] ss:$8 sps:$4 sm:$0xff]  }
 0x20c   : > { %7143 = vmatprep.mubr.msk.bf16.mxu0 %vm3105_vm0, %v7730_v31  ;;  %7271 = vmatprep.mubr.msk.bf16.mxu1 %vm3105_vm0, %v7732_v61  ;;  %v7754_v61 = vld [vmem:[%s8385_s20 + $0x394] ss:$8 sps:$4 sm:$0xff]  }
 0x20e   : > { %v4123_v36 = vpop.f32.mrb[104].mxu0  ;;  %v5147_v37 = vpop.f32.mrb[104].mxu1 }
 0x20f   : > { %v4124_v38 = vadd.f32 %v8955_v22, %v4123_v36  ;;  %v5148_v39 = vadd.f32 %v8955_v22, %v5147_v37  ;;  %v4125_v40 = vpop.f32.mrb[105].mxu0  ;;  %v5149_v41 = vpop.f32.mrb[105].mxu1 }
 0x210   : > { %v4126_v44 = vpop.f32.mrb[106].mxu0  ;;  %v5150_v45 = vpop.f32.mrb[106].mxu1 }
 0x211   : > { %6015 = vst.msk [vmem:[%s8574_s25 + $0x1a0] sm:$0xff] %vm5962_vm3, %v4124_v38  ;;  %6271 = vst.msk [vmem:[%s8574_s25 + $0x9a0] sm:$0xff] %vm5962_vm3, %v5148_v39  ;;  %v4127_v48 = vadd.f32 %v8955_v22, %v4126_v44  ;;  %v5151_v49 = vadd.f32 %v8955_v22, %v5150_v45  ;;  %v4128_v50 = vpop.f32.mrb[107].mxu0  ;;  %v5152_v51 = vpop.f32.mrb[107].mxu1  ;;  %v7759_v44 = vld [vmem:[%s8385_s20 + $0xb90] ss:$8 sps:$4 sm:$0xff]  }
 0x213   : > { %6016 = vst.msk [vmem:[%s8574_s25 + $0x1a8] sm:$0xff] %vm5962_vm3, %v4127_v48  ;;  %6272 = vst.msk [vmem:[%s8574_s25 + $0x9a8] sm:$0xff] %vm5962_vm3, %v5151_v49  ;;  %4338 = vmatmul.mubr.bf16.gmra.mrb[212].mxu0 %v7734_v42  ;;  %5362 = vmatmul.mubr.bf16.gmra.mrb[212].mxu1 %v7735_v43  ;;  %v7758_v43 = vld [vmem:[%s8385_s20 + $0x390] ss:$8 sps:$4 sm:$0xff]   ;;  %v7762_v48 = vld [vmem:[%s8385_s20 + $0xba4] ss:$8 sps:$4 sm:$0xff]  }
 0x214   : > { %7144 = vmatprep.mubr.msk.bf16.mxu0 %vm3105_vm0, %v7736_v46  ;;  %7272 = vmatprep.mubr.msk.bf16.mxu1 %vm3105_vm0, %v7738_v47  ;;  %v7760_v47 = vld [vmem:[%s8385_s20 + $0x3a4] ss:$8 sps:$4 sm:$0xff]  }
 0x216   : > { %v4131_v52 = vpop.f32.mrb[108].mxu0  ;;  %v5155_v53 = vpop.f32.mrb[108].mxu1 }
 0x217   : > { %v4132_v54 = vadd.f32 %v8955_v22, %v4131_v52  ;;  %v5156_v55 = vadd.f32 %v8955_v22, %v5155_v53  ;;  %v4133_v56 = vpop.f32.mrb[109].mxu0  ;;  %v5157_v57 = vpop.f32.mrb[109].mxu1 }
 0x218   : > { %v4134_v60 = vpop.f32.mrb[110].mxu0  ;;  %v5158_v62 = vpop.f32.mrb[110].mxu1 }
 0x219   : > { %6017 = vst.msk [vmem:[%s8574_s25 + $0x1b0] sm:$0xff] %vm5962_vm3, %v4132_v54  ;;  %6273 = vst.msk [vmem:[%s8574_s25 + $0x9b0] sm:$0xff] %vm5962_vm3, %v5156_v55  ;;  %v4135_v1 = vadd.f32 %v8955_v22, %v4134_v60  ;;  %v5159_v2 = vadd.f32 %v8955_v22, %v5158_v62  ;;  %v4136_v3 = vpop.f32.mrb[111].mxu0  ;;  %v5160_v4 = vpop.f32.mrb[111].mxu1  ;;  %v7765_v60 = vld [vmem:[%s8385_s20 + $0xba0] ss:$8 sps:$4 sm:$0xff]  }
 0x21b   : > { %6018 = vst.msk [vmem:[%s8574_s25 + $0x1b8] sm:$0xff] %vm5962_vm3, %v4135_v1  ;;  %6274 = vst.msk [vmem:[%s8574_s25 + $0x9b8] sm:$0xff] %vm5962_vm3, %v5159_v2  ;;  %4346 = vmatmul.mubr.bf16.gmra.mrb[216].mxu0 %v7740_v58  ;;  %5370 = vmatmul.mubr.bf16.gmra.mrb[216].mxu1 %v7741_v59  ;;  %v7764_v59 = vld [vmem:[%s8385_s20 + $0x3a0] ss:$8 sps:$4 sm:$0xff]   ;;  %v7768_v1 = vld [vmem:[%s8385_s20 + $0xbb4] ss:$8 sps:$4 sm:$0xff]  }
 0x21c   : > { %7145 = vmatprep.mubr.msk.bf16.mxu0 %vm3105_vm0, %v7742_v63  ;;  %7273 = vmatprep.mubr.msk.bf16.mxu1 %vm3105_vm0, %v7744_v0  ;;  %v7766_v0 = vld [vmem:[%s8385_s20 + $0x3b4] ss:$8 sps:$4 sm:$0xff]  }
 0x21e   : > { %v4139_v5 = vpop.f32.mrb[112].mxu0  ;;  %v5163_v6 = vpop.f32.mrb[112].mxu1 }
 0x21f   : > { %v4140_v7 = vadd.f32 %v8955_v22, %v4139_v5  ;;  %v5164_v8 = vadd.f32 %v8955_v22, %v5163_v6  ;;  %v4141_v9 = vpop.f32.mrb[113].mxu0  ;;  %v5165_v10 = vpop.f32.mrb[113].mxu1 }
 0x220   : > { %v4142_v13 = vpop.f32.mrb[114].mxu0  ;;  %v5166_v14 = vpop.f32.mrb[114].mxu1 }
 0x221   : > { %6019 = vst.msk [vmem:[%s8574_s25 + $0x1c0] sm:$0xff] %vm5962_vm3, %v4140_v7  ;;  %6275 = vst.msk [vmem:[%s8574_s25 + $0x9c0] sm:$0xff] %vm5962_vm3, %v5164_v8  ;;  %v4143_v17 = vadd.f32 %v8955_v22, %v4142_v13  ;;  %v5167_v18 = vadd.f32 %v8955_v22, %v5166_v14  ;;  %v4144_v19 = vpop.f32.mrb[115].mxu0  ;;  %v5168_v20 = vpop.f32.mrb[115].mxu1  ;;  %v7771_v13 = vld [vmem:[%s8385_s20 + $0xbb0] ss:$8 sps:$4 sm:$0xff]  }
 0x223   : > { %6020 = vst.msk [vmem:[%s8574_s25 + $0x1c8] sm:$0xff] %vm5962_vm3, %v4143_v17  ;;  %6276 = vst.msk [vmem:[%s8574_s25 + $0x9c8] sm:$0xff] %vm5962_vm3, %v5167_v18  ;;  %4354 = vmatmul.mubr.bf16.gmra.mrb[220].mxu0 %v7746_v11  ;;  %5378 = vmatmul.mubr.bf16.gmra.mrb[220].mxu1 %v7747_v12  ;;  %v7770_v12 = vld [vmem:[%s8385_s20 + $0x3b0] ss:$8 sps:$4 sm:$0xff]   ;;  %v7774_v17 = vld [vmem:[%s8385_s20 + $0xbc4] ss:$8 sps:$4 sm:$0xff]  }
 0x224   : > { %7146 = vmatprep.mubr.msk.bf16.mxu0 %vm3105_vm0, %v7748_v15  ;;  %7274 = vmatprep.mubr.msk.bf16.mxu1 %vm3105_vm0, %v7750_v16  ;;  %v7772_v16 = vld [vmem:[%s8385_s20 + $0x3c4] ss:$8 sps:$4 sm:$0xff]  }
 0x226   : > { %v4147_v21 = vpop.f32.mrb[116].mxu0  ;;  %v5171_v23 = vpop.f32.mrb[116].mxu1 }
 0x227   : > { %v4148_v24 = vadd.f32 %v8955_v22, %v4147_v21  ;;  %v5172_v25 = vadd.f32 %v8955_v22, %v5171_v23  ;;  %v4149_v26 = vpop.f32.mrb[117].mxu0  ;;  %v5173_v27 = vpop.f32.mrb[117].mxu1 }
 0x228   : > { %v4150_v30 = vpop.f32.mrb[118].mxu0  ;;  %v5174_v31 = vpop.f32.mrb[118].mxu1 }
 0x229   : > { %6021 = vst.msk [vmem:[%s8574_s25 + $0x1d0] sm:$0xff] %vm5962_vm3, %v4148_v24  ;;  %6277 = vst.msk [vmem:[%s8574_s25 + $0x9d0] sm:$0xff] %vm5962_vm3, %v5172_v25  ;;  %v4151_v33 = vadd.f32 %v8955_v22, %v4150_v30  ;;  %v5175_v34 = vadd.f32 %v8955_v22, %v5174_v31  ;;  %v4152_v35 = vpop.f32.mrb[119].mxu0  ;;  %v5176_v36 = vpop.f32.mrb[119].mxu1  ;;  %v7777_v30 = vld [vmem:[%s8385_s20 + $0xbc0] ss:$8 sps:$4 sm:$0xff]  }
 0x22b   : > { %6022 = vst.msk [vmem:[%s8574_s25 + $0x1d8] sm:$0xff] %vm5962_vm3, %v4151_v33  ;;  %6278 = vst.msk [vmem:[%s8574_s25 + $0x9d8] sm:$0xff] %vm5962_vm3, %v5175_v34  ;;  %4362 = vmatmul.mubr.bf16.gmra.mrb[224].mxu0 %v7752_v28  ;;  %5386 = vmatmul.mubr.bf16.gmra.mrb[224].mxu1 %v7753_v29  ;;  %v7776_v29 = vld [vmem:[%s8385_s20 + $0x3c0] ss:$8 sps:$4 sm:$0xff]   ;;  %v7780_v33 = vld [vmem:[%s8385_s20 + $0xbd4] ss:$8 sps:$4 sm:$0xff]  }
 0x22c   : > { %7147 = vmatprep.mubr.msk.bf16.mxu0 %vm3105_vm0, %v7754_v61  ;;  %7275 = vmatprep.mubr.msk.bf16.mxu1 %vm3105_vm0, %v7756_v32  ;;  %v7778_v32 = vld [vmem:[%s8385_s20 + $0x3d4] ss:$8 sps:$4 sm:$0xff]  }
 0x22e   : > { %v4155_v37 = vpop.f32.mrb[120].mxu0  ;;  %v5179_v38 = vpop.f32.mrb[120].mxu1 }
 0x22f   : > { %v4156_v39 = vadd.f32 %v8955_v22, %v4155_v37  ;;  %v5180_v40 = vadd.f32 %v8955_v22, %v5179_v38  ;;  %v4157_v41 = vpop.f32.mrb[121].mxu0  ;;  %v5181_v42 = vpop.f32.mrb[121].mxu1 }
 0x230   : > { %v4158_v45 = vpop.f32.mrb[122].mxu0  ;;  %v5182_v46 = vpop.f32.mrb[122].mxu1 }
 0x231   : > { %6023 = vst.msk [vmem:[%s8574_s25 + $0x1e0] sm:$0xff] %vm5962_vm3, %v4156_v39  ;;  %6279 = vst.msk [vmem:[%s8574_s25 + $0x9e0] sm:$0xff] %vm5962_vm3, %v5180_v40  ;;  %v4159_v49 = vadd.f32 %v8955_v22, %v4158_v45  ;;  %v5183_v50 = vadd.f32 %v8955_v22, %v5182_v46  ;;  %v4160_v51 = vpop.f32.mrb[123].mxu0  ;;  %v5184_v52 = vpop.f32.mrb[123].mxu1  ;;  %v7783_v45 = vld [vmem:[%s8385_s20 + $0xbd0] ss:$8 sps:$4 sm:$0xff]  }
 0x233   : > { %6024 = vst.msk [vmem:[%s8574_s25 + $0x1e8] sm:$0xff] %vm5962_vm3, %v4159_v49  ;;  %6280 = vst.msk [vmem:[%s8574_s25 + $0x9e8] sm:$0xff] %vm5962_vm3, %v5183_v50  ;;  %4370 = vmatmul.mubr.bf16.gmra.mrb[228].mxu0 %v7758_v43  ;;  %5394 = vmatmul.mubr.bf16.gmra.mrb[228].mxu1 %v7759_v44  ;;  %v7782_v44 = vld [vmem:[%s8385_s20 + $0x3d0] ss:$8 sps:$4 sm:$0xff]   ;;  %v7786_v49 = vld [vmem:[%s8385_s20 + $0xbe4] ss:$8 sps:$4 sm:$0xff]  }
 0x234   : > { %7148 = vmatprep.mubr.msk.bf16.mxu0 %vm3105_vm0, %v7760_v47  ;;  %7276 = vmatprep.mubr.msk.bf16.mxu1 %vm3105_vm0, %v7762_v48  ;;  %v7784_v48 = vld [vmem:[%s8385_s20 + $0x3e4] ss:$8 sps:$4 sm:$0xff]  }
 0x236   : > { %v4163_v53 = vpop.f32.mrb[124].mxu0  ;;  %v5187_v54 = vpop.f32.mrb[124].mxu1 }
 0x237   : > { %v4164_v55 = vadd.f32 %v8955_v22, %v4163_v53  ;;  %v5188_v56 = vadd.f32 %v8955_v22, %v5187_v54  ;;  %v4165_v57 = vpop.f32.mrb[125].mxu0  ;;  %v5189_v58 = vpop.f32.mrb[125].mxu1 }
 0x238   : > { %v4166_v62 = vpop.f32.mrb[126].mxu0  ;;  %v5190_v63 = vpop.f32.mrb[126].mxu1 }
 0x239   : > { %6025 = vst.msk [vmem:[%s8574_s25 + $0x1f0] sm:$0xff] %vm5962_vm3, %v4164_v55  ;;  %6281 = vst.msk [vmem:[%s8574_s25 + $0x9f0] sm:$0xff] %vm5962_vm3, %v5188_v56  ;;  %v4167_v2 = vadd.f32 %v8955_v22, %v4166_v62  ;;  %v5191_v3 = vadd.f32 %v8955_v22, %v5190_v63  ;;  %v4168_v4 = vpop.f32.mrb[127].mxu0  ;;  %v5192_v5 = vpop.f32.mrb[127].mxu1  ;;  %v7789_v62 = vld [vmem:[%s8385_s20 + $0xbe0] ss:$8 sps:$4 sm:$0xff]  }
 0x23b   : > { %6026 = vst.msk [vmem:[%s8574_s25 + $0x1f8] sm:$0xff] %vm5962_vm3, %v4167_v2  ;;  %6282 = vst.msk [vmem:[%s8574_s25 + $0x9f8] sm:$0xff] %vm5962_vm3, %v5191_v3  ;;  %4378 = vmatmul.mubr.bf16.gmra.mrb[232].mxu0 %v7764_v59  ;;  %5402 = vmatmul.mubr.bf16.gmra.mrb[232].mxu1 %v7765_v60  ;;  %v7788_v60 = vld [vmem:[%s8385_s20 + $0x3e0] ss:$8 sps:$4 sm:$0xff]   ;;  %v7792_v2 = vld [vmem:[%s8385_s20 + $0xbf4] ss:$8 sps:$4 sm:$0xff]  }
 0x23c   : > { %7149 = vmatprep.mubr.msk.bf16.mxu0 %vm3105_vm0, %v7766_v0  ;;  %7277 = vmatprep.mubr.msk.bf16.mxu1 %vm3105_vm0, %v7768_v1  ;;  %v7790_v1 = vld [vmem:[%s8385_s20 + $0x3f4] ss:$8 sps:$4 sm:$0xff]  }
 0x23e   : > { %v4171_v6 = vpop.f32.mrb[128].mxu0  ;;  %v5195_v7 = vpop.f32.mrb[128].mxu1 }
 0x23f   : > { %v4172_v8 = vadd.f32 %v8955_v22, %v4171_v6  ;;  %v5196_v9 = vadd.f32 %v8955_v22, %v5195_v7  ;;  %v4173_v10 = vpop.f32.mrb[129].mxu0  ;;  %v5197_v11 = vpop.f32.mrb[129].mxu1 }
 0x240   : > { %v4174_v14 = vpop.f32.mrb[130].mxu0  ;;  %v5198_v15 = vpop.f32.mrb[130].mxu1 }
 0x241   : > { %6027 = vst.msk [vmem:[%s8574_s25 + $0x200] sm:$0xff] %vm5962_vm3, %v4172_v8  ;;  %6283 = vst.msk [vmem:[%s8574_s25 + $0xa00] sm:$0xff] %vm5962_vm3, %v5196_v9  ;;  %v4175_v18 = vadd.f32 %v8955_v22, %v4174_v14  ;;  %v5199_v19 = vadd.f32 %v8955_v22, %v5198_v15  ;;  %v4176_v20 = vpop.f32.mrb[131].mxu0  ;;  %v5200_v21 = vpop.f32.mrb[131].mxu1  ;;  %v7795_v14 = vld [vmem:[%s8385_s20 + $0xbf0] ss:$8 sps:$4 sm:$0xff]  }
 0x243   : > { %6028 = vst.msk [vmem:[%s8574_s25 + $0x208] sm:$0xff] %vm5962_vm3, %v4175_v18  ;;  %6284 = vst.msk [vmem:[%s8574_s25 + $0xa08] sm:$0xff] %vm5962_vm3, %v5199_v19  ;;  %4386 = vmatmul.mubr.bf16.gmra.mrb[236].mxu0 %v7770_v12  ;;  %5410 = vmatmul.mubr.bf16.gmra.mrb[236].mxu1 %v7771_v13  ;;  %v7794_v13 = vld [vmem:[%s8385_s20 + $0x3f0] ss:$8 sps:$4 sm:$0xff]   ;;  %v7801_v18 = vld [vmem:[%s8385_s20 + $0xc04] ss:$8 sps:$4 sm:$0xff]  }
 0x244   : > { %7150 = vmatprep.mubr.msk.bf16.mxu0 %vm3105_vm0, %v7772_v16  ;;  %7278 = vmatprep.mubr.msk.bf16.mxu1 %vm3105_vm0, %v7774_v17  ;;  %v7798_v17 = vld [vmem:[%s8385_s20 + $0x404] ss:$8 sps:$4 sm:$0xff]  }
 0x246   : > { %v4179_v23 = vpop.f32.mrb[132].mxu0  ;;  %v5203_v24 = vpop.f32.mrb[132].mxu1 }
 0x247   : > { %v4180_v25 = vadd.f32 %v8955_v22, %v4179_v23  ;;  %v5204_v26 = vadd.f32 %v8955_v22, %v5203_v24  ;;  %v4181_v27 = vpop.f32.mrb[133].mxu0  ;;  %v5205_v28 = vpop.f32.mrb[133].mxu1 }
 0x248   : > { %v4182_v31 = vpop.f32.mrb[134].mxu0  ;;  %v5206_v61 = vpop.f32.mrb[134].mxu1 }
 0x249   : > { %6029 = vst.msk [vmem:[%s8574_s25 + $0x210] sm:$0xff] %vm5962_vm3, %v4180_v25  ;;  %6285 = vst.msk [vmem:[%s8574_s25 + $0xa10] sm:$0xff] %vm5962_vm3, %v5204_v26  ;;  %v4183_v34 = vadd.f32 %v8955_v22, %v4182_v31  ;;  %v5207_v35 = vadd.f32 %v8955_v22, %v5206_v61  ;;  %v4184_v36 = vpop.f32.mrb[135].mxu0  ;;  %v5208_v37 = vpop.f32.mrb[135].mxu1  ;;  %v7799_v31 = vld [vmem:[%s8385_s20 + $0xc00] ss:$8 sps:$4 sm:$0xff]  }
 0x24b   : > { %6030 = vst.msk [vmem:[%s8574_s25 + $0x218] sm:$0xff] %vm5962_vm3, %v4183_v34  ;;  %6286 = vst.msk [vmem:[%s8574_s25 + $0xa18] sm:$0xff] %vm5962_vm3, %v5207_v35  ;;  %4394 = vmatmul.mubr.bf16.gmra.mrb[240].mxu0 %v7776_v29  ;;  %5418 = vmatmul.mubr.bf16.gmra.mrb[240].mxu1 %v7777_v30  ;;  %v7796_v30 = vld [vmem:[%s8385_s20 + $0x400] ss:$8 sps:$4 sm:$0xff]   ;;  %v7807_v34 = vld [vmem:[%s8385_s20 + $0xc14] ss:$8 sps:$4 sm:$0xff]  }
 0x24c   : > { %7151 = vmatprep.mubr.msk.bf16.mxu0 %vm3105_vm0, %v7778_v32  ;;  %7279 = vmatprep.mubr.msk.bf16.mxu1 %vm3105_vm0, %v7780_v33  ;;  %v7804_v33 = vld [vmem:[%s8385_s20 + $0x414] ss:$8 sps:$4 sm:$0xff]  }
 0x24e   : > { %v4187_v38 = vpop.f32.mrb[136].mxu0  ;;  %v5211_v39 = vpop.f32.mrb[136].mxu1 }
 0x24f   : > { %v4188_v40 = vadd.f32 %v8955_v22, %v4187_v38  ;;  %v5212_v41 = vadd.f32 %v8955_v22, %v5211_v39  ;;  %v4189_v42 = vpop.f32.mrb[137].mxu0  ;;  %v5213_v43 = vpop.f32.mrb[137].mxu1 }
 0x250   : > { %v4190_v46 = vpop.f32.mrb[138].mxu0  ;;  %v5214_v47 = vpop.f32.mrb[138].mxu1 }
 0x251   : > { %6031 = vst.msk [vmem:[%s8574_s25 + $0x220] sm:$0xff] %vm5962_vm3, %v4188_v40  ;;  %6287 = vst.msk [vmem:[%s8574_s25 + $0xa20] sm:$0xff] %vm5962_vm3, %v5212_v41  ;;  %v4191_v50 = vadd.f32 %v8955_v22, %v4190_v46  ;;  %v5215_v51 = vadd.f32 %v8955_v22, %v5214_v47  ;;  %v4192_v52 = vpop.f32.mrb[139].mxu0  ;;  %v5216_v53 = vpop.f32.mrb[139].mxu1  ;;  %v7805_v46 = vld [vmem:[%s8385_s20 + $0xc10] ss:$8 sps:$4 sm:$0xff]  }
 0x253   : > { %6032 = vst.msk [vmem:[%s8574_s25 + $0x228] sm:$0xff] %vm5962_vm3, %v4191_v50  ;;  %6288 = vst.msk [vmem:[%s8574_s25 + $0xa28] sm:$0xff] %vm5962_vm3, %v5215_v51  ;;  %4402 = vmatmul.mubr.bf16.gmra.mrb[244].mxu0 %v7782_v44  ;;  %5426 = vmatmul.mubr.bf16.gmra.mrb[244].mxu1 %v7783_v45  ;;  %v7802_v45 = vld [vmem:[%s8385_s20 + $0x410] ss:$8 sps:$4 sm:$0xff]   ;;  %v7813_v50 = vld [vmem:[%s8385_s20 + $0xc24] ss:$8 sps:$4 sm:$0xff]  }
 0x254   : > { %7152 = vmatprep.mubr.msk.bf16.mxu0 %vm3105_vm0, %v7784_v48  ;;  %7280 = vmatprep.mubr.msk.bf16.mxu1 %vm3105_vm0, %v7786_v49  ;;  %v7810_v49 = vld [vmem:[%s8385_s20 + $0x424] ss:$8 sps:$4 sm:$0xff]  }
 0x256   : > { %v4195_v54 = vpop.f32.mrb[140].mxu0  ;;  %v5219_v55 = vpop.f32.mrb[140].mxu1 }
 0x257   : > { %v4196_v56 = vadd.f32 %v8955_v22, %v4195_v54  ;;  %v5220_v57 = vadd.f32 %v8955_v22, %v5219_v55  ;;  %v4197_v58 = vpop.f32.mrb[141].mxu0  ;;  %v5221_v59 = vpop.f32.mrb[141].mxu1 }
 0x258   : > { %v4198_v63 = vpop.f32.mrb[142].mxu0  ;;  %v5222_v0 = vpop.f32.mrb[142].mxu1 }
 0x259   : > { %6033 = vst.msk [vmem:[%s8574_s25 + $0x230] sm:$0xff] %vm5962_vm3, %v4196_v56  ;;  %6289 = vst.msk [vmem:[%s8574_s25 + $0xa30] sm:$0xff] %vm5962_vm3, %v5220_v57  ;;  %v4199_v3 = vadd.f32 %v8955_v22, %v4198_v63  ;;  %v5223_v4 = vadd.f32 %v8955_v22, %v5222_v0  ;;  %v4200_v5 = vpop.f32.mrb[143].mxu0  ;;  %v5224_v6 = vpop.f32.mrb[143].mxu1  ;;  %v7811_v63 = vld [vmem:[%s8385_s20 + $0xc20] ss:$8 sps:$4 sm:$0xff]  }
 0x25b   : > { %6034 = vst.msk [vmem:[%s8574_s25 + $0x238] sm:$0xff] %vm5962_vm3, %v4199_v3  ;;  %6290 = vst.msk [vmem:[%s8574_s25 + $0xa38] sm:$0xff] %vm5962_vm3, %v5223_v4  ;;  %4410 = vmatmul.mubr.bf16.gmra.mrb[248].mxu0 %v7788_v60  ;;  %5434 = vmatmul.mubr.bf16.gmra.mrb[248].mxu1 %v7789_v62  ;;  %v7808_v62 = vld [vmem:[%s8385_s20 + $0x420] ss:$8 sps:$4 sm:$0xff]   ;;  %v7819_v3 = vld [vmem:[%s8385_s20 + $0xc34] ss:$8 sps:$4 sm:$0xff]  }
 0x25c   : > { %7153 = vmatprep.mubr.msk.bf16.mxu0 %vm3105_vm0, %v7790_v1  ;;  %7281 = vmatprep.mubr.msk.bf16.mxu1 %vm3105_vm0, %v7792_v2  ;;  %v7816_v2 = vld [vmem:[%s8385_s20 + $0x434] ss:$8 sps:$4 sm:$0xff]  }
 0x25e   : > { %v4203_v7 = vpop.f32.mrb[144].mxu0  ;;  %v5227_v8 = vpop.f32.mrb[144].mxu1 }
 0x25f   : > { %v4204_v9 = vadd.f32 %v8955_v22, %v4203_v7  ;;  %v5228_v10 = vadd.f32 %v8955_v22, %v5227_v8  ;;  %v4205_v11 = vpop.f32.mrb[145].mxu0  ;;  %v5229_v12 = vpop.f32.mrb[145].mxu1 }
 0x260   : > { %v4206_v15 = vpop.f32.mrb[146].mxu0  ;;  %v5230_v16 = vpop.f32.mrb[146].mxu1 }
 0x261   : > { %6035 = vst.msk [vmem:[%s8574_s25 + $0x240] sm:$0xff] %vm5962_vm3, %v4204_v9  ;;  %6291 = vst.msk [vmem:[%s8574_s25 + $0xa40] sm:$0xff] %vm5962_vm3, %v5228_v10  ;;  %v4207_v19 = vadd.f32 %v8955_v22, %v4206_v15  ;;  %v5231_v20 = vadd.f32 %v8955_v22, %v5230_v16  ;;  %v4208_v21 = vpop.f32.mrb[147].mxu0  ;;  %v5232_v23 = vpop.f32.mrb[147].mxu1  ;;  %v7817_v15 = vld [vmem:[%s8385_s20 + $0xc30] ss:$8 sps:$4 sm:$0xff]  }
 0x263   : > { %6036 = vst.msk [vmem:[%s8574_s25 + $0x248] sm:$0xff] %vm5962_vm3, %v4207_v19  ;;  %6292 = vst.msk [vmem:[%s8574_s25 + $0xa48] sm:$0xff] %vm5962_vm3, %v5231_v20  ;;  %4418 = vmatmul.mubr.bf16.gmra.mrb[252].mxu0 %v7794_v13  ;;  %5442 = vmatmul.mubr.bf16.gmra.mrb[252].mxu1 %v7795_v14  ;;  %v7814_v14 = vld [vmem:[%s8385_s20 + $0x430] ss:$8 sps:$4 sm:$0xff]   ;;  %v7825_v19 = vld [vmem:[%s8385_s20 + $0xc44] ss:$8 sps:$4 sm:$0xff]  }
 0x264   : > { %7154 = vmatprep.mubr.msk.bf16.mxu0 %vm3105_vm0, %v7798_v17  ;;  %7282 = vmatprep.mubr.msk.bf16.mxu1 %vm3105_vm0, %v7801_v18  ;;  %v7822_v18 = vld [vmem:[%s8385_s20 + $0x444] ss:$8 sps:$4 sm:$0xff]  }
 0x266   : > { %v4211_v24 = vpop.f32.mrb[148].mxu0  ;;  %v5235_v25 = vpop.f32.mrb[148].mxu1 }
 0x267   : > { %v4212_v26 = vadd.f32 %v8955_v22, %v4211_v24  ;;  %v5236_v27 = vadd.f32 %v8955_v22, %v5235_v25  ;;  %v4213_v28 = vpop.f32.mrb[149].mxu0  ;;  %v5237_v29 = vpop.f32.mrb[149].mxu1 }
 0x268   : > { %v4214_v61 = vpop.f32.mrb[150].mxu0  ;;  %v5238_v32 = vpop.f32.mrb[150].mxu1 }
 0x269   : > { %6037 = vst.msk [vmem:[%s8574_s25 + $0x250] sm:$0xff] %vm5962_vm3, %v4212_v26  ;;  %6293 = vst.msk [vmem:[%s8574_s25 + $0xa50] sm:$0xff] %vm5962_vm3, %v5236_v27  ;;  %v4215_v35 = vadd.f32 %v8955_v22, %v4214_v61  ;;  %v5239_v36 = vadd.f32 %v8955_v22, %v5238_v32  ;;  %v4216_v37 = vpop.f32.mrb[151].mxu0  ;;  %v5240_v38 = vpop.f32.mrb[151].mxu1  ;;  %v7823_v61 = vld [vmem:[%s8385_s20 + $0xc40] ss:$8 sps:$4 sm:$0xff]  }
 0x26b   : > { %6038 = vst.msk [vmem:[%s8574_s25 + $0x258] sm:$0xff] %vm5962_vm3, %v4215_v35  ;;  %6294 = vst.msk [vmem:[%s8574_s25 + $0xa58] sm:$0xff] %vm5962_vm3, %v5239_v36  ;;  %4426 = vmatmul.mubr.bf16.gmra.mrb[0].mxu0 %v7796_v30  ;;  %5450 = vmatmul.mubr.bf16.gmra.mrb[0].mxu1 %v7799_v31  ;;  %v7820_v31 = vld [vmem:[%s8385_s20 + $0x440] ss:$8 sps:$4 sm:$0xff]   ;;  %v7831_v35 = vld [vmem:[%s8385_s20 + $0xc54] ss:$8 sps:$4 sm:$0xff]  }
 0x26c   : > { %7155 = vmatprep.mubr.msk.bf16.mxu0 %vm3105_vm0, %v7804_v33  ;;  %7283 = vmatprep.mubr.msk.bf16.mxu1 %vm3105_vm0, %v7807_v34  ;;  %v7828_v34 = vld [vmem:[%s8385_s20 + $0x454] ss:$8 sps:$4 sm:$0xff]  }
 0x26e   : > { %v4219_v39 = vpop.f32.mrb[152].mxu0  ;;  %v5243_v40 = vpop.f32.mrb[152].mxu1 }
 0x26f   : > { %v4220_v41 = vadd.f32 %v8955_v22, %v4219_v39  ;;  %v5244_v42 = vadd.f32 %v8955_v22, %v5243_v40  ;;  %v4221_v43 = vpop.f32.mrb[153].mxu0  ;;  %v5245_v44 = vpop.f32.mrb[153].mxu1 }
 0x270   : > { %v4222_v47 = vpop.f32.mrb[154].mxu0  ;;  %v5246_v48 = vpop.f32.mrb[154].mxu1 }
 0x271   : > { %6039 = vst.msk [vmem:[%s8574_s25 + $0x260] sm:$0xff] %vm5962_vm3, %v4220_v41  ;;  %6295 = vst.msk [vmem:[%s8574_s25 + $0xa60] sm:$0xff] %vm5962_vm3, %v5244_v42  ;;  %v4223_v51 = vadd.f32 %v8955_v22, %v4222_v47  ;;  %v5247_v52 = vadd.f32 %v8955_v22, %v5246_v48  ;;  %v4224_v53 = vpop.f32.mrb[155].mxu0  ;;  %v5248_v54 = vpop.f32.mrb[155].mxu1  ;;  %v7829_v47 = vld [vmem:[%s8385_s20 + $0xc50] ss:$8 sps:$4 sm:$0xff]  }
 0x273   : > { %6040 = vst.msk [vmem:[%s8574_s25 + $0x268] sm:$0xff] %vm5962_vm3, %v4223_v51  ;;  %6296 = vst.msk [vmem:[%s8574_s25 + $0xa68] sm:$0xff] %vm5962_vm3, %v5247_v52  ;;  %4434 = vmatmul.mubr.bf16.gmra.mrb[4].mxu0 %v7802_v45  ;;  %5458 = vmatmul.mubr.bf16.gmra.mrb[4].mxu1 %v7805_v46  ;;  %v7826_v46 = vld [vmem:[%s8385_s20 + $0x450] ss:$8 sps:$4 sm:$0xff]   ;;  %v7837_v51 = vld [vmem:[%s8385_s20 + $0xc64] ss:$8 sps:$4 sm:$0xff]  }
 0x274   : > { %7156 = vmatprep.mubr.msk.bf16.mxu0 %vm3105_vm0, %v7810_v49  ;;  %7284 = vmatprep.mubr.msk.bf16.mxu1 %vm3105_vm0, %v7813_v50  ;;  %v7834_v50 = vld [vmem:[%s8385_s20 + $0x464] ss:$8 sps:$4 sm:$0xff]  }
 0x275   : > { %v9344_v52 = vld [vmem:[#allocation4] ss:$0 sm:$0xff] }
 0x276   : > { %v4227_v55 = vpop.f32.mrb[156].mxu0  ;;  %v5251_v56 = vpop.f32.mrb[156].mxu1 }
 0x277   : > { %v4228_v57 = vadd.f32 %v8955_v22, %v4227_v55  ;;  %v5252_v58 = vadd.f32 %v8955_v22, %v5251_v56  ;;  %v4229_v59 = vpop.f32.mrb[157].mxu0  ;;  %v5253_v60 = vpop.f32.mrb[157].mxu1 }
 0x278   : > { %v4230_v0 = vpop.f32.mrb[158].mxu0  ;;  %v5254_v1 = vpop.f32.mrb[158].mxu1 }
 0x279   : > { %6041 = vst.msk [vmem:[%s8574_s25 + $0x270] sm:$0xff] %vm5962_vm3, %v4228_v57  ;;  %6297 = vst.msk [vmem:[%s8574_s25 + $0xa70] sm:$0xff] %vm5962_vm3, %v5252_v58  ;;  %v4231_v4 = vadd.f32 %v8955_v22, %v4230_v0  ;;  %v5255_v5 = vadd.f32 %v8955_v22, %v5254_v1  ;;  %v4232_v6 = vpop.f32.mrb[159].mxu0  ;;  %v5256_v7 = vpop.f32.mrb[159].mxu1  ;;  %v7835_v0 = vld [vmem:[%s8385_s20 + $0xc60] ss:$8 sps:$4 sm:$0xff]  }
 0x27b   : > { %6042 = vst.msk [vmem:[%s8574_s25 + $0x278] sm:$0xff] %vm5962_vm3, %v4231_v4  ;;  %6298 = vst.msk [vmem:[%s8574_s25 + $0xa78] sm:$0xff] %vm5962_vm3, %v5255_v5  ;;  %4442 = vmatmul.mubr.bf16.gmra.mrb[8].mxu0 %v7808_v62  ;;  %5466 = vmatmul.mubr.bf16.gmra.mrb[8].mxu1 %v7811_v63  ;;  %v7832_v63 = vld [vmem:[%s8385_s20 + $0x460] ss:$8 sps:$4 sm:$0xff]   ;;  %v7843_v4 = vld [vmem:[%s8385_s20 + $0xc74] ss:$8 sps:$4 sm:$0xff]  }
 0x27c   : > { %7157 = vmatprep.mubr.msk.bf16.mxu0 %vm3105_vm0, %v7816_v2  ;;  %7285 = vmatprep.mubr.msk.bf16.mxu1 %vm3105_vm0, %v7819_v3  ;;  %v7840_v3 = vld [vmem:[%s8385_s20 + $0x474] ss:$8 sps:$4 sm:$0xff]  }
 0x27e   : > { %v4235_v8 = vpop.f32.mrb[160].mxu0  ;;  %v5259_v9 = vpop.f32.mrb[160].mxu1 }
 0x27f   : > { %v4236_v10 = vadd.f32 %v8955_v22, %v4235_v8  ;;  %v5260_v11 = vadd.f32 %v8955_v22, %v5259_v9  ;;  %v4237_v12 = vpop.f32.mrb[161].mxu0  ;;  %v5261_v13 = vpop.f32.mrb[161].mxu1 }
 0x280   : > { %v4238_v16 = vpop.f32.mrb[162].mxu0  ;;  %v5262_v17 = vpop.f32.mrb[162].mxu1 }
 0x281   : > { %6043 = vst.msk [vmem:[%s8574_s25 + $0x280] sm:$0xff] %vm5962_vm3, %v4236_v10  ;;  %6299 = vst.msk [vmem:[%s8574_s25 + $0xa80] sm:$0xff] %vm5962_vm3, %v5260_v11  ;;  %v4239_v20 = vadd.f32 %v8955_v22, %v4238_v16  ;;  %v5263_v21 = vadd.f32 %v8955_v22, %v5262_v17  ;;  %v4240_v23 = vpop.f32.mrb[163].mxu0  ;;  %v5264_v24 = vpop.f32.mrb[163].mxu1  ;;  %v7841_v16 = vld [vmem:[%s8385_s20 + $0xc70] ss:$8 sps:$4 sm:$0xff]  }
 0x283   : > { %6044 = vst.msk [vmem:[%s8574_s25 + $0x288] sm:$0xff] %vm5962_vm3, %v4239_v20  ;;  %6300 = vst.msk [vmem:[%s8574_s25 + $0xa88] sm:$0xff] %vm5962_vm3, %v5263_v21  ;;  %4450 = vmatmul.mubr.bf16.gmra.mrb[12].mxu0 %v7814_v14  ;;  %5474 = vmatmul.mubr.bf16.gmra.mrb[12].mxu1 %v7817_v15  ;;  %v7838_v15 = vld [vmem:[%s8385_s20 + $0x470] ss:$8 sps:$4 sm:$0xff]   ;;  %v7849_v20 = vld [vmem:[%s8385_s20 + $0xc84] ss:$8 sps:$4 sm:$0xff]  }
 0x284   : > { %7158 = vmatprep.mubr.msk.bf16.mxu0 %vm3105_vm0, %v7822_v18  ;;  %7286 = vmatprep.mubr.msk.bf16.mxu1 %vm3105_vm0, %v7825_v19  ;;  %v7846_v19 = vld [vmem:[%s8385_s20 + $0x484] ss:$8 sps:$4 sm:$0xff]  }
 0x286   : > { %v4243_v25 = vpop.f32.mrb[164].mxu0  ;;  %v5267_v26 = vpop.f32.mrb[164].mxu1 }
 0x287   : > { %v4244_v27 = vadd.f32 %v8955_v22, %v4243_v25  ;;  %v5268_v28 = vadd.f32 %v8955_v22, %v5267_v26  ;;  %v4245_v29 = vpop.f32.mrb[165].mxu0  ;;  %v5269_v30 = vpop.f32.mrb[165].mxu1 }
 0x288   : > { %v4246_v32 = vpop.f32.mrb[166].mxu0  ;;  %v5270_v33 = vpop.f32.mrb[166].mxu1 }
 0x289   : > { %6045 = vst.msk [vmem:[%s8574_s25 + $0x290] sm:$0xff] %vm5962_vm3, %v4244_v27  ;;  %6301 = vst.msk [vmem:[%s8574_s25 + $0xa90] sm:$0xff] %vm5962_vm3, %v5268_v28  ;;  %v4247_v36 = vadd.f32 %v8955_v22, %v4246_v32  ;;  %v5271_v37 = vadd.f32 %v8955_v22, %v5270_v33  ;;  %v4248_v38 = vpop.f32.mrb[167].mxu0  ;;  %v5272_v39 = vpop.f32.mrb[167].mxu1  ;;  %v7847_v32 = vld [vmem:[%s8385_s20 + $0xc80] ss:$8 sps:$4 sm:$0xff]  }
 0x28b   : > { %6046 = vst.msk [vmem:[%s8574_s25 + $0x298] sm:$0xff] %vm5962_vm3, %v4247_v36  ;;  %6302 = vst.msk [vmem:[%s8574_s25 + $0xa98] sm:$0xff] %vm5962_vm3, %v5271_v37  ;;  %4458 = vmatmul.mubr.bf16.gmra.mrb[16].mxu0 %v7820_v31  ;;  %5482 = vmatmul.mubr.bf16.gmra.mrb[16].mxu1 %v7823_v61  ;;  %v7844_v61 = vld [vmem:[%s8385_s20 + $0x480] ss:$8 sps:$4 sm:$0xff]   ;;  %v7855_v36 = vld [vmem:[%s8385_s20 + $0xc94] ss:$8 sps:$4 sm:$0xff]  }
 0x28c   : > { %7159 = vmatprep.mubr.msk.bf16.mxu0 %vm3105_vm0, %v7828_v34  ;;  %7287 = vmatprep.mubr.msk.bf16.mxu1 %vm3105_vm0, %v7831_v35  ;;  %v7852_v35 = vld [vmem:[%s8385_s20 + $0x494] ss:$8 sps:$4 sm:$0xff]  }
 0x28e   : > { %v4251_v40 = vpop.f32.mrb[168].mxu0  ;;  %v5275_v41 = vpop.f32.mrb[168].mxu1 }
 0x28f   : > { %v4252_v42 = vadd.f32 %v8955_v22, %v4251_v40  ;;  %v5276_v43 = vadd.f32 %v8955_v22, %v5275_v41  ;;  %v4253_v44 = vpop.f32.mrb[169].mxu0  ;;  %v5277_v45 = vpop.f32.mrb[169].mxu1 }
 0x290   : > { %v4254_v48 = vpop.f32.mrb[170].mxu0  ;;  %v5278_v49 = vpop.f32.mrb[170].mxu1 }
 0x291   : > { %6047 = vst.msk [vmem:[%s8574_s25 + $0x2a0] sm:$0xff] %vm5962_vm3, %v4252_v42  ;;  %6303 = vst.msk [vmem:[%s8574_s25 + $0xaa0] sm:$0xff] %vm5962_vm3, %v5276_v43  ;;  %v4255_v53 = vadd.f32 %v9344_v52, %v4254_v48  ;;  %v5279_v22 = vadd.f32 %v9344_v52, %v5278_v49  ;;  %v4256_v54 = vpop.f32.mrb[171].mxu0  ;;  %v5280_v55 = vpop.f32.mrb[171].mxu1  ;;  %v7853_v48 = vld [vmem:[%s8385_s20 + $0xc90] ss:$8 sps:$4 sm:$0xff]  }
 0x293   : > { %6048 = vst.msk [vmem:[%s8574_s25 + $0x2a8] sm:$0xff] %vm5962_vm3, %v4255_v53  ;;  %6304 = vst.msk [vmem:[%s8574_s25 + $0xaa8] sm:$0xff] %vm5962_vm3, %v5279_v22  ;;  %4466 = vmatmul.mubr.bf16.gmra.mrb[20].mxu0 %v7826_v46  ;;  %5490 = vmatmul.mubr.bf16.gmra.mrb[20].mxu1 %v7829_v47  ;;  %v7850_v47 = vld [vmem:[%s8385_s20 + $0x490] ss:$8 sps:$4 sm:$0xff]   ;;  %v7861_v53 = vld [vmem:[%s8385_s20 + $0xca4] ss:$8 sps:$4 sm:$0xff]  }
 0x294   : > { %7160 = vmatprep.mubr.msk.bf16.mxu0 %vm3105_vm0, %v7834_v50  ;;  %7288 = vmatprep.mubr.msk.bf16.mxu1 %vm3105_vm0, %v7837_v51  ;;  %v7858_v51 = vld [vmem:[%s8385_s20 + $0x4a4] ss:$8 sps:$4 sm:$0xff]  }
 0x296   : > { %v4259_v56 = vpop.f32.mrb[172].mxu0  ;;  %v5283_v57 = vpop.f32.mrb[172].mxu1 }
 0x297   : > { %v4260_v58 = vadd.f32 %v9344_v52, %v4259_v56  ;;  %v5284_v59 = vadd.f32 %v9344_v52, %v5283_v57  ;;  %v4261_v60 = vpop.f32.mrb[173].mxu0  ;;  %v5285_v62 = vpop.f32.mrb[173].mxu1 }
 0x298   : > { %v4262_v1 = vpop.f32.mrb[174].mxu0  ;;  %v5286_v2 = vpop.f32.mrb[174].mxu1 }
 0x299   : > { %6049 = vst.msk [vmem:[%s8574_s25 + $0x2b0] sm:$0xff] %vm5962_vm3, %v4260_v58  ;;  %6305 = vst.msk [vmem:[%s8574_s25 + $0xab0] sm:$0xff] %vm5962_vm3, %v5284_v59  ;;  %v4263_v5 = vadd.f32 %v9344_v52, %v4262_v1  ;;  %v5287_v6 = vadd.f32 %v9344_v52, %v5286_v2  ;;  %v4264_v7 = vpop.f32.mrb[175].mxu0  ;;  %v5288_v8 = vpop.f32.mrb[175].mxu1  ;;  %v7859_v1 = vld [vmem:[%s8385_s20 + $0xca0] ss:$8 sps:$4 sm:$0xff]  }
 0x29b   : > { %6050 = vst.msk [vmem:[%s8574_s25 + $0x2b8] sm:$0xff] %vm5962_vm3, %v4263_v5  ;;  %6306 = vst.msk [vmem:[%s8574_s25 + $0xab8] sm:$0xff] %vm5962_vm3, %v5287_v6  ;;  %4474 = vmatmul.mubr.bf16.gmra.mrb[24].mxu0 %v7832_v63  ;;  %5498 = vmatmul.mubr.bf16.gmra.mrb[24].mxu1 %v7835_v0  ;;  %v7856_v0 = vld [vmem:[%s8385_s20 + $0x4a0] ss:$8 sps:$4 sm:$0xff]   ;;  %v7867_v5 = vld [vmem:[%s8385_s20 + $0xcb4] ss:$8 sps:$4 sm:$0xff]  }
 0x29c   : > { %7161 = vmatprep.mubr.msk.bf16.mxu0 %vm3105_vm0, %v7840_v3  ;;  %7289 = vmatprep.mubr.msk.bf16.mxu1 %vm3105_vm0, %v7843_v4  ;;  %v7864_v4 = vld [vmem:[%s8385_s20 + $0x4b4] ss:$8 sps:$4 sm:$0xff]  }
 0x29e   : > { %v4267_v9 = vpop.f32.mrb[176].mxu0  ;;  %v5291_v10 = vpop.f32.mrb[176].mxu1 }
 0x29f   : > { %v4268_v11 = vadd.f32 %v9344_v52, %v4267_v9  ;;  %v5292_v12 = vadd.f32 %v9344_v52, %v5291_v10  ;;  %v4269_v13 = vpop.f32.mrb[177].mxu0  ;;  %v5293_v14 = vpop.f32.mrb[177].mxu1 }
 0x2a0   : > { %v4270_v17 = vpop.f32.mrb[178].mxu0  ;;  %v5294_v18 = vpop.f32.mrb[178].mxu1 }
 0x2a1   : > { %6051 = vst.msk [vmem:[%s8574_s25 + $0x2c0] sm:$0xff] %vm5962_vm3, %v4268_v11  ;;  %6307 = vst.msk [vmem:[%s8574_s25 + $0xac0] sm:$0xff] %vm5962_vm3, %v5292_v12  ;;  %v4271_v21 = vadd.f32 %v9344_v52, %v4270_v17  ;;  %v5295_v23 = vadd.f32 %v9344_v52, %v5294_v18  ;;  %v4272_v24 = vpop.f32.mrb[179].mxu0  ;;  %v5296_v25 = vpop.f32.mrb[179].mxu1  ;;  %v7865_v17 = vld [vmem:[%s8385_s20 + $0xcb0] ss:$8 sps:$4 sm:$0xff]  }
 0x2a3   : > { %6052 = vst.msk [vmem:[%s8574_s25 + $0x2c8] sm:$0xff] %vm5962_vm3, %v4271_v21  ;;  %6308 = vst.msk [vmem:[%s8574_s25 + $0xac8] sm:$0xff] %vm5962_vm3, %v5295_v23  ;;  %4482 = vmatmul.mubr.bf16.gmra.mrb[28].mxu0 %v7838_v15  ;;  %5506 = vmatmul.mubr.bf16.gmra.mrb[28].mxu1 %v7841_v16  ;;  %v7862_v16 = vld [vmem:[%s8385_s20 + $0x4b0] ss:$8 sps:$4 sm:$0xff]   ;;  %v7873_v21 = vld [vmem:[%s8385_s20 + $0xcc4] ss:$8 sps:$4 sm:$0xff]  }
 0x2a4   : > { %7162 = vmatprep.mubr.msk.bf16.mxu0 %vm3105_vm0, %v7846_v19  ;;  %7290 = vmatprep.mubr.msk.bf16.mxu1 %vm3105_vm0, %v7849_v20  ;;  %v7870_v20 = vld [vmem:[%s8385_s20 + $0x4c4] ss:$8 sps:$4 sm:$0xff]  }
 0x2a6   : > { %v4275_v26 = vpop.f32.mrb[180].mxu0  ;;  %v5299_v27 = vpop.f32.mrb[180].mxu1 }
 0x2a7   : > { %v4276_v28 = vadd.f32 %v9344_v52, %v4275_v26  ;;  %v5300_v29 = vadd.f32 %v9344_v52, %v5299_v27  ;;  %v4277_v30 = vpop.f32.mrb[181].mxu0  ;;  %v5301_v31 = vpop.f32.mrb[181].mxu1 }
 0x2a8   : > { %v4278_v33 = vpop.f32.mrb[182].mxu0  ;;  %v5302_v34 = vpop.f32.mrb[182].mxu1 }
 0x2a9   : > { %6053 = vst.msk [vmem:[%s8574_s25 + $0x2d0] sm:$0xff] %vm5962_vm3, %v4276_v28  ;;  %6309 = vst.msk [vmem:[%s8574_s25 + $0xad0] sm:$0xff] %vm5962_vm3, %v5300_v29  ;;  %v4279_v37 = vadd.f32 %v9344_v52, %v4278_v33  ;;  %v5303_v38 = vadd.f32 %v9344_v52, %v5302_v34  ;;  %v4280_v39 = vpop.f32.mrb[183].mxu0  ;;  %v5304_v40 = vpop.f32.mrb[183].mxu1  ;;  %v7871_v33 = vld [vmem:[%s8385_s20 + $0xcc0] ss:$8 sps:$4 sm:$0xff]  }
 0x2ab   : > { %6054 = vst.msk [vmem:[%s8574_s25 + $0x2d8] sm:$0xff] %vm5962_vm3, %v4279_v37  ;;  %6310 = vst.msk [vmem:[%s8574_s25 + $0xad8] sm:$0xff] %vm5962_vm3, %v5303_v38  ;;  %4490 = vmatmul.mubr.bf16.gmra.mrb[32].mxu0 %v7844_v61  ;;  %5514 = vmatmul.mubr.bf16.gmra.mrb[32].mxu1 %v7847_v32  ;;  %v7868_v32 = vld [vmem:[%s8385_s20 + $0x4c0] ss:$8 sps:$4 sm:$0xff]   ;;  %v7879_v37 = vld [vmem:[%s8385_s20 + $0xcd4] ss:$8 sps:$4 sm:$0xff]  }
 0x2ac   : > { %7163 = vmatprep.mubr.msk.bf16.mxu0 %vm3105_vm0, %v7852_v35  ;;  %7291 = vmatprep.mubr.msk.bf16.mxu1 %vm3105_vm0, %v7855_v36  ;;  %v7876_v36 = vld [vmem:[%s8385_s20 + $0x4d4] ss:$8 sps:$4 sm:$0xff]  }
 0x2ae   : > { %v4283_v41 = vpop.f32.mrb[184].mxu0  ;;  %v5307_v42 = vpop.f32.mrb[184].mxu1 }
 0x2af   : > { %v4284_v43 = vadd.f32 %v9344_v52, %v4283_v41  ;;  %v5308_v44 = vadd.f32 %v9344_v52, %v5307_v42  ;;  %v4285_v45 = vpop.f32.mrb[185].mxu0  ;;  %v5309_v46 = vpop.f32.mrb[185].mxu1 }
 0x2b0   : > { %v4286_v49 = vpop.f32.mrb[186].mxu0  ;;  %v5310_v50 = vpop.f32.mrb[186].mxu1 }
 0x2b1   : > { %6055 = vst.msk [vmem:[%s8574_s25 + $0x2e0] sm:$0xff] %vm5962_vm3, %v4284_v43  ;;  %6311 = vst.msk [vmem:[%s8574_s25 + $0xae0] sm:$0xff] %vm5962_vm3, %v5308_v44  ;;  %v4287_v22 = vadd.f32 %v9344_v52, %v4286_v49  ;;  %v5311_v54 = vadd.f32 %v9344_v52, %v5310_v50  ;;  %v4288_v55 = vpop.f32.mrb[187].mxu0  ;;  %v5312_v56 = vpop.f32.mrb[187].mxu1  ;;  %v7877_v49 = vld [vmem:[%s8385_s20 + $0xcd0] ss:$8 sps:$4 sm:$0xff]  }
 0x2b3   : > { %6056 = vst.msk [vmem:[%s8574_s25 + $0x2e8] sm:$0xff] %vm5962_vm3, %v4287_v22  ;;  %6312 = vst.msk [vmem:[%s8574_s25 + $0xae8] sm:$0xff] %vm5962_vm3, %v5311_v54  ;;  %4498 = vmatmul.mubr.bf16.gmra.mrb[36].mxu0 %v7850_v47  ;;  %5522 = vmatmul.mubr.bf16.gmra.mrb[36].mxu1 %v7853_v48  ;;  %v7874_v48 = vld [vmem:[%s8385_s20 + $0x4d0] ss:$8 sps:$4 sm:$0xff]   ;;  %v7885_v22 = vld [vmem:[%s8385_s20 + $0xce4] ss:$8 sps:$4 sm:$0xff]  }
 0x2b4   : > { %7164 = vmatprep.mubr.msk.bf16.mxu0 %vm3105_vm0, %v7858_v51  ;;  %7292 = vmatprep.mubr.msk.bf16.mxu1 %vm3105_vm0, %v7861_v53  ;;  %v7882_v53 = vld [vmem:[%s8385_s20 + $0x4e4] ss:$8 sps:$4 sm:$0xff]  }
 0x2b6   : > { %v4291_v57 = vpop.f32.mrb[188].mxu0  ;;  %v5315_v58 = vpop.f32.mrb[188].mxu1 }
 0x2b7   : > { %v4292_v59 = vadd.f32 %v9344_v52, %v4291_v57  ;;  %v5316_v60 = vadd.f32 %v9344_v52, %v5315_v58  ;;  %v4293_v62 = vpop.f32.mrb[189].mxu0  ;;  %v5317_v63 = vpop.f32.mrb[189].mxu1 }
 0x2b8   : > { %v4294_v2 = vpop.f32.mrb[190].mxu0  ;;  %v5318_v3 = vpop.f32.mrb[190].mxu1 }
 0x2b9   : > { %6057 = vst.msk [vmem:[%s8574_s25 + $0x2f0] sm:$0xff] %vm5962_vm3, %v4292_v59  ;;  %6313 = vst.msk [vmem:[%s8574_s25 + $0xaf0] sm:$0xff] %vm5962_vm3, %v5316_v60  ;;  %v4295_v6 = vadd.f32 %v9344_v52, %v4294_v2  ;;  %v5319_v7 = vadd.f32 %v9344_v52, %v5318_v3  ;;  %v4296_v8 = vpop.f32.mrb[191].mxu0  ;;  %v5320_v9 = vpop.f32.mrb[191].mxu1  ;;  %v7883_v2 = vld [vmem:[%s8385_s20 + $0xce0] ss:$8 sps:$4 sm:$0xff]  }
 0x2bb   : > { %6058 = vst.msk [vmem:[%s8574_s25 + $0x2f8] sm:$0xff] %vm5962_vm3, %v4295_v6  ;;  %6314 = vst.msk [vmem:[%s8574_s25 + $0xaf8] sm:$0xff] %vm5962_vm3, %v5319_v7  ;;  %4506 = vmatmul.mubr.bf16.gmra.mrb[40].mxu0 %v7856_v0  ;;  %5530 = vmatmul.mubr.bf16.gmra.mrb[40].mxu1 %v7859_v1  ;;  %v7880_v1 = vld [vmem:[%s8385_s20 + $0x4e0] ss:$8 sps:$4 sm:$0xff]   ;;  %v7891_v6 = vld [vmem:[%s8385_s20 + $0xcf4] ss:$8 sps:$4 sm:$0xff]  }
 0x2bc   : > { %7165 = vmatprep.mubr.msk.bf16.mxu0 %vm3105_vm0, %v7864_v4  ;;  %7293 = vmatprep.mubr.msk.bf16.mxu1 %vm3105_vm0, %v7867_v5  ;;  %v7888_v5 = vld [vmem:[%s8385_s20 + $0x4f4] ss:$8 sps:$4 sm:$0xff]  }
 0x2be   : > { %v4299_v10 = vpop.f32.mrb[192].mxu0  ;;  %v5323_v11 = vpop.f32.mrb[192].mxu1 }
 0x2bf   : > { %v4300_v12 = vadd.f32 %v9344_v52, %v4299_v10  ;;  %v5324_v13 = vadd.f32 %v9344_v52, %v5323_v11  ;;  %v4301_v14 = vpop.f32.mrb[193].mxu0  ;;  %v5325_v15 = vpop.f32.mrb[193].mxu1 }
 0x2c0   : > { %v4302_v18 = vpop.f32.mrb[194].mxu0  ;;  %v5326_v19 = vpop.f32.mrb[194].mxu1 }
 0x2c1   : > { %6059 = vst.msk [vmem:[%s8574_s25 + $0x300] sm:$0xff] %vm5962_vm3, %v4300_v12  ;;  %6315 = vst.msk [vmem:[%s8574_s25 + $0xb00] sm:$0xff] %vm5962_vm3, %v5324_v13  ;;  %v4303_v23 = vadd.f32 %v9344_v52, %v4302_v18  ;;  %v5327_v24 = vadd.f32 %v9344_v52, %v5326_v19  ;;  %v4304_v25 = vpop.f32.mrb[195].mxu0  ;;  %v5328_v26 = vpop.f32.mrb[195].mxu1  ;;  %v7889_v18 = vld [vmem:[%s8385_s20 + $0xcf0] ss:$8 sps:$4 sm:$0xff]  }
 0x2c3   : > { %6060 = vst.msk [vmem:[%s8574_s25 + $0x308] sm:$0xff] %vm5962_vm3, %v4303_v23  ;;  %6316 = vst.msk [vmem:[%s8574_s25 + $0xb08] sm:$0xff] %vm5962_vm3, %v5327_v24  ;;  %4514 = vmatmul.mubr.bf16.gmra.mrb[44].mxu0 %v7862_v16  ;;  %5538 = vmatmul.mubr.bf16.gmra.mrb[44].mxu1 %v7865_v17  ;;  %v7886_v17 = vld [vmem:[%s8385_s20 + $0x4f0] ss:$8 sps:$4 sm:$0xff]   ;;  %v7897_v23 = vld [vmem:[%s8385_s20 + $0xd04] ss:$8 sps:$4 sm:$0xff]  }
 0x2c4   : > { %7166 = vmatprep.mubr.msk.bf16.mxu0 %vm3105_vm0, %v7870_v20  ;;  %7294 = vmatprep.mubr.msk.bf16.mxu1 %vm3105_vm0, %v7873_v21  ;;  %v7894_v21 = vld [vmem:[%s8385_s20 + $0x504] ss:$8 sps:$4 sm:$0xff]  }
 0x2c6   : > { %v4307_v27 = vpop.f32.mrb[196].mxu0  ;;  %v5331_v28 = vpop.f32.mrb[196].mxu1 }
 0x2c7   : > { %v4308_v29 = vadd.f32 %v9344_v52, %v4307_v27  ;;  %v5332_v30 = vadd.f32 %v9344_v52, %v5331_v28  ;;  %v4309_v31 = vpop.f32.mrb[197].mxu0  ;;  %v5333_v61 = vpop.f32.mrb[197].mxu1 }
 0x2c8   : > { %v4310_v34 = vpop.f32.mrb[198].mxu0  ;;  %v5334_v35 = vpop.f32.mrb[198].mxu1 }
 0x2c9   : > { %6061 = vst.msk [vmem:[%s8574_s25 + $0x310] sm:$0xff] %vm5962_vm3, %v4308_v29  ;;  %6317 = vst.msk [vmem:[%s8574_s25 + $0xb10] sm:$0xff] %vm5962_vm3, %v5332_v30  ;;  %v4311_v38 = vadd.f32 %v9344_v52, %v4310_v34  ;;  %v5335_v39 = vadd.f32 %v9344_v52, %v5334_v35  ;;  %v4312_v40 = vpop.f32.mrb[199].mxu0  ;;  %v5336_v41 = vpop.f32.mrb[199].mxu1  ;;  %v7895_v34 = vld [vmem:[%s8385_s20 + $0xd00] ss:$8 sps:$4 sm:$0xff]  }
 0x2cb   : > { %6062 = vst.msk [vmem:[%s8574_s25 + $0x318] sm:$0xff] %vm5962_vm3, %v4311_v38  ;;  %6318 = vst.msk [vmem:[%s8574_s25 + $0xb18] sm:$0xff] %vm5962_vm3, %v5335_v39  ;;  %4522 = vmatmul.mubr.bf16.gmra.mrb[48].mxu0 %v7868_v32  ;;  %5546 = vmatmul.mubr.bf16.gmra.mrb[48].mxu1 %v7871_v33  ;;  %v7892_v33 = vld [vmem:[%s8385_s20 + $0x500] ss:$8 sps:$4 sm:$0xff]   ;;  %v7903_v38 = vld [vmem:[%s8385_s20 + $0xd14] ss:$8 sps:$4 sm:$0xff]  }
 0x2cc   : > { %7167 = vmatprep.mubr.msk.bf16.mxu0 %vm3105_vm0, %v7876_v36  ;;  %7295 = vmatprep.mubr.msk.bf16.mxu1 %vm3105_vm0, %v7879_v37  ;;  %v7900_v37 = vld [vmem:[%s8385_s20 + $0x514] ss:$8 sps:$4 sm:$0xff]  }
 0x2ce   : > { %v4315_v42 = vpop.f32.mrb[200].mxu0  ;;  %v5339_v43 = vpop.f32.mrb[200].mxu1 }
 0x2cf   : > { %v4316_v44 = vadd.f32 %v9344_v52, %v4315_v42  ;;  %v5340_v45 = vadd.f32 %v9344_v52, %v5339_v43  ;;  %v4317_v46 = vpop.f32.mrb[201].mxu0  ;;  %v5341_v47 = vpop.f32.mrb[201].mxu1 }
 0x2d0   : > { %v4318_v50 = vpop.f32.mrb[202].mxu0  ;;  %v5342_v51 = vpop.f32.mrb[202].mxu1 }
 0x2d1   : > { %6063 = vst.msk [vmem:[%s8574_s25 + $0x320] sm:$0xff] %vm5962_vm3, %v4316_v44  ;;  %6319 = vst.msk [vmem:[%s8574_s25 + $0xb20] sm:$0xff] %vm5962_vm3, %v5340_v45  ;;  %v4319_v54 = vadd.f32 %v9344_v52, %v4318_v50  ;;  %v5343_v55 = vadd.f32 %v9344_v52, %v5342_v51  ;;  %v4320_v56 = vpop.f32.mrb[203].mxu0  ;;  %v5344_v57 = vpop.f32.mrb[203].mxu1  ;;  %v7901_v50 = vld [vmem:[%s8385_s20 + $0xd10] ss:$8 sps:$4 sm:$0xff]  }
 0x2d3   : > { %6064 = vst.msk [vmem:[%s8574_s25 + $0x328] sm:$0xff] %vm5962_vm3, %v4319_v54  ;;  %6320 = vst.msk [vmem:[%s8574_s25 + $0xb28] sm:$0xff] %vm5962_vm3, %v5343_v55  ;;  %4530 = vmatmul.mubr.bf16.gmra.mrb[52].mxu0 %v7874_v48  ;;  %5554 = vmatmul.mubr.bf16.gmra.mrb[52].mxu1 %v7877_v49  ;;  %v7898_v49 = vld [vmem:[%s8385_s20 + $0x510] ss:$8 sps:$4 sm:$0xff]   ;;  %v7909_v54 = vld [vmem:[%s8385_s20 + $0xd24] ss:$8 sps:$4 sm:$0xff]  }
 0x2d4   : > { %7168 = vmatprep.mubr.msk.bf16.mxu0 %vm3105_vm0, %v7882_v53  ;;  %7296 = vmatprep.mubr.msk.bf16.mxu1 %vm3105_vm0, %v7885_v22  ;;  %v7906_v22 = vld [vmem:[%s8385_s20 + $0x524] ss:$8 sps:$4 sm:$0xff]  }
 0x2d6   : > { %v4323_v58 = vpop.f32.mrb[204].mxu0  ;;  %v5347_v59 = vpop.f32.mrb[204].mxu1 }
 0x2d7   : > { %v4324_v60 = vadd.f32 %v9344_v52, %v4323_v58  ;;  %v5348_v62 = vadd.f32 %v9344_v52, %v5347_v59  ;;  %v4325_v63 = vpop.f32.mrb[205].mxu0  ;;  %v5349_v0 = vpop.f32.mrb[205].mxu1 }
 0x2d8   : > { %v4326_v3 = vpop.f32.mrb[206].mxu0  ;;  %v5350_v4 = vpop.f32.mrb[206].mxu1 }
 0x2d9   : > { %6065 = vst.msk [vmem:[%s8574_s25 + $0x330] sm:$0xff] %vm5962_vm3, %v4324_v60  ;;  %6321 = vst.msk [vmem:[%s8574_s25 + $0xb30] sm:$0xff] %vm5962_vm3, %v5348_v62  ;;  %v4327_v7 = vadd.f32 %v9344_v52, %v4326_v3  ;;  %v5351_v8 = vadd.f32 %v9344_v52, %v5350_v4  ;;  %v4328_v9 = vpop.f32.mrb[207].mxu0  ;;  %v5352_v10 = vpop.f32.mrb[207].mxu1  ;;  %v7907_v3 = vld [vmem:[%s8385_s20 + $0xd20] ss:$8 sps:$4 sm:$0xff]  }
 0x2db   : > { %6066 = vst.msk [vmem:[%s8574_s25 + $0x338] sm:$0xff] %vm5962_vm3, %v4327_v7  ;;  %6322 = vst.msk [vmem:[%s8574_s25 + $0xb38] sm:$0xff] %vm5962_vm3, %v5351_v8  ;;  %4538 = vmatmul.mubr.bf16.gmra.mrb[56].mxu0 %v7880_v1  ;;  %5562 = vmatmul.mubr.bf16.gmra.mrb[56].mxu1 %v7883_v2  ;;  %v7904_v2 = vld [vmem:[%s8385_s20 + $0x520] ss:$8 sps:$4 sm:$0xff]   ;;  %v7915_v7 = vld [vmem:[%s8385_s20 + $0xd34] ss:$8 sps:$4 sm:$0xff]  }
 0x2dc   : > { %7169 = vmatprep.mubr.msk.bf16.mxu0 %vm3105_vm0, %v7888_v5  ;;  %7297 = vmatprep.mubr.msk.bf16.mxu1 %vm3105_vm0, %v7891_v6  ;;  %v7912_v6 = vld [vmem:[%s8385_s20 + $0x534] ss:$8 sps:$4 sm:$0xff]  }
 0x2de   : > { %v4331_v11 = vpop.f32.mrb[208].mxu0  ;;  %v5355_v12 = vpop.f32.mrb[208].mxu1 }
 0x2df   : > { %v4332_v13 = vadd.f32 %v9344_v52, %v4331_v11  ;;  %v5356_v14 = vadd.f32 %v9344_v52, %v5355_v12  ;;  %v4333_v15 = vpop.f32.mrb[209].mxu0  ;;  %v5357_v16 = vpop.f32.mrb[209].mxu1 }
 0x2e0   : > { %v4334_v19 = vpop.f32.mrb[210].mxu0  ;;  %v5358_v20 = vpop.f32.mrb[210].mxu1 }
 0x2e1   : > { %6067 = vst.msk [vmem:[%s8574_s25 + $0x340] sm:$0xff] %vm5962_vm3, %v4332_v13  ;;  %6323 = vst.msk [vmem:[%s8574_s25 + $0xb40] sm:$0xff] %vm5962_vm3, %v5356_v14  ;;  %v4335_v24 = vadd.f32 %v9344_v52, %v4334_v19  ;;  %v5359_v25 = vadd.f32 %v9344_v52, %v5358_v20  ;;  %v4336_v26 = vpop.f32.mrb[211].mxu0  ;;  %v5360_v27 = vpop.f32.mrb[211].mxu1  ;;  %v7913_v19 = vld [vmem:[%s8385_s20 + $0xd30] ss:$8 sps:$4 sm:$0xff]  }
 0x2e3   : > { %6068 = vst.msk [vmem:[%s8574_s25 + $0x348] sm:$0xff] %vm5962_vm3, %v4335_v24  ;;  %6324 = vst.msk [vmem:[%s8574_s25 + $0xb48] sm:$0xff] %vm5962_vm3, %v5359_v25  ;;  %4546 = vmatmul.mubr.bf16.gmra.mrb[60].mxu0 %v7886_v17  ;;  %5570 = vmatmul.mubr.bf16.gmra.mrb[60].mxu1 %v7889_v18  ;;  %v7910_v18 = vld [vmem:[%s8385_s20 + $0x530] ss:$8 sps:$4 sm:$0xff]   ;;  %v7921_v24 = vld [vmem:[%s8385_s20 + $0xd44] ss:$8 sps:$4 sm:$0xff]  }
 0x2e4   : > { %7170 = vmatprep.mubr.msk.bf16.mxu0 %vm3105_vm0, %v7894_v21  ;;  %7298 = vmatprep.mubr.msk.bf16.mxu1 %vm3105_vm0, %v7897_v23  ;;  %v7918_v23 = vld [vmem:[%s8385_s20 + $0x544] ss:$8 sps:$4 sm:$0xff]  }
 0x2e6   : > { %v4339_v28 = vpop.f32.mrb[212].mxu0  ;;  %v5363_v29 = vpop.f32.mrb[212].mxu1 }
 0x2e7   : > { %v4340_v30 = vadd.f32 %v9344_v52, %v4339_v28  ;;  %v5364_v31 = vadd.f32 %v9344_v52, %v5363_v29  ;;  %v4341_v61 = vpop.f32.mrb[213].mxu0  ;;  %v5365_v32 = vpop.f32.mrb[213].mxu1 }
 0x2e8   : > { %v4342_v35 = vpop.f32.mrb[214].mxu0  ;;  %v5366_v36 = vpop.f32.mrb[214].mxu1 }
 0x2e9   : > { %6069 = vst.msk [vmem:[%s8574_s25 + $0x350] sm:$0xff] %vm5962_vm3, %v4340_v30  ;;  %6325 = vst.msk [vmem:[%s8574_s25 + $0xb50] sm:$0xff] %vm5962_vm3, %v5364_v31  ;;  %v4343_v39 = vadd.f32 %v9344_v52, %v4342_v35  ;;  %v5367_v40 = vadd.f32 %v9344_v52, %v5366_v36  ;;  %v4344_v41 = vpop.f32.mrb[215].mxu0  ;;  %v5368_v42 = vpop.f32.mrb[215].mxu1  ;;  %v7919_v35 = vld [vmem:[%s8385_s20 + $0xd40] ss:$8 sps:$4 sm:$0xff]  }
 0x2eb   : > { %6070 = vst.msk [vmem:[%s8574_s25 + $0x358] sm:$0xff] %vm5962_vm3, %v4343_v39  ;;  %6326 = vst.msk [vmem:[%s8574_s25 + $0xb58] sm:$0xff] %vm5962_vm3, %v5367_v40  ;;  %4554 = vmatmul.mubr.bf16.gmra.mrb[64].mxu0 %v7892_v33  ;;  %5578 = vmatmul.mubr.bf16.gmra.mrb[64].mxu1 %v7895_v34  ;;  %v7916_v34 = vld [vmem:[%s8385_s20 + $0x540] ss:$8 sps:$4 sm:$0xff]   ;;  %v7927_v39 = vld [vmem:[%s8385_s20 + $0xd54] ss:$8 sps:$4 sm:$0xff]  }
 0x2ec   : > { %7171 = vmatprep.mubr.msk.bf16.mxu0 %vm3105_vm0, %v7900_v37  ;;  %7299 = vmatprep.mubr.msk.bf16.mxu1 %vm3105_vm0, %v7903_v38  ;;  %v7924_v38 = vld [vmem:[%s8385_s20 + $0x554] ss:$8 sps:$4 sm:$0xff]  }
 0x2ee   : > { %v4347_v43 = vpop.f32.mrb[216].mxu0  ;;  %v5371_v44 = vpop.f32.mrb[216].mxu1 }
 0x2ef   : > { %v4348_v45 = vadd.f32 %v9344_v52, %v4347_v43  ;;  %v5372_v46 = vadd.f32 %v9344_v52, %v5371_v44  ;;  %v4349_v47 = vpop.f32.mrb[217].mxu0  ;;  %v5373_v48 = vpop.f32.mrb[217].mxu1 }
 0x2f0   : > { %v4350_v51 = vpop.f32.mrb[218].mxu0  ;;  %v5374_v53 = vpop.f32.mrb[218].mxu1 }
 0x2f1   : > { %6071 = vst.msk [vmem:[%s8574_s25 + $0x360] sm:$0xff] %vm5962_vm3, %v4348_v45  ;;  %6327 = vst.msk [vmem:[%s8574_s25 + $0xb60] sm:$0xff] %vm5962_vm3, %v5372_v46  ;;  %v4351_v55 = vadd.f32 %v9344_v52, %v4350_v51  ;;  %v5375_v56 = vadd.f32 %v9344_v52, %v5374_v53  ;;  %v4352_v57 = vpop.f32.mrb[219].mxu0  ;;  %v5376_v58 = vpop.f32.mrb[219].mxu1  ;;  %v7925_v51 = vld [vmem:[%s8385_s20 + $0xd50] ss:$8 sps:$4 sm:$0xff]  }
 0x2f3   : > { %6072 = vst.msk [vmem:[%s8574_s25 + $0x368] sm:$0xff] %vm5962_vm3, %v4351_v55  ;;  %6328 = vst.msk [vmem:[%s8574_s25 + $0xb68] sm:$0xff] %vm5962_vm3, %v5375_v56  ;;  %4562 = vmatmul.mubr.bf16.gmra.mrb[68].mxu0 %v7898_v49  ;;  %5586 = vmatmul.mubr.bf16.gmra.mrb[68].mxu1 %v7901_v50  ;;  %v7922_v50 = vld [vmem:[%s8385_s20 + $0x550] ss:$8 sps:$4 sm:$0xff]   ;;  %v7933_v55 = vld [vmem:[%s8385_s20 + $0xd64] ss:$8 sps:$4 sm:$0xff]  }
 0x2f4   : > { %7172 = vmatprep.mubr.msk.bf16.mxu0 %vm3105_vm0, %v7906_v22  ;;  %7300 = vmatprep.mubr.msk.bf16.mxu1 %vm3105_vm0, %v7909_v54  ;;  %v7930_v54 = vld [vmem:[%s8385_s20 + $0x564] ss:$8 sps:$4 sm:$0xff]  }
 0x2f6   : > { %v4355_v59 = vpop.f32.mrb[220].mxu0  ;;  %v5379_v60 = vpop.f32.mrb[220].mxu1 }
 0x2f7   : > { %v4356_v62 = vadd.f32 %v9344_v52, %v4355_v59  ;;  %v5380_v63 = vadd.f32 %v9344_v52, %v5379_v60  ;;  %v4357_v0 = vpop.f32.mrb[221].mxu0  ;;  %v5381_v1 = vpop.f32.mrb[221].mxu1 }
 0x2f8   : > { %v4358_v4 = vpop.f32.mrb[222].mxu0  ;;  %v5382_v5 = vpop.f32.mrb[222].mxu1 }
 0x2f9   : > { %6073 = vst.msk [vmem:[%s8574_s25 + $0x370] sm:$0xff] %vm5962_vm3, %v4356_v62  ;;  %6329 = vst.msk [vmem:[%s8574_s25 + $0xb70] sm:$0xff] %vm5962_vm3, %v5380_v63  ;;  %v4359_v8 = vadd.f32 %v9344_v52, %v4358_v4  ;;  %v5383_v9 = vadd.f32 %v9344_v52, %v5382_v5  ;;  %v4360_v10 = vpop.f32.mrb[223].mxu0  ;;  %v5384_v11 = vpop.f32.mrb[223].mxu1  ;;  %v7931_v4 = vld [vmem:[%s8385_s20 + $0xd60] ss:$8 sps:$4 sm:$0xff]  }
 0x2fb   : > { %6074 = vst.msk [vmem:[%s8574_s25 + $0x378] sm:$0xff] %vm5962_vm3, %v4359_v8  ;;  %6330 = vst.msk [vmem:[%s8574_s25 + $0xb78] sm:$0xff] %vm5962_vm3, %v5383_v9  ;;  %4570 = vmatmul.mubr.bf16.gmra.mrb[72].mxu0 %v7904_v2  ;;  %5594 = vmatmul.mubr.bf16.gmra.mrb[72].mxu1 %v7907_v3  ;;  %v7928_v3 = vld [vmem:[%s8385_s20 + $0x560] ss:$8 sps:$4 sm:$0xff]   ;;  %v7939_v8 = vld [vmem:[%s8385_s20 + $0xd74] ss:$8 sps:$4 sm:$0xff]  }
 0x2fc   : > { %7173 = vmatprep.mubr.msk.bf16.mxu0 %vm3105_vm0, %v7912_v6  ;;  %7301 = vmatprep.mubr.msk.bf16.mxu1 %vm3105_vm0, %v7915_v7  ;;  %v7936_v7 = vld [vmem:[%s8385_s20 + $0x574] ss:$8 sps:$4 sm:$0xff]  }
 0x2fe   : > { %v4363_v12 = vpop.f32.mrb[224].mxu0  ;;  %v5387_v13 = vpop.f32.mrb[224].mxu1 }
 0x2ff   : > { %v4364_v14 = vadd.f32 %v9344_v52, %v4363_v12  ;;  %v5388_v15 = vadd.f32 %v9344_v52, %v5387_v13  ;;  %v4365_v16 = vpop.f32.mrb[225].mxu0  ;;  %v5389_v17 = vpop.f32.mrb[225].mxu1 }
 0x300   : > { %v4366_v20 = vpop.f32.mrb[226].mxu0  ;;  %v5390_v21 = vpop.f32.mrb[226].mxu1 }
 0x301   : > { %6075 = vst.msk [vmem:[%s8574_s25 + $0x380] sm:$0xff] %vm5962_vm3, %v4364_v14  ;;  %6331 = vst.msk [vmem:[%s8574_s25 + $0xb80] sm:$0xff] %vm5962_vm3, %v5388_v15  ;;  %v4367_v25 = vadd.f32 %v9344_v52, %v4366_v20  ;;  %v5391_v26 = vadd.f32 %v9344_v52, %v5390_v21  ;;  %v4368_v27 = vpop.f32.mrb[227].mxu0  ;;  %v5392_v28 = vpop.f32.mrb[227].mxu1  ;;  %v7937_v20 = vld [vmem:[%s8385_s20 + $0xd70] ss:$8 sps:$4 sm:$0xff]  }
 0x303   : > { %6076 = vst.msk [vmem:[%s8574_s25 + $0x388] sm:$0xff] %vm5962_vm3, %v4367_v25  ;;  %6332 = vst.msk [vmem:[%s8574_s25 + $0xb88] sm:$0xff] %vm5962_vm3, %v5391_v26  ;;  %4578 = vmatmul.mubr.bf16.gmra.mrb[76].mxu0 %v7910_v18  ;;  %5602 = vmatmul.mubr.bf16.gmra.mrb[76].mxu1 %v7913_v19  ;;  %v7934_v19 = vld [vmem:[%s8385_s20 + $0x570] ss:$8 sps:$4 sm:$0xff]   ;;  %v7945_v25 = vld [vmem:[%s8385_s20 + $0xd84] ss:$8 sps:$4 sm:$0xff]  }
 0x304   : > { %7174 = vmatprep.mubr.msk.bf16.mxu0 %vm3105_vm0, %v7918_v23  ;;  %7302 = vmatprep.mubr.msk.bf16.mxu1 %vm3105_vm0, %v7921_v24  ;;  %v7942_v24 = vld [vmem:[%s8385_s20 + $0x584] ss:$8 sps:$4 sm:$0xff]  }
 0x306   : > { %v4371_v29 = vpop.f32.mrb[228].mxu0  ;;  %v5395_v30 = vpop.f32.mrb[228].mxu1 }
 0x307   : > { %v4372_v31 = vadd.f32 %v9344_v52, %v4371_v29  ;;  %v5396_v61 = vadd.f32 %v9344_v52, %v5395_v30  ;;  %v4373_v32 = vpop.f32.mrb[229].mxu0  ;;  %v5397_v33 = vpop.f32.mrb[229].mxu1 }
 0x308   : > { %v4374_v36 = vpop.f32.mrb[230].mxu0  ;;  %v5398_v37 = vpop.f32.mrb[230].mxu1 }
 0x309   : > { %6077 = vst.msk [vmem:[%s8574_s25 + $0x390] sm:$0xff] %vm5962_vm3, %v4372_v31  ;;  %6333 = vst.msk [vmem:[%s8574_s25 + $0xb90] sm:$0xff] %vm5962_vm3, %v5396_v61  ;;  %v4375_v40 = vadd.f32 %v9344_v52, %v4374_v36  ;;  %v5399_v41 = vadd.f32 %v9344_v52, %v5398_v37  ;;  %v4376_v42 = vpop.f32.mrb[231].mxu0  ;;  %v5400_v43 = vpop.f32.mrb[231].mxu1  ;;  %v7943_v36 = vld [vmem:[%s8385_s20 + $0xd80] ss:$8 sps:$4 sm:$0xff]  }
 0x30b   : > { %6078 = vst.msk [vmem:[%s8574_s25 + $0x398] sm:$0xff] %vm5962_vm3, %v4375_v40  ;;  %6334 = vst.msk [vmem:[%s8574_s25 + $0xb98] sm:$0xff] %vm5962_vm3, %v5399_v41  ;;  %4586 = vmatmul.mubr.bf16.gmra.mrb[80].mxu0 %v7916_v34  ;;  %5610 = vmatmul.mubr.bf16.gmra.mrb[80].mxu1 %v7919_v35  ;;  %v7940_v35 = vld [vmem:[%s8385_s20 + $0x580] ss:$8 sps:$4 sm:$0xff]   ;;  %v7951_v40 = vld [vmem:[%s8385_s20 + $0xd94] ss:$8 sps:$4 sm:$0xff]  }
 0x30c   : > { %7175 = vmatprep.mubr.msk.bf16.mxu0 %vm3105_vm0, %v7924_v38  ;;  %7303 = vmatprep.mubr.msk.bf16.mxu1 %vm3105_vm0, %v7927_v39  ;;  %v7948_v39 = vld [vmem:[%s8385_s20 + $0x594] ss:$8 sps:$4 sm:$0xff]  }
 0x30e   : > { %v4379_v44 = vpop.f32.mrb[232].mxu0  ;;  %v5403_v45 = vpop.f32.mrb[232].mxu1 }
 0x30f   : > { %v4380_v46 = vadd.f32 %v9344_v52, %v4379_v44  ;;  %v5404_v47 = vadd.f32 %v9344_v52, %v5403_v45  ;;  %v4381_v48 = vpop.f32.mrb[233].mxu0  ;;  %v5405_v49 = vpop.f32.mrb[233].mxu1 }
 0x310   : > { %v4382_v53 = vpop.f32.mrb[234].mxu0  ;;  %v5406_v22 = vpop.f32.mrb[234].mxu1 }
 0x311   : > { %6079 = vst.msk [vmem:[%s8574_s25 + $0x3a0] sm:$0xff] %vm5962_vm3, %v4380_v46  ;;  %6335 = vst.msk [vmem:[%s8574_s25 + $0xba0] sm:$0xff] %vm5962_vm3, %v5404_v47  ;;  %v4383_v56 = vadd.f32 %v9344_v52, %v4382_v53  ;;  %v5407_v57 = vadd.f32 %v9344_v52, %v5406_v22  ;;  %v4384_v58 = vpop.f32.mrb[235].mxu0  ;;  %v5408_v59 = vpop.f32.mrb[235].mxu1  ;;  %v7949_v53 = vld [vmem:[%s8385_s20 + $0xd90] ss:$8 sps:$4 sm:$0xff]  }
 0x313   : > { %6080 = vst.msk [vmem:[%s8574_s25 + $0x3a8] sm:$0xff] %vm5962_vm3, %v4383_v56  ;;  %6336 = vst.msk [vmem:[%s8574_s25 + $0xba8] sm:$0xff] %vm5962_vm3, %v5407_v57  ;;  %4594 = vmatmul.mubr.bf16.gmra.mrb[84].mxu0 %v7922_v50  ;;  %5618 = vmatmul.mubr.bf16.gmra.mrb[84].mxu1 %v7925_v51  ;;  %v7946_v51 = vld [vmem:[%s8385_s20 + $0x590] ss:$8 sps:$4 sm:$0xff]   ;;  %v7957_v56 = vld [vmem:[%s8385_s20 + $0xda4] ss:$8 sps:$4 sm:$0xff]  }
 0x314   : > { %7176 = vmatprep.mubr.msk.bf16.mxu0 %vm3105_vm0, %v7930_v54  ;;  %7304 = vmatprep.mubr.msk.bf16.mxu1 %vm3105_vm0, %v7933_v55  ;;  %v7954_v55 = vld [vmem:[%s8385_s20 + $0x5a4] ss:$8 sps:$4 sm:$0xff]  }
 0x316   : > { %v4387_v60 = vpop.f32.mrb[236].mxu0  ;;  %v5411_v62 = vpop.f32.mrb[236].mxu1 }
 0x317   : > { %v4388_v63 = vadd.f32 %v9344_v52, %v4387_v60  ;;  %v5412_v0 = vadd.f32 %v9344_v52, %v5411_v62  ;;  %v4389_v1 = vpop.f32.mrb[237].mxu0  ;;  %v5413_v2 = vpop.f32.mrb[237].mxu1 }
 0x318   : > { %v4390_v5 = vpop.f32.mrb[238].mxu0  ;;  %v5414_v6 = vpop.f32.mrb[238].mxu1 }
 0x319   : > { %6081 = vst.msk [vmem:[%s8574_s25 + $0x3b0] sm:$0xff] %vm5962_vm3, %v4388_v63  ;;  %6337 = vst.msk [vmem:[%s8574_s25 + $0xbb0] sm:$0xff] %vm5962_vm3, %v5412_v0  ;;  %v4391_v9 = vadd.f32 %v9344_v52, %v4390_v5  ;;  %v5415_v10 = vadd.f32 %v9344_v52, %v5414_v6  ;;  %v4392_v11 = vpop.f32.mrb[239].mxu0  ;;  %v5416_v12 = vpop.f32.mrb[239].mxu1  ;;  %v7955_v5 = vld [vmem:[%s8385_s20 + $0xda0] ss:$8 sps:$4 sm:$0xff]  }
 0x31b   : > { %6082 = vst.msk [vmem:[%s8574_s25 + $0x3b8] sm:$0xff] %vm5962_vm3, %v4391_v9  ;;  %6338 = vst.msk [vmem:[%s8574_s25 + $0xbb8] sm:$0xff] %vm5962_vm3, %v5415_v10  ;;  %4602 = vmatmul.mubr.bf16.gmra.mrb[88].mxu0 %v7928_v3  ;;  %5626 = vmatmul.mubr.bf16.gmra.mrb[88].mxu1 %v7931_v4  ;;  %v7952_v4 = vld [vmem:[%s8385_s20 + $0x5a0] ss:$8 sps:$4 sm:$0xff]   ;;  %v7963_v9 = vld [vmem:[%s8385_s20 + $0xdb4] ss:$8 sps:$4 sm:$0xff]  }
 0x31c   : > { %7177 = vmatprep.mubr.msk.bf16.mxu0 %vm3105_vm0, %v7936_v7  ;;  %7305 = vmatprep.mubr.msk.bf16.mxu1 %vm3105_vm0, %v7939_v8  ;;  %v7960_v8 = vld [vmem:[%s8385_s20 + $0x5b4] ss:$8 sps:$4 sm:$0xff]  }
 0x31e   : > { %v4395_v13 = vpop.f32.mrb[240].mxu0  ;;  %v5419_v14 = vpop.f32.mrb[240].mxu1 }
 0x31f   : > { %v4396_v15 = vadd.f32 %v9344_v52, %v4395_v13  ;;  %v5420_v16 = vadd.f32 %v9344_v52, %v5419_v14  ;;  %v4397_v17 = vpop.f32.mrb[241].mxu0  ;;  %v5421_v18 = vpop.f32.mrb[241].mxu1 }
 0x320   : > { %v4398_v21 = vpop.f32.mrb[242].mxu0  ;;  %v5422_v23 = vpop.f32.mrb[242].mxu1 }
 0x321   : > { %6083 = vst.msk [vmem:[%s8574_s25 + $0x3c0] sm:$0xff] %vm5962_vm3, %v4396_v15  ;;  %6339 = vst.msk [vmem:[%s8574_s25 + $0xbc0] sm:$0xff] %vm5962_vm3, %v5420_v16  ;;  %v4399_v26 = vadd.f32 %v9344_v52, %v4398_v21  ;;  %v5423_v27 = vadd.f32 %v9344_v52, %v5422_v23  ;;  %v4400_v28 = vpop.f32.mrb[243].mxu0  ;;  %v5424_v29 = vpop.f32.mrb[243].mxu1  ;;  %v9732_v15 = vld [vmem:[#allocation4] ss:$0 sm:$0xff] }
 0x322   : > { %v7961_v21 = vld [vmem:[%s8385_s20 + $0xdb0] ss:$8 sps:$4 sm:$0xff]  }
 0x323   : > { %6084 = vst.msk [vmem:[%s8574_s25 + $0x3c8] sm:$0xff] %vm5962_vm3, %v4399_v26  ;;  %6340 = vst.msk [vmem:[%s8574_s25 + $0xbc8] sm:$0xff] %vm5962_vm3, %v5423_v27  ;;  %4610 = vmatmul.mubr.bf16.gmra.mrb[92].mxu0 %v7934_v19  ;;  %5634 = vmatmul.mubr.bf16.gmra.mrb[92].mxu1 %v7937_v20  ;;  %v7958_v20 = vld [vmem:[%s8385_s20 + $0x5b0] ss:$8 sps:$4 sm:$0xff]   ;;  %v7969_v26 = vld [vmem:[%s8385_s20 + $0xdc4] ss:$8 sps:$4 sm:$0xff]  }
 0x324   : > { %7178 = vmatprep.mubr.msk.bf16.mxu0 %vm3105_vm0, %v7942_v24  ;;  %7306 = vmatprep.mubr.msk.bf16.mxu1 %vm3105_vm0, %v7945_v25  ;;  %v7966_v25 = vld [vmem:[%s8385_s20 + $0x5c4] ss:$8 sps:$4 sm:$0xff]  }
 0x326   : > { %v4403_v30 = vpop.f32.mrb[244].mxu0  ;;  %v5427_v31 = vpop.f32.mrb[244].mxu1 }
 0x327   : > { %v4404_v61 = vadd.f32 %v9344_v52, %v4403_v30  ;;  %v5428_v32 = vadd.f32 %v9344_v52, %v5427_v31  ;;  %v4405_v33 = vpop.f32.mrb[245].mxu0  ;;  %v5429_v34 = vpop.f32.mrb[245].mxu1 }
 0x328   : > { %v4406_v37 = vpop.f32.mrb[246].mxu0  ;;  %v5430_v38 = vpop.f32.mrb[246].mxu1 }
 0x329   : > { %6085 = vst.msk [vmem:[%s8574_s25 + $0x3d0] sm:$0xff] %vm5962_vm3, %v4404_v61  ;;  %6341 = vst.msk [vmem:[%s8574_s25 + $0xbd0] sm:$0xff] %vm5962_vm3, %v5428_v32  ;;  %v4407_v41 = vadd.f32 %v9344_v52, %v4406_v37  ;;  %v5431_v42 = vadd.f32 %v9344_v52, %v5430_v38  ;;  %v4408_v43 = vpop.f32.mrb[247].mxu0  ;;  %v5432_v44 = vpop.f32.mrb[247].mxu1  ;;  %v7967_v37 = vld [vmem:[%s8385_s20 + $0xdc0] ss:$8 sps:$4 sm:$0xff]  }
 0x32b   : > { %6086 = vst.msk [vmem:[%s8574_s25 + $0x3d8] sm:$0xff] %vm5962_vm3, %v4407_v41  ;;  %6342 = vst.msk [vmem:[%s8574_s25 + $0xbd8] sm:$0xff] %vm5962_vm3, %v5431_v42  ;;  %4618 = vmatmul.mubr.bf16.gmra.mrb[96].mxu0 %v7940_v35  ;;  %5642 = vmatmul.mubr.bf16.gmra.mrb[96].mxu1 %v7943_v36  ;;  %v7964_v36 = vld [vmem:[%s8385_s20 + $0x5c0] ss:$8 sps:$4 sm:$0xff]   ;;  %v7975_v41 = vld [vmem:[%s8385_s20 + $0xdd4] ss:$8 sps:$4 sm:$0xff]  }
 0x32c   : > { %7179 = vmatprep.mubr.msk.bf16.mxu0 %vm3105_vm0, %v7948_v39  ;;  %7307 = vmatprep.mubr.msk.bf16.mxu1 %vm3105_vm0, %v7951_v40  ;;  %v7972_v40 = vld [vmem:[%s8385_s20 + $0x5d4] ss:$8 sps:$4 sm:$0xff]  }
 0x32e   : > { %v4411_v45 = vpop.f32.mrb[248].mxu0  ;;  %v5435_v46 = vpop.f32.mrb[248].mxu1 }
 0x32f   : > { %v4412_v47 = vadd.f32 %v9344_v52, %v4411_v45  ;;  %v5436_v48 = vadd.f32 %v9344_v52, %v5435_v46  ;;  %v4413_v49 = vpop.f32.mrb[249].mxu0  ;;  %v5437_v50 = vpop.f32.mrb[249].mxu1 }
 0x330   : > { %v4414_v22 = vpop.f32.mrb[250].mxu0  ;;  %v5438_v54 = vpop.f32.mrb[250].mxu1 }
 0x331   : > { %6087 = vst.msk [vmem:[%s8574_s25 + $0x3e0] sm:$0xff] %vm5962_vm3, %v4412_v47  ;;  %6343 = vst.msk [vmem:[%s8574_s25 + $0xbe0] sm:$0xff] %vm5962_vm3, %v5436_v48  ;;  %v4415_v57 = vadd.f32 %v9344_v52, %v4414_v22  ;;  %v5439_v58 = vadd.f32 %v9344_v52, %v5438_v54  ;;  %v4416_v59 = vpop.f32.mrb[251].mxu0  ;;  %v5440_v60 = vpop.f32.mrb[251].mxu1  ;;  %v7973_v22 = vld [vmem:[%s8385_s20 + $0xdd0] ss:$8 sps:$4 sm:$0xff]  }
 0x333   : > { %6088 = vst.msk [vmem:[%s8574_s25 + $0x3e8] sm:$0xff] %vm5962_vm3, %v4415_v57  ;;  %6344 = vst.msk [vmem:[%s8574_s25 + $0xbe8] sm:$0xff] %vm5962_vm3, %v5439_v58  ;;  %4626 = vmatmul.mubr.bf16.gmra.mrb[100].mxu0 %v7946_v51  ;;  %5650 = vmatmul.mubr.bf16.gmra.mrb[100].mxu1 %v7949_v53  ;;  %v7970_v53 = vld [vmem:[%s8385_s20 + $0x5d0] ss:$8 sps:$4 sm:$0xff]   ;;  %v7981_v57 = vld [vmem:[%s8385_s20 + $0xde4] ss:$8 sps:$4 sm:$0xff]  }
 0x334   : > { %7180 = vmatprep.mubr.msk.bf16.mxu0 %vm3105_vm0, %v7954_v55  ;;  %7308 = vmatprep.mubr.msk.bf16.mxu1 %vm3105_vm0, %v7957_v56  ;;  %v7978_v56 = vld [vmem:[%s8385_s20 + $0x5e4] ss:$8 sps:$4 sm:$0xff]  }
 0x336   : > { %v4419_v62 = vpop.f32.mrb[252].mxu0  ;;  %v5443_v63 = vpop.f32.mrb[252].mxu1 }
 0x337   : > { %v4420_v0 = vadd.f32 %v9344_v52, %v4419_v62  ;;  %v5444_v1 = vadd.f32 %v9344_v52, %v5443_v63  ;;  %v4421_v2 = vpop.f32.mrb[253].mxu0  ;;  %v5445_v3 = vpop.f32.mrb[253].mxu1 }
 0x338   : > { %v4422_v6 = vpop.f32.mrb[254].mxu0  ;;  %v5446_v7 = vpop.f32.mrb[254].mxu1 }
 0x339   : > { %6089 = vst.msk [vmem:[%s8574_s25 + $0x3f0] sm:$0xff] %vm5962_vm3, %v4420_v0  ;;  %6345 = vst.msk [vmem:[%s8574_s25 + $0xbf0] sm:$0xff] %vm5962_vm3, %v5444_v1  ;;  %v4423_v10 = vadd.f32 %v9344_v52, %v4422_v6  ;;  %v5447_v11 = vadd.f32 %v9344_v52, %v5446_v7  ;;  %v4424_v12 = vpop.f32.mrb[255].mxu0  ;;  %v5448_v13 = vpop.f32.mrb[255].mxu1  ;;  %v7979_v6 = vld [vmem:[%s8385_s20 + $0xde0] ss:$8 sps:$4 sm:$0xff]  }
 0x33b   : > { %6090 = vst.msk [vmem:[%s8574_s25 + $0x3f8] sm:$0xff] %vm5962_vm3, %v4423_v10  ;;  %6346 = vst.msk [vmem:[%s8574_s25 + $0xbf8] sm:$0xff] %vm5962_vm3, %v5447_v11  ;;  %4634 = vmatmul.mubr.bf16.gmra.mrb[104].mxu0 %v7952_v4  ;;  %5658 = vmatmul.mubr.bf16.gmra.mrb[104].mxu1 %v7955_v5  ;;  %v7976_v5 = vld [vmem:[%s8385_s20 + $0x5e0] ss:$8 sps:$4 sm:$0xff]   ;;  %v7987_v10 = vld [vmem:[%s8385_s20 + $0xdf4] ss:$8 sps:$4 sm:$0xff]  }
 0x33c   : > { %7181 = vmatprep.mubr.msk.bf16.mxu0 %vm3105_vm0, %v7960_v8  ;;  %7309 = vmatprep.mubr.msk.bf16.mxu1 %vm3105_vm0, %v7963_v9  ;;  %v7984_v9 = vld [vmem:[%s8385_s20 + $0x5f4] ss:$8 sps:$4 sm:$0xff]  }
 0x33e   : > { %v4427_v14 = vpop.f32.mrb[0].mxu0  ;;  %v5451_v52 = vpop.f32.mrb[0].mxu1 }
 0x33f   : > { %v4428_v16 = vadd.f32 %v9732_v15, %v4427_v14  ;;  %v5452_v17 = vadd.f32 %v9732_v15, %v5451_v52  ;;  %v4429_v18 = vpop.f32.mrb[1].mxu0  ;;  %v5453_v19 = vpop.f32.mrb[1].mxu1 }
 0x340   : > { %v4430_v23 = vpop.f32.mrb[2].mxu0  ;;  %v5454_v24 = vpop.f32.mrb[2].mxu1 }
 0x341   : > { %6091 = vst.msk [vmem:[%s8574_s25 + $0x400] sm:$0xff] %vm5962_vm3, %v4428_v16  ;;  %6347 = vst.msk [vmem:[%s8574_s25 + $0xc00] sm:$0xff] %vm5962_vm3, %v5452_v17  ;;  %v4431_v27 = vadd.f32 %v9732_v15, %v4430_v23  ;;  %v5455_v28 = vadd.f32 %v9732_v15, %v5454_v24  ;;  %v4432_v29 = vpop.f32.mrb[3].mxu0  ;;  %v5456_v30 = vpop.f32.mrb[3].mxu1  ;;  %v7985_v23 = vld [vmem:[%s8385_s20 + $0xdf0] ss:$8 sps:$4 sm:$0xff]  }
 0x343   : > { %6092 = vst.msk [vmem:[%s8574_s25 + $0x408] sm:$0xff] %vm5962_vm3, %v4431_v27  ;;  %6348 = vst.msk [vmem:[%s8574_s25 + $0xc08] sm:$0xff] %vm5962_vm3, %v5455_v28  ;;  %4642 = vmatmul.mubr.bf16.gmra.mrb[108].mxu0 %v7958_v20  ;;  %5666 = vmatmul.mubr.bf16.gmra.mrb[108].mxu1 %v7961_v21  ;;  %v7982_v21 = vld [vmem:[%s8385_s20 + $0x5f0] ss:$8 sps:$4 sm:$0xff]   ;;  %v7993_v27 = vld [vmem:[%s8385_s20 + $0xe04] ss:$8 sps:$4 sm:$0xff]  }
 0x344   : > { %7182 = vmatprep.mubr.msk.bf16.mxu0 %vm3105_vm0, %v7966_v25  ;;  %7310 = vmatprep.mubr.msk.bf16.mxu1 %vm3105_vm0, %v7969_v26  ;;  %v7990_v26 = vld [vmem:[%s8385_s20 + $0x604] ss:$8 sps:$4 sm:$0xff]  }
 0x346   : > { %v4435_v31 = vpop.f32.mrb[4].mxu0  ;;  %v5459_v61 = vpop.f32.mrb[4].mxu1 }
 0x347   : > { %v4436_v32 = vadd.f32 %v9732_v15, %v4435_v31  ;;  %v5460_v33 = vadd.f32 %v9732_v15, %v5459_v61  ;;  %v4437_v34 = vpop.f32.mrb[5].mxu0  ;;  %v5461_v35 = vpop.f32.mrb[5].mxu1 }
 0x348   : > { %v4438_v38 = vpop.f32.mrb[6].mxu0  ;;  %v5462_v39 = vpop.f32.mrb[6].mxu1 }
 0x349   : > { %6093 = vst.msk [vmem:[%s8574_s25 + $0x410] sm:$0xff] %vm5962_vm3, %v4436_v32  ;;  %6349 = vst.msk [vmem:[%s8574_s25 + $0xc10] sm:$0xff] %vm5962_vm3, %v5460_v33  ;;  %v4439_v42 = vadd.f32 %v9732_v15, %v4438_v38  ;;  %v5463_v43 = vadd.f32 %v9732_v15, %v5462_v39  ;;  %v4440_v44 = vpop.f32.mrb[7].mxu0  ;;  %v5464_v45 = vpop.f32.mrb[7].mxu1  ;;  %v7991_v38 = vld [vmem:[%s8385_s20 + $0xe00] ss:$8 sps:$4 sm:$0xff]  }
 0x34b   : > { %6094 = vst.msk [vmem:[%s8574_s25 + $0x418] sm:$0xff] %vm5962_vm3, %v4439_v42  ;;  %6350 = vst.msk [vmem:[%s8574_s25 + $0xc18] sm:$0xff] %vm5962_vm3, %v5463_v43  ;;  %4650 = vmatmul.mubr.bf16.gmra.mrb[112].mxu0 %v7964_v36  ;;  %5674 = vmatmul.mubr.bf16.gmra.mrb[112].mxu1 %v7967_v37  ;;  %v7988_v37 = vld [vmem:[%s8385_s20 + $0x600] ss:$8 sps:$4 sm:$0xff]   ;;  %v7999_v42 = vld [vmem:[%s8385_s20 + $0xe14] ss:$8 sps:$4 sm:$0xff]  }
 0x34c   : > { %7183 = vmatprep.mubr.msk.bf16.mxu0 %vm3105_vm0, %v7972_v40  ;;  %7311 = vmatprep.mubr.msk.bf16.mxu1 %vm3105_vm0, %v7975_v41  ;;  %v7996_v41 = vld [vmem:[%s8385_s20 + $0x614] ss:$8 sps:$4 sm:$0xff]  }
 0x34e   : > { %v4443_v46 = vpop.f32.mrb[8].mxu0  ;;  %v5467_v47 = vpop.f32.mrb[8].mxu1 }
 0x34f   : > { %v4444_v48 = vadd.f32 %v9732_v15, %v4443_v46  ;;  %v5468_v49 = vadd.f32 %v9732_v15, %v5467_v47  ;;  %v4445_v50 = vpop.f32.mrb[9].mxu0  ;;  %v5469_v51 = vpop.f32.mrb[9].mxu1 }
 0x350   : > { %v4446_v54 = vpop.f32.mrb[10].mxu0  ;;  %v5470_v55 = vpop.f32.mrb[10].mxu1 }
 0x351   : > { %6095 = vst.msk [vmem:[%s8574_s25 + $0x420] sm:$0xff] %vm5962_vm3, %v4444_v48  ;;  %6351 = vst.msk [vmem:[%s8574_s25 + $0xc20] sm:$0xff] %vm5962_vm3, %v5468_v49  ;;  %v4447_v58 = vadd.f32 %v9732_v15, %v4446_v54  ;;  %v5471_v59 = vadd.f32 %v9732_v15, %v5470_v55  ;;  %v4448_v60 = vpop.f32.mrb[11].mxu0  ;;  %v5472_v62 = vpop.f32.mrb[11].mxu1  ;;  %v7997_v54 = vld [vmem:[%s8385_s20 + $0xe10] ss:$8 sps:$4 sm:$0xff]  }
 0x353   : > { %6096 = vst.msk [vmem:[%s8574_s25 + $0x428] sm:$0xff] %vm5962_vm3, %v4447_v58  ;;  %6352 = vst.msk [vmem:[%s8574_s25 + $0xc28] sm:$0xff] %vm5962_vm3, %v5471_v59  ;;  %4658 = vmatmul.mubr.bf16.gmra.mrb[116].mxu0 %v7970_v53  ;;  %5682 = vmatmul.mubr.bf16.gmra.mrb[116].mxu1 %v7973_v22  ;;  %v7994_v22 = vld [vmem:[%s8385_s20 + $0x610] ss:$8 sps:$4 sm:$0xff]   ;;  %v8005_v58 = vld [vmem:[%s8385_s20 + $0xe24] ss:$8 sps:$4 sm:$0xff]  }
 0x354   : > { %7184 = vmatprep.mubr.msk.bf16.mxu0 %vm3105_vm0, %v7978_v56  ;;  %7312 = vmatprep.mubr.msk.bf16.mxu1 %vm3105_vm0, %v7981_v57  ;;  %v8002_v57 = vld [vmem:[%s8385_s20 + $0x624] ss:$8 sps:$4 sm:$0xff]  }
 0x356   : > { %v4451_v63 = vpop.f32.mrb[12].mxu0  ;;  %v5475_v0 = vpop.f32.mrb[12].mxu1 }
 0x357   : > { %v4452_v1 = vadd.f32 %v9732_v15, %v4451_v63  ;;  %v5476_v2 = vadd.f32 %v9732_v15, %v5475_v0  ;;  %v4453_v3 = vpop.f32.mrb[13].mxu0  ;;  %v5477_v4 = vpop.f32.mrb[13].mxu1 }
 0x358   : > { %v4454_v7 = vpop.f32.mrb[14].mxu0  ;;  %v5478_v8 = vpop.f32.mrb[14].mxu1 }
 0x359   : > { %6097 = vst.msk [vmem:[%s8574_s25 + $0x430] sm:$0xff] %vm5962_vm3, %v4452_v1  ;;  %6353 = vst.msk [vmem:[%s8574_s25 + $0xc30] sm:$0xff] %vm5962_vm3, %v5476_v2  ;;  %v4455_v11 = vadd.f32 %v9732_v15, %v4454_v7  ;;  %v5479_v12 = vadd.f32 %v9732_v15, %v5478_v8  ;;  %v4456_v13 = vpop.f32.mrb[15].mxu0  ;;  %v5480_v14 = vpop.f32.mrb[15].mxu1  ;;  %v8003_v7 = vld [vmem:[%s8385_s20 + $0xe20] ss:$8 sps:$4 sm:$0xff]  }
 0x35b   : > { %6098 = vst.msk [vmem:[%s8574_s25 + $0x438] sm:$0xff] %vm5962_vm3, %v4455_v11  ;;  %6354 = vst.msk [vmem:[%s8574_s25 + $0xc38] sm:$0xff] %vm5962_vm3, %v5479_v12  ;;  %4666 = vmatmul.mubr.bf16.gmra.mrb[120].mxu0 %v7976_v5  ;;  %5690 = vmatmul.mubr.bf16.gmra.mrb[120].mxu1 %v7979_v6  ;;  %v8000_v6 = vld [vmem:[%s8385_s20 + $0x620] ss:$8 sps:$4 sm:$0xff]   ;;  %v8011_v11 = vld [vmem:[%s8385_s20 + $0xe34] ss:$8 sps:$4 sm:$0xff]  }
 0x35c   : > { %7185 = vmatprep.mubr.msk.bf16.mxu0 %vm3105_vm0, %v7984_v9  ;;  %7313 = vmatprep.mubr.msk.bf16.mxu1 %vm3105_vm0, %v7987_v10  ;;  %v8008_v10 = vld [vmem:[%s8385_s20 + $0x634] ss:$8 sps:$4 sm:$0xff]  }
 0x35e   : > { %v4459_v52 = vpop.f32.mrb[16].mxu0  ;;  %v5483_v16 = vpop.f32.mrb[16].mxu1 }
 0x35f   : > { %v4460_v17 = vadd.f32 %v9732_v15, %v4459_v52  ;;  %v5484_v18 = vadd.f32 %v9732_v15, %v5483_v16  ;;  %v4461_v19 = vpop.f32.mrb[17].mxu0  ;;  %v5485_v20 = vpop.f32.mrb[17].mxu1 }
 0x360   : > { %v4462_v24 = vpop.f32.mrb[18].mxu0  ;;  %v5486_v25 = vpop.f32.mrb[18].mxu1 }
 0x361   : > { %6099 = vst.msk [vmem:[%s8574_s25 + $0x440] sm:$0xff] %vm5962_vm3, %v4460_v17  ;;  %6355 = vst.msk [vmem:[%s8574_s25 + $0xc40] sm:$0xff] %vm5962_vm3, %v5484_v18  ;;  %v4463_v28 = vadd.f32 %v9732_v15, %v4462_v24  ;;  %v5487_v29 = vadd.f32 %v9732_v15, %v5486_v25  ;;  %v4464_v30 = vpop.f32.mrb[19].mxu0  ;;  %v5488_v31 = vpop.f32.mrb[19].mxu1  ;;  %v8009_v24 = vld [vmem:[%s8385_s20 + $0xe30] ss:$8 sps:$4 sm:$0xff]  }
 0x363   : > { %6100 = vst.msk [vmem:[%s8574_s25 + $0x448] sm:$0xff] %vm5962_vm3, %v4463_v28  ;;  %6356 = vst.msk [vmem:[%s8574_s25 + $0xc48] sm:$0xff] %vm5962_vm3, %v5487_v29  ;;  %4674 = vmatmul.mubr.bf16.gmra.mrb[124].mxu0 %v7982_v21  ;;  %5698 = vmatmul.mubr.bf16.gmra.mrb[124].mxu1 %v7985_v23  ;;  %v8006_v23 = vld [vmem:[%s8385_s20 + $0x630] ss:$8 sps:$4 sm:$0xff]   ;;  %v8017_v28 = vld [vmem:[%s8385_s20 + $0xe44] ss:$8 sps:$4 sm:$0xff]  }
 0x364   : > { %7186 = vmatprep.mubr.msk.bf16.mxu0 %vm3105_vm0, %v7990_v26  ;;  %7314 = vmatprep.mubr.msk.bf16.mxu1 %vm3105_vm0, %v7993_v27  ;;  %v8014_v27 = vld [vmem:[%s8385_s20 + $0x644] ss:$8 sps:$4 sm:$0xff]  }
 0x366   : > { %v4467_v61 = vpop.f32.mrb[20].mxu0  ;;  %v5491_v32 = vpop.f32.mrb[20].mxu1 }
 0x367   : > { %v4468_v33 = vadd.f32 %v9732_v15, %v4467_v61  ;;  %v5492_v34 = vadd.f32 %v9732_v15, %v5491_v32  ;;  %v4469_v35 = vpop.f32.mrb[21].mxu0  ;;  %v5493_v36 = vpop.f32.mrb[21].mxu1 }
 0x368   : > { %v4470_v39 = vpop.f32.mrb[22].mxu0  ;;  %v5494_v40 = vpop.f32.mrb[22].mxu1 }
 0x369   : > { %6101 = vst.msk [vmem:[%s8574_s25 + $0x450] sm:$0xff] %vm5962_vm3, %v4468_v33  ;;  %6357 = vst.msk [vmem:[%s8574_s25 + $0xc50] sm:$0xff] %vm5962_vm3, %v5492_v34  ;;  %v4471_v43 = vadd.f32 %v9732_v15, %v4470_v39  ;;  %v5495_v44 = vadd.f32 %v9732_v15, %v5494_v40  ;;  %v4472_v45 = vpop.f32.mrb[23].mxu0  ;;  %v5496_v46 = vpop.f32.mrb[23].mxu1  ;;  %v8015_v39 = vld [vmem:[%s8385_s20 + $0xe40] ss:$8 sps:$4 sm:$0xff]  }
 0x36b   : > { %6102 = vst.msk [vmem:[%s8574_s25 + $0x458] sm:$0xff] %vm5962_vm3, %v4471_v43  ;;  %6358 = vst.msk [vmem:[%s8574_s25 + $0xc58] sm:$0xff] %vm5962_vm3, %v5495_v44  ;;  %4682 = vmatmul.mubr.bf16.gmra.mrb[128].mxu0 %v7988_v37  ;;  %5706 = vmatmul.mubr.bf16.gmra.mrb[128].mxu1 %v7991_v38  ;;  %v8012_v38 = vld [vmem:[%s8385_s20 + $0x640] ss:$8 sps:$4 sm:$0xff]   ;;  %v8023_v43 = vld [vmem:[%s8385_s20 + $0xe54] ss:$8 sps:$4 sm:$0xff]  }
 0x36c   : > { %7187 = vmatprep.mubr.msk.bf16.mxu0 %vm3105_vm0, %v7996_v41  ;;  %7315 = vmatprep.mubr.msk.bf16.mxu1 %vm3105_vm0, %v7999_v42  ;;  %v8020_v42 = vld [vmem:[%s8385_s20 + $0x654] ss:$8 sps:$4 sm:$0xff]  }
 0x36e   : > { %v4475_v47 = vpop.f32.mrb[24].mxu0  ;;  %v5499_v48 = vpop.f32.mrb[24].mxu1 }
 0x36f   : > { %v4476_v49 = vadd.f32 %v9732_v15, %v4475_v47  ;;  %v5500_v50 = vadd.f32 %v9732_v15, %v5499_v48  ;;  %v4477_v51 = vpop.f32.mrb[25].mxu0  ;;  %v5501_v53 = vpop.f32.mrb[25].mxu1 }
 0x370   : > { %v4478_v55 = vpop.f32.mrb[26].mxu0  ;;  %v5502_v56 = vpop.f32.mrb[26].mxu1 }
 0x371   : > { %6103 = vst.msk [vmem:[%s8574_s25 + $0x460] sm:$0xff] %vm5962_vm3, %v4476_v49  ;;  %6359 = vst.msk [vmem:[%s8574_s25 + $0xc60] sm:$0xff] %vm5962_vm3, %v5500_v50  ;;  %v4479_v59 = vadd.f32 %v9732_v15, %v4478_v55  ;;  %v5503_v60 = vadd.f32 %v9732_v15, %v5502_v56  ;;  %v4480_v62 = vpop.f32.mrb[27].mxu0  ;;  %v5504_v63 = vpop.f32.mrb[27].mxu1  ;;  %v8021_v55 = vld [vmem:[%s8385_s20 + $0xe50] ss:$8 sps:$4 sm:$0xff]  }
 0x373   : > { %6104 = vst.msk [vmem:[%s8574_s25 + $0x468] sm:$0xff] %vm5962_vm3, %v4479_v59  ;;  %6360 = vst.msk [vmem:[%s8574_s25 + $0xc68] sm:$0xff] %vm5962_vm3, %v5503_v60  ;;  %4690 = vmatmul.mubr.bf16.gmra.mrb[132].mxu0 %v7994_v22  ;;  %5714 = vmatmul.mubr.bf16.gmra.mrb[132].mxu1 %v7997_v54  ;;  %v8018_v54 = vld [vmem:[%s8385_s20 + $0x650] ss:$8 sps:$4 sm:$0xff]   ;;  %v8029_v59 = vld [vmem:[%s8385_s20 + $0xe64] ss:$8 sps:$4 sm:$0xff]  }
 0x374   : > { %7188 = vmatprep.mubr.msk.bf16.mxu0 %vm3105_vm0, %v8002_v57  ;;  %7316 = vmatprep.mubr.msk.bf16.mxu1 %vm3105_vm0, %v8005_v58  ;;  %v8026_v58 = vld [vmem:[%s8385_s20 + $0x664] ss:$8 sps:$4 sm:$0xff]  }
 0x376   : > { %v4483_v0 = vpop.f32.mrb[28].mxu0  ;;  %v5507_v1 = vpop.f32.mrb[28].mxu1 }
 0x377   : > { %v4484_v2 = vadd.f32 %v9732_v15, %v4483_v0  ;;  %v5508_v3 = vadd.f32 %v9732_v15, %v5507_v1  ;;  %v4485_v4 = vpop.f32.mrb[29].mxu0  ;;  %v5509_v5 = vpop.f32.mrb[29].mxu1 }
 0x378   : > { %v4486_v8 = vpop.f32.mrb[30].mxu0  ;;  %v5510_v9 = vpop.f32.mrb[30].mxu1 }
 0x379   : > { %6105 = vst.msk [vmem:[%s8574_s25 + $0x470] sm:$0xff] %vm5962_vm3, %v4484_v2  ;;  %6361 = vst.msk [vmem:[%s8574_s25 + $0xc70] sm:$0xff] %vm5962_vm3, %v5508_v3  ;;  %v4487_v12 = vadd.f32 %v9732_v15, %v4486_v8  ;;  %v5511_v13 = vadd.f32 %v9732_v15, %v5510_v9  ;;  %v4488_v14 = vpop.f32.mrb[31].mxu0  ;;  %v5512_v52 = vpop.f32.mrb[31].mxu1  ;;  %v8027_v8 = vld [vmem:[%s8385_s20 + $0xe60] ss:$8 sps:$4 sm:$0xff]  }
 0x37b   : > { %6106 = vst.msk [vmem:[%s8574_s25 + $0x478] sm:$0xff] %vm5962_vm3, %v4487_v12  ;;  %6362 = vst.msk [vmem:[%s8574_s25 + $0xc78] sm:$0xff] %vm5962_vm3, %v5511_v13  ;;  %4698 = vmatmul.mubr.bf16.gmra.mrb[136].mxu0 %v8000_v6  ;;  %5722 = vmatmul.mubr.bf16.gmra.mrb[136].mxu1 %v8003_v7  ;;  %v8024_v7 = vld [vmem:[%s8385_s20 + $0x660] ss:$8 sps:$4 sm:$0xff]   ;;  %v8035_v12 = vld [vmem:[%s8385_s20 + $0xe74] ss:$8 sps:$4 sm:$0xff]  }
 0x37c   : > { %7189 = vmatprep.mubr.msk.bf16.mxu0 %vm3105_vm0, %v8008_v10  ;;  %7317 = vmatprep.mubr.msk.bf16.mxu1 %vm3105_vm0, %v8011_v11  ;;  %v8032_v11 = vld [vmem:[%s8385_s20 + $0x674] ss:$8 sps:$4 sm:$0xff]  }
 0x37e   : > { %v4491_v16 = vpop.f32.mrb[32].mxu0  ;;  %v5515_v17 = vpop.f32.mrb[32].mxu1 }
 0x37f   : > { %v4492_v18 = vadd.f32 %v9732_v15, %v4491_v16  ;;  %v5516_v19 = vadd.f32 %v9732_v15, %v5515_v17  ;;  %v4493_v20 = vpop.f32.mrb[33].mxu0  ;;  %v5517_v21 = vpop.f32.mrb[33].mxu1 }
 0x380   : > { %v4494_v25 = vpop.f32.mrb[34].mxu0  ;;  %v5518_v26 = vpop.f32.mrb[34].mxu1 }
 0x381   : > { %6107 = vst.msk [vmem:[%s8574_s25 + $0x480] sm:$0xff] %vm5962_vm3, %v4492_v18  ;;  %6363 = vst.msk [vmem:[%s8574_s25 + $0xc80] sm:$0xff] %vm5962_vm3, %v5516_v19  ;;  %v4495_v29 = vadd.f32 %v9732_v15, %v4494_v25  ;;  %v5519_v30 = vadd.f32 %v9732_v15, %v5518_v26  ;;  %v4496_v31 = vpop.f32.mrb[35].mxu0  ;;  %v5520_v61 = vpop.f32.mrb[35].mxu1  ;;  %v8033_v25 = vld [vmem:[%s8385_s20 + $0xe70] ss:$8 sps:$4 sm:$0xff]  }
 0x383   : > { %6108 = vst.msk [vmem:[%s8574_s25 + $0x488] sm:$0xff] %vm5962_vm3, %v4495_v29  ;;  %6364 = vst.msk [vmem:[%s8574_s25 + $0xc88] sm:$0xff] %vm5962_vm3, %v5519_v30  ;;  %4706 = vmatmul.mubr.bf16.gmra.mrb[140].mxu0 %v8006_v23  ;;  %5730 = vmatmul.mubr.bf16.gmra.mrb[140].mxu1 %v8009_v24  ;;  %v8030_v24 = vld [vmem:[%s8385_s20 + $0x670] ss:$8 sps:$4 sm:$0xff]   ;;  %v8041_v29 = vld [vmem:[%s8385_s20 + $0xe84] ss:$8 sps:$4 sm:$0xff]  }
 0x384   : > { %7190 = vmatprep.mubr.msk.bf16.mxu0 %vm3105_vm0, %v8014_v27  ;;  %7318 = vmatprep.mubr.msk.bf16.mxu1 %vm3105_vm0, %v8017_v28  ;;  %v8038_v28 = vld [vmem:[%s8385_s20 + $0x684] ss:$8 sps:$4 sm:$0xff]  }
 0x386   : > { %v4499_v32 = vpop.f32.mrb[36].mxu0  ;;  %v5523_v33 = vpop.f32.mrb[36].mxu1 }
 0x387   : > { %v4500_v34 = vadd.f32 %v9732_v15, %v4499_v32  ;;  %v5524_v35 = vadd.f32 %v9732_v15, %v5523_v33  ;;  %v4501_v36 = vpop.f32.mrb[37].mxu0  ;;  %v5525_v37 = vpop.f32.mrb[37].mxu1 }
 0x388   : > { %v4502_v40 = vpop.f32.mrb[38].mxu0  ;;  %v5526_v41 = vpop.f32.mrb[38].mxu1 }
 0x389   : > { %6109 = vst.msk [vmem:[%s8574_s25 + $0x490] sm:$0xff] %vm5962_vm3, %v4500_v34  ;;  %6365 = vst.msk [vmem:[%s8574_s25 + $0xc90] sm:$0xff] %vm5962_vm3, %v5524_v35  ;;  %v4503_v44 = vadd.f32 %v9732_v15, %v4502_v40  ;;  %v5527_v45 = vadd.f32 %v9732_v15, %v5526_v41  ;;  %v4504_v46 = vpop.f32.mrb[39].mxu0  ;;  %v5528_v47 = vpop.f32.mrb[39].mxu1  ;;  %v8039_v40 = vld [vmem:[%s8385_s20 + $0xe80] ss:$8 sps:$4 sm:$0xff]  }
 0x38b   : > { %6110 = vst.msk [vmem:[%s8574_s25 + $0x498] sm:$0xff] %vm5962_vm3, %v4503_v44  ;;  %6366 = vst.msk [vmem:[%s8574_s25 + $0xc98] sm:$0xff] %vm5962_vm3, %v5527_v45  ;;  %4714 = vmatmul.mubr.bf16.gmra.mrb[144].mxu0 %v8012_v38  ;;  %5738 = vmatmul.mubr.bf16.gmra.mrb[144].mxu1 %v8015_v39  ;;  %v8036_v39 = vld [vmem:[%s8385_s20 + $0x680] ss:$8 sps:$4 sm:$0xff]   ;;  %v8047_v44 = vld [vmem:[%s8385_s20 + $0xe94] ss:$8 sps:$4 sm:$0xff]  }
 0x38c   : > { %7191 = vmatprep.mubr.msk.bf16.mxu0 %vm3105_vm0, %v8020_v42  ;;  %7319 = vmatprep.mubr.msk.bf16.mxu1 %vm3105_vm0, %v8023_v43  ;;  %v8044_v43 = vld [vmem:[%s8385_s20 + $0x694] ss:$8 sps:$4 sm:$0xff]  }
 0x38e   : > { %v4507_v48 = vpop.f32.mrb[40].mxu0  ;;  %v5531_v49 = vpop.f32.mrb[40].mxu1 }
 0x38f   : > { %v4508_v50 = vadd.f32 %v9732_v15, %v4507_v48  ;;  %v5532_v51 = vadd.f32 %v9732_v15, %v5531_v49  ;;  %v4509_v53 = vpop.f32.mrb[41].mxu0  ;;  %v5533_v22 = vpop.f32.mrb[41].mxu1 }
 0x390   : > { %v4510_v56 = vpop.f32.mrb[42].mxu0  ;;  %v5534_v57 = vpop.f32.mrb[42].mxu1 }
 0x391   : > { %6111 = vst.msk [vmem:[%s8574_s25 + $0x4a0] sm:$0xff] %vm5962_vm3, %v4508_v50  ;;  %6367 = vst.msk [vmem:[%s8574_s25 + $0xca0] sm:$0xff] %vm5962_vm3, %v5532_v51  ;;  %v4511_v60 = vadd.f32 %v9732_v15, %v4510_v56  ;;  %v5535_v62 = vadd.f32 %v9732_v15, %v5534_v57  ;;  %v4512_v63 = vpop.f32.mrb[43].mxu0  ;;  %v5536_v0 = vpop.f32.mrb[43].mxu1  ;;  %v8045_v56 = vld [vmem:[%s8385_s20 + $0xe90] ss:$8 sps:$4 sm:$0xff]  }
 0x393   : > { %6112 = vst.msk [vmem:[%s8574_s25 + $0x4a8] sm:$0xff] %vm5962_vm3, %v4511_v60  ;;  %6368 = vst.msk [vmem:[%s8574_s25 + $0xca8] sm:$0xff] %vm5962_vm3, %v5535_v62  ;;  %4722 = vmatmul.mubr.bf16.gmra.mrb[148].mxu0 %v8018_v54  ;;  %5746 = vmatmul.mubr.bf16.gmra.mrb[148].mxu1 %v8021_v55  ;;  %v8042_v55 = vld [vmem:[%s8385_s20 + $0x690] ss:$8 sps:$4 sm:$0xff]   ;;  %v8053_v60 = vld [vmem:[%s8385_s20 + $0xea4] ss:$8 sps:$4 sm:$0xff]  }
 0x394   : > { %7192 = vmatprep.mubr.msk.bf16.mxu0 %vm3105_vm0, %v8026_v58  ;;  %7320 = vmatprep.mubr.msk.bf16.mxu1 %vm3105_vm0, %v8029_v59  ;;  %v8050_v59 = vld [vmem:[%s8385_s20 + $0x6a4] ss:$8 sps:$4 sm:$0xff]  }
 0x396   : > { %v4515_v1 = vpop.f32.mrb[44].mxu0  ;;  %v5539_v2 = vpop.f32.mrb[44].mxu1 }
 0x397   : > { %v4516_v3 = vadd.f32 %v9732_v15, %v4515_v1  ;;  %v5540_v4 = vadd.f32 %v9732_v15, %v5539_v2  ;;  %v4517_v5 = vpop.f32.mrb[45].mxu0  ;;  %v5541_v6 = vpop.f32.mrb[45].mxu1 }
 0x398   : > { %v4518_v9 = vpop.f32.mrb[46].mxu0  ;;  %v5542_v10 = vpop.f32.mrb[46].mxu1 }
 0x399   : > { %6113 = vst.msk [vmem:[%s8574_s25 + $0x4b0] sm:$0xff] %vm5962_vm3, %v4516_v3  ;;  %6369 = vst.msk [vmem:[%s8574_s25 + $0xcb0] sm:$0xff] %vm5962_vm3, %v5540_v4  ;;  %v4519_v13 = vadd.f32 %v9732_v15, %v4518_v9  ;;  %v5543_v14 = vadd.f32 %v9732_v15, %v5542_v10  ;;  %v4520_v52 = vpop.f32.mrb[47].mxu0  ;;  %v5544_v16 = vpop.f32.mrb[47].mxu1  ;;  %v8051_v9 = vld [vmem:[%s8385_s20 + $0xea0] ss:$8 sps:$4 sm:$0xff]  }
 0x39b   : > { %6114 = vst.msk [vmem:[%s8574_s25 + $0x4b8] sm:$0xff] %vm5962_vm3, %v4519_v13  ;;  %6370 = vst.msk [vmem:[%s8574_s25 + $0xcb8] sm:$0xff] %vm5962_vm3, %v5543_v14  ;;  %4730 = vmatmul.mubr.bf16.gmra.mrb[152].mxu0 %v8024_v7  ;;  %5754 = vmatmul.mubr.bf16.gmra.mrb[152].mxu1 %v8027_v8  ;;  %v8048_v8 = vld [vmem:[%s8385_s20 + $0x6a0] ss:$8 sps:$4 sm:$0xff]   ;;  %v8059_v13 = vld [vmem:[%s8385_s20 + $0xeb4] ss:$8 sps:$4 sm:$0xff]  }
 0x39c   : > { %7193 = vmatprep.mubr.msk.bf16.mxu0 %vm3105_vm0, %v8032_v11  ;;  %7321 = vmatprep.mubr.msk.bf16.mxu1 %vm3105_vm0, %v8035_v12  ;;  %v8056_v12 = vld [vmem:[%s8385_s20 + $0x6b4] ss:$8 sps:$4 sm:$0xff]  }
 0x39e   : > { %v4523_v17 = vpop.f32.mrb[48].mxu0  ;;  %v5547_v18 = vpop.f32.mrb[48].mxu1 }
 0x39f   : > { %v4524_v19 = vadd.f32 %v9732_v15, %v4523_v17  ;;  %v5548_v20 = vadd.f32 %v9732_v15, %v5547_v18  ;;  %v4525_v21 = vpop.f32.mrb[49].mxu0  ;;  %v5549_v23 = vpop.f32.mrb[49].mxu1 }
 0x3a0   : > { %v4526_v26 = vpop.f32.mrb[50].mxu0  ;;  %v5550_v27 = vpop.f32.mrb[50].mxu1 }
 0x3a1   : > { %6115 = vst.msk [vmem:[%s8574_s25 + $0x4c0] sm:$0xff] %vm5962_vm3, %v4524_v19  ;;  %6371 = vst.msk [vmem:[%s8574_s25 + $0xcc0] sm:$0xff] %vm5962_vm3, %v5548_v20  ;;  %v4527_v30 = vadd.f32 %v9732_v15, %v4526_v26  ;;  %v5551_v31 = vadd.f32 %v9732_v15, %v5550_v27  ;;  %v4528_v61 = vpop.f32.mrb[51].mxu0  ;;  %v5552_v32 = vpop.f32.mrb[51].mxu1  ;;  %v8057_v26 = vld [vmem:[%s8385_s20 + $0xeb0] ss:$8 sps:$4 sm:$0xff]  }
 0x3a3   : > { %6116 = vst.msk [vmem:[%s8574_s25 + $0x4c8] sm:$0xff] %vm5962_vm3, %v4527_v30  ;;  %6372 = vst.msk [vmem:[%s8574_s25 + $0xcc8] sm:$0xff] %vm5962_vm3, %v5551_v31  ;;  %4738 = vmatmul.mubr.bf16.gmra.mrb[156].mxu0 %v8030_v24  ;;  %5762 = vmatmul.mubr.bf16.gmra.mrb[156].mxu1 %v8033_v25  ;;  %v8054_v25 = vld [vmem:[%s8385_s20 + $0x6b0] ss:$8 sps:$4 sm:$0xff]   ;;  %v8065_v30 = vld [vmem:[%s8385_s20 + $0xec4] ss:$8 sps:$4 sm:$0xff]  }
 0x3a4   : > { %7194 = vmatprep.mubr.msk.bf16.mxu0 %vm3105_vm0, %v8038_v28  ;;  %7322 = vmatprep.mubr.msk.bf16.mxu1 %vm3105_vm0, %v8041_v29  ;;  %v8062_v29 = vld [vmem:[%s8385_s20 + $0x6c4] ss:$8 sps:$4 sm:$0xff]  }
 0x3a6   : > { %v4531_v33 = vpop.f32.mrb[52].mxu0  ;;  %v5555_v34 = vpop.f32.mrb[52].mxu1 }
 0x3a7   : > { %v4532_v35 = vadd.f32 %v9732_v15, %v4531_v33  ;;  %v5556_v36 = vadd.f32 %v9732_v15, %v5555_v34  ;;  %v4533_v37 = vpop.f32.mrb[53].mxu0  ;;  %v5557_v38 = vpop.f32.mrb[53].mxu1 }
 0x3a8   : > { %v4534_v41 = vpop.f32.mrb[54].mxu0  ;;  %v5558_v42 = vpop.f32.mrb[54].mxu1 }
 0x3a9   : > { %6117 = vst.msk [vmem:[%s8574_s25 + $0x4d0] sm:$0xff] %vm5962_vm3, %v4532_v35  ;;  %6373 = vst.msk [vmem:[%s8574_s25 + $0xcd0] sm:$0xff] %vm5962_vm3, %v5556_v36  ;;  %v4535_v45 = vadd.f32 %v9732_v15, %v4534_v41  ;;  %v5559_v46 = vadd.f32 %v9732_v15, %v5558_v42  ;;  %v4536_v47 = vpop.f32.mrb[55].mxu0  ;;  %v5560_v48 = vpop.f32.mrb[55].mxu1  ;;  %v8063_v41 = vld [vmem:[%s8385_s20 + $0xec0] ss:$8 sps:$4 sm:$0xff]  }
 0x3ab   : > { %6118 = vst.msk [vmem:[%s8574_s25 + $0x4d8] sm:$0xff] %vm5962_vm3, %v4535_v45  ;;  %6374 = vst.msk [vmem:[%s8574_s25 + $0xcd8] sm:$0xff] %vm5962_vm3, %v5559_v46  ;;  %4746 = vmatmul.mubr.bf16.gmra.mrb[160].mxu0 %v8036_v39  ;;  %5770 = vmatmul.mubr.bf16.gmra.mrb[160].mxu1 %v8039_v40  ;;  %v8060_v40 = vld [vmem:[%s8385_s20 + $0x6c0] ss:$8 sps:$4 sm:$0xff]   ;;  %v8071_v45 = vld [vmem:[%s8385_s20 + $0xed4] ss:$8 sps:$4 sm:$0xff]  }
 0x3ac   : > { %7195 = vmatprep.mubr.msk.bf16.mxu0 %vm3105_vm0, %v8044_v43  ;;  %7323 = vmatprep.mubr.msk.bf16.mxu1 %vm3105_vm0, %v8047_v44  ;;  %v8068_v44 = vld [vmem:[%s8385_s20 + $0x6d4] ss:$8 sps:$4 sm:$0xff]  }
 0x3ae   : > { %v4539_v49 = vpop.f32.mrb[56].mxu0  ;;  %v5563_v50 = vpop.f32.mrb[56].mxu1 }
 0x3af   : > { %v4540_v51 = vadd.f32 %v9732_v15, %v4539_v49  ;;  %v5564_v53 = vadd.f32 %v9732_v15, %v5563_v50  ;;  %v4541_v22 = vpop.f32.mrb[57].mxu0  ;;  %v5565_v54 = vpop.f32.mrb[57].mxu1 }
 0x3b0   : > { %v4542_v57 = vpop.f32.mrb[58].mxu0  ;;  %v5566_v58 = vpop.f32.mrb[58].mxu1 }
 0x3b1   : > { %6119 = vst.msk [vmem:[%s8574_s25 + $0x4e0] sm:$0xff] %vm5962_vm3, %v4540_v51  ;;  %6375 = vst.msk [vmem:[%s8574_s25 + $0xce0] sm:$0xff] %vm5962_vm3, %v5564_v53  ;;  %v4543_v62 = vadd.f32 %v9732_v15, %v4542_v57  ;;  %v5567_v63 = vadd.f32 %v9732_v15, %v5566_v58  ;;  %v4544_v0 = vpop.f32.mrb[59].mxu0  ;;  %v5568_v1 = vpop.f32.mrb[59].mxu1  ;;  %v8069_v57 = vld [vmem:[%s8385_s20 + $0xed0] ss:$8 sps:$4 sm:$0xff]  }
 0x3b3   : > { %6120 = vst.msk [vmem:[%s8574_s25 + $0x4e8] sm:$0xff] %vm5962_vm3, %v4543_v62  ;;  %6376 = vst.msk [vmem:[%s8574_s25 + $0xce8] sm:$0xff] %vm5962_vm3, %v5567_v63  ;;  %4754 = vmatmul.mubr.bf16.gmra.mrb[164].mxu0 %v8042_v55  ;;  %5778 = vmatmul.mubr.bf16.gmra.mrb[164].mxu1 %v8045_v56  ;;  %v8066_v56 = vld [vmem:[%s8385_s20 + $0x6d0] ss:$8 sps:$4 sm:$0xff]   ;;  %v8077_v62 = vld [vmem:[%s8385_s20 + $0xee4] ss:$8 sps:$4 sm:$0xff]  }
 0x3b4   : > { %7196 = vmatprep.mubr.msk.bf16.mxu0 %vm3105_vm0, %v8050_v59  ;;  %7324 = vmatprep.mubr.msk.bf16.mxu1 %vm3105_vm0, %v8053_v60  ;;  %v8074_v60 = vld [vmem:[%s8385_s20 + $0x6e4] ss:$8 sps:$4 sm:$0xff]  }
 0x3b6   : > { %v4547_v2 = vpop.f32.mrb[60].mxu0  ;;  %v5571_v3 = vpop.f32.mrb[60].mxu1 }
 0x3b7   : > { %v4548_v4 = vadd.f32 %v9732_v15, %v4547_v2  ;;  %v5572_v5 = vadd.f32 %v9732_v15, %v5571_v3  ;;  %v4549_v6 = vpop.f32.mrb[61].mxu0  ;;  %v5573_v7 = vpop.f32.mrb[61].mxu1 }
 0x3b8   : > { %v4550_v10 = vpop.f32.mrb[62].mxu0  ;;  %v5574_v11 = vpop.f32.mrb[62].mxu1 }
 0x3b9   : > { %6121 = vst.msk [vmem:[%s8574_s25 + $0x4f0] sm:$0xff] %vm5962_vm3, %v4548_v4  ;;  %6377 = vst.msk [vmem:[%s8574_s25 + $0xcf0] sm:$0xff] %vm5962_vm3, %v5572_v5  ;;  %v4551_v14 = vadd.f32 %v9732_v15, %v4550_v10  ;;  %v5575_v52 = vadd.f32 %v9732_v15, %v5574_v11  ;;  %v4552_v16 = vpop.f32.mrb[63].mxu0  ;;  %v5576_v17 = vpop.f32.mrb[63].mxu1  ;;  %v8075_v10 = vld [vmem:[%s8385_s20 + $0xee0] ss:$8 sps:$4 sm:$0xff]  }
 0x3bb   : > { %6122 = vst.msk [vmem:[%s8574_s25 + $0x4f8] sm:$0xff] %vm5962_vm3, %v4551_v14  ;;  %6378 = vst.msk [vmem:[%s8574_s25 + $0xcf8] sm:$0xff] %vm5962_vm3, %v5575_v52  ;;  %4762 = vmatmul.mubr.bf16.gmra.mrb[168].mxu0 %v8048_v8  ;;  %5786 = vmatmul.mubr.bf16.gmra.mrb[168].mxu1 %v8051_v9  ;;  %v8072_v9 = vld [vmem:[%s8385_s20 + $0x6e0] ss:$8 sps:$4 sm:$0xff]   ;;  %v8083_v14 = vld [vmem:[%s8385_s20 + $0xef4] ss:$8 sps:$4 sm:$0xff]  }
 0x3bc   : > { %7197 = vmatprep.mubr.msk.bf16.mxu0 %vm3105_vm0, %v8056_v12  ;;  %7325 = vmatprep.mubr.msk.bf16.mxu1 %vm3105_vm0, %v8059_v13  ;;  %v8080_v13 = vld [vmem:[%s8385_s20 + $0x6f4] ss:$8 sps:$4 sm:$0xff]  }
 0x3be   : > { %v4555_v18 = vpop.f32.mrb[64].mxu0  ;;  %v5579_v19 = vpop.f32.mrb[64].mxu1 }
 0x3bf   : > { %v4556_v20 = vadd.f32 %v9732_v15, %v4555_v18  ;;  %v5580_v21 = vadd.f32 %v9732_v15, %v5579_v19  ;;  %v4557_v23 = vpop.f32.mrb[65].mxu0  ;;  %v5581_v24 = vpop.f32.mrb[65].mxu1 }
 0x3c0   : > { %v4558_v27 = vpop.f32.mrb[66].mxu0  ;;  %v5582_v28 = vpop.f32.mrb[66].mxu1 }
 0x3c1   : > { %6123 = vst.msk [vmem:[%s8574_s25 + $0x500] sm:$0xff] %vm5962_vm3, %v4556_v20  ;;  %6379 = vst.msk [vmem:[%s8574_s25 + $0xd00] sm:$0xff] %vm5962_vm3, %v5580_v21  ;;  %v4559_v31 = vadd.f32 %v9732_v15, %v4558_v27  ;;  %v5583_v61 = vadd.f32 %v9732_v15, %v5582_v28  ;;  %v4560_v32 = vpop.f32.mrb[67].mxu0  ;;  %v5584_v33 = vpop.f32.mrb[67].mxu1  ;;  %v8081_v27 = vld [vmem:[%s8385_s20 + $0xef0] ss:$8 sps:$4 sm:$0xff]  }
 0x3c3   : > { %6124 = vst.msk [vmem:[%s8574_s25 + $0x508] sm:$0xff] %vm5962_vm3, %v4559_v31  ;;  %6380 = vst.msk [vmem:[%s8574_s25 + $0xd08] sm:$0xff] %vm5962_vm3, %v5583_v61  ;;  %4770 = vmatmul.mubr.bf16.gmra.mrb[172].mxu0 %v8054_v25  ;;  %5794 = vmatmul.mubr.bf16.gmra.mrb[172].mxu1 %v8057_v26  ;;  %v8078_v26 = vld [vmem:[%s8385_s20 + $0x6f0] ss:$8 sps:$4 sm:$0xff]   ;;  %v8089_v31 = vld [vmem:[%s8385_s20 + $0xf04] ss:$8 sps:$4 sm:$0xff]  }
 0x3c4   : > { %7198 = vmatprep.mubr.msk.bf16.mxu0 %vm3105_vm0, %v8062_v29  ;;  %7326 = vmatprep.mubr.msk.bf16.mxu1 %vm3105_vm0, %v8065_v30  ;;  %v8086_v30 = vld [vmem:[%s8385_s20 + $0x704] ss:$8 sps:$4 sm:$0xff]  }
 0x3c6   : > { %v4563_v34 = vpop.f32.mrb[68].mxu0  ;;  %v5587_v35 = vpop.f32.mrb[68].mxu1 }
 0x3c7   : > { %v4564_v36 = vadd.f32 %v9732_v15, %v4563_v34  ;;  %v5588_v37 = vadd.f32 %v9732_v15, %v5587_v35  ;;  %v4565_v38 = vpop.f32.mrb[69].mxu0  ;;  %v5589_v39 = vpop.f32.mrb[69].mxu1 }
 0x3c8   : > { %v4566_v42 = vpop.f32.mrb[70].mxu0  ;;  %v5590_v43 = vpop.f32.mrb[70].mxu1 }
 0x3c9   : > { %6125 = vst.msk [vmem:[%s8574_s25 + $0x510] sm:$0xff] %vm5962_vm3, %v4564_v36  ;;  %6381 = vst.msk [vmem:[%s8574_s25 + $0xd10] sm:$0xff] %vm5962_vm3, %v5588_v37  ;;  %v4567_v46 = vadd.f32 %v9732_v15, %v4566_v42  ;;  %v5591_v47 = vadd.f32 %v9732_v15, %v5590_v43  ;;  %v4568_v48 = vpop.f32.mrb[71].mxu0  ;;  %v5592_v49 = vpop.f32.mrb[71].mxu1  ;;  %v8087_v42 = vld [vmem:[%s8385_s20 + $0xf00] ss:$8 sps:$4 sm:$0xff]  }
 0x3cb   : > { %6126 = vst.msk [vmem:[%s8574_s25 + $0x518] sm:$0xff] %vm5962_vm3, %v4567_v46  ;;  %6382 = vst.msk [vmem:[%s8574_s25 + $0xd18] sm:$0xff] %vm5962_vm3, %v5591_v47  ;;  %4778 = vmatmul.mubr.bf16.gmra.mrb[176].mxu0 %v8060_v40  ;;  %5802 = vmatmul.mubr.bf16.gmra.mrb[176].mxu1 %v8063_v41  ;;  %v8084_v41 = vld [vmem:[%s8385_s20 + $0x700] ss:$8 sps:$4 sm:$0xff]   ;;  %v8095_v46 = vld [vmem:[%s8385_s20 + $0xf14] ss:$8 sps:$4 sm:$0xff]  }
 0x3cc   : > { %7199 = vmatprep.mubr.msk.bf16.mxu0 %vm3105_vm0, %v8068_v44  ;;  %7327 = vmatprep.mubr.msk.bf16.mxu1 %vm3105_vm0, %v8071_v45  ;;  %v8092_v45 = vld [vmem:[%s8385_s20 + $0x714] ss:$8 sps:$4 sm:$0xff]   ;;  %v10122_v47 = vld [vmem:[#allocation4] ss:$0 sm:$0xff] }
 0x3ce   : > { %v4571_v50 = vpop.f32.mrb[72].mxu0  ;;  %v5595_v51 = vpop.f32.mrb[72].mxu1 }
 0x3cf   : > { %v4572_v53 = vadd.f32 %v9732_v15, %v4571_v50  ;;  %v5596_v22 = vadd.f32 %v9732_v15, %v5595_v51  ;;  %v4573_v54 = vpop.f32.mrb[73].mxu0  ;;  %v5597_v55 = vpop.f32.mrb[73].mxu1 }
 0x3d0   : > { %v4574_v58 = vpop.f32.mrb[74].mxu0  ;;  %v5598_v59 = vpop.f32.mrb[74].mxu1 }
 0x3d1   : > { %6127 = vst.msk [vmem:[%s8574_s25 + $0x520] sm:$0xff] %vm5962_vm3, %v4572_v53  ;;  %6383 = vst.msk [vmem:[%s8574_s25 + $0xd20] sm:$0xff] %vm5962_vm3, %v5596_v22  ;;  %v4575_v63 = vadd.f32 %v9732_v15, %v4574_v58  ;;  %v5599_v0 = vadd.f32 %v9732_v15, %v5598_v59  ;;  %v4576_v1 = vpop.f32.mrb[75].mxu0  ;;  %v5600_v2 = vpop.f32.mrb[75].mxu1  ;;  %v8093_v58 = vld [vmem:[%s8385_s20 + $0xf10] ss:$8 sps:$4 sm:$0xff]  }
 0x3d3   : > { %6128 = vst.msk [vmem:[%s8574_s25 + $0x528] sm:$0xff] %vm5962_vm3, %v4575_v63  ;;  %6384 = vst.msk [vmem:[%s8574_s25 + $0xd28] sm:$0xff] %vm5962_vm3, %v5599_v0  ;;  %4786 = vmatmul.mubr.bf16.gmra.mrb[180].mxu0 %v8066_v56  ;;  %5810 = vmatmul.mubr.bf16.gmra.mrb[180].mxu1 %v8069_v57  ;;  %v8090_v57 = vld [vmem:[%s8385_s20 + $0x710] ss:$8 sps:$4 sm:$0xff]   ;;  %v8101_v63 = vld [vmem:[%s8385_s20 + $0xf24] ss:$8 sps:$4 sm:$0xff]  }
 0x3d4   : > { %7200 = vmatprep.mubr.msk.bf16.mxu0 %vm3105_vm0, %v8074_v60  ;;  %7328 = vmatprep.mubr.msk.bf16.mxu1 %vm3105_vm0, %v8077_v62  ;;  %v8098_v62 = vld [vmem:[%s8385_s20 + $0x724] ss:$8 sps:$4 sm:$0xff]  }
 0x3d6   : > { %v4579_v3 = vpop.f32.mrb[76].mxu0  ;;  %v5603_v4 = vpop.f32.mrb[76].mxu1 }
 0x3d7   : > { %v4580_v5 = vadd.f32 %v9732_v15, %v4579_v3  ;;  %v5604_v6 = vadd.f32 %v9732_v15, %v5603_v4  ;;  %v4581_v7 = vpop.f32.mrb[77].mxu0  ;;  %v5605_v8 = vpop.f32.mrb[77].mxu1 }
 0x3d8   : > { %v4582_v11 = vpop.f32.mrb[78].mxu0  ;;  %v5606_v12 = vpop.f32.mrb[78].mxu1 }
 0x3d9   : > { %6129 = vst.msk [vmem:[%s8574_s25 + $0x530] sm:$0xff] %vm5962_vm3, %v4580_v5  ;;  %6385 = vst.msk [vmem:[%s8574_s25 + $0xd30] sm:$0xff] %vm5962_vm3, %v5604_v6  ;;  %v4583_v52 = vadd.f32 %v9732_v15, %v4582_v11  ;;  %v5607_v16 = vadd.f32 %v9732_v15, %v5606_v12  ;;  %v4584_v17 = vpop.f32.mrb[79].mxu0  ;;  %v5608_v18 = vpop.f32.mrb[79].mxu1  ;;  %v8099_v11 = vld [vmem:[%s8385_s20 + $0xf20] ss:$8 sps:$4 sm:$0xff]  }
 0x3db   : > { %6130 = vst.msk [vmem:[%s8574_s25 + $0x538] sm:$0xff] %vm5962_vm3, %v4583_v52  ;;  %6386 = vst.msk [vmem:[%s8574_s25 + $0xd38] sm:$0xff] %vm5962_vm3, %v5607_v16  ;;  %4794 = vmatmul.mubr.bf16.gmra.mrb[184].mxu0 %v8072_v9  ;;  %5818 = vmatmul.mubr.bf16.gmra.mrb[184].mxu1 %v8075_v10  ;;  %v8096_v10 = vld [vmem:[%s8385_s20 + $0x720] ss:$8 sps:$4 sm:$0xff]   ;;  %v8107_v52 = vld [vmem:[%s8385_s20 + $0xf34] ss:$8 sps:$4 sm:$0xff]  }
 0x3dc   : > { %7201 = vmatprep.mubr.msk.bf16.mxu0 %vm3105_vm0, %v8080_v13  ;;  %7329 = vmatprep.mubr.msk.bf16.mxu1 %vm3105_vm0, %v8083_v14  ;;  %v8104_v14 = vld [vmem:[%s8385_s20 + $0x734] ss:$8 sps:$4 sm:$0xff]  }
 0x3de   : > { %v4587_v19 = vpop.f32.mrb[80].mxu0  ;;  %v5611_v20 = vpop.f32.mrb[80].mxu1 }
 0x3df   : > { %v4588_v21 = vadd.f32 %v9732_v15, %v4587_v19  ;;  %v5612_v23 = vadd.f32 %v9732_v15, %v5611_v20  ;;  %v4589_v24 = vpop.f32.mrb[81].mxu0  ;;  %v5613_v25 = vpop.f32.mrb[81].mxu1 }
 0x3e0   : > { %v4590_v28 = vpop.f32.mrb[82].mxu0  ;;  %v5614_v29 = vpop.f32.mrb[82].mxu1 }
 0x3e1   : > { %6131 = vst.msk [vmem:[%s8574_s25 + $0x540] sm:$0xff] %vm5962_vm3, %v4588_v21  ;;  %6387 = vst.msk [vmem:[%s8574_s25 + $0xd40] sm:$0xff] %vm5962_vm3, %v5612_v23  ;;  %v4591_v61 = vadd.f32 %v9732_v15, %v4590_v28  ;;  %v5615_v32 = vadd.f32 %v9732_v15, %v5614_v29  ;;  %v4592_v33 = vpop.f32.mrb[83].mxu0  ;;  %v5616_v34 = vpop.f32.mrb[83].mxu1  ;;  %v8105_v28 = vld [vmem:[%s8385_s20 + $0xf30] ss:$8 sps:$4 sm:$0xff]  }
 0x3e3   : > { %6132 = vst.msk [vmem:[%s8574_s25 + $0x548] sm:$0xff] %vm5962_vm3, %v4591_v61  ;;  %6388 = vst.msk [vmem:[%s8574_s25 + $0xd48] sm:$0xff] %vm5962_vm3, %v5615_v32  ;;  %4802 = vmatmul.mubr.bf16.gmra.mrb[188].mxu0 %v8078_v26  ;;  %5826 = vmatmul.mubr.bf16.gmra.mrb[188].mxu1 %v8081_v27  ;;  %v8102_v27 = vld [vmem:[%s8385_s20 + $0x730] ss:$8 sps:$4 sm:$0xff]   ;;  %v8113_v61 = vld [vmem:[%s8385_s20 + $0xf44] ss:$8 sps:$4 sm:$0xff]  }
 0x3e4   : > { %7202 = vmatprep.mubr.msk.bf16.mxu0 %vm3105_vm0, %v8086_v30  ;;  %7330 = vmatprep.mubr.msk.bf16.mxu1 %vm3105_vm0, %v8089_v31  ;;  %v8110_v31 = vld [vmem:[%s8385_s20 + $0x744] ss:$8 sps:$4 sm:$0xff]  }
 0x3e6   : > { %v4595_v35 = vpop.f32.mrb[84].mxu0  ;;  %v5619_v36 = vpop.f32.mrb[84].mxu1 }
 0x3e7   : > { %v4596_v37 = vadd.f32 %v9732_v15, %v4595_v35  ;;  %v5620_v38 = vadd.f32 %v9732_v15, %v5619_v36  ;;  %v4597_v39 = vpop.f32.mrb[85].mxu0  ;;  %v5621_v40 = vpop.f32.mrb[85].mxu1 }
 0x3e8   : > { %v4598_v43 = vpop.f32.mrb[86].mxu0  ;;  %v5622_v44 = vpop.f32.mrb[86].mxu1 }
 0x3e9   : > { %6133 = vst.msk [vmem:[%s8574_s25 + $0x550] sm:$0xff] %vm5962_vm3, %v4596_v37  ;;  %6389 = vst.msk [vmem:[%s8574_s25 + $0xd50] sm:$0xff] %vm5962_vm3, %v5620_v38  ;;  %v4599_v48 = vadd.f32 %v10122_v47, %v4598_v43  ;;  %v5623_v15 = vadd.f32 %v10122_v47, %v5622_v44  ;;  %v4600_v49 = vpop.f32.mrb[87].mxu0  ;;  %v5624_v50 = vpop.f32.mrb[87].mxu1  ;;  %v8111_v43 = vld [vmem:[%s8385_s20 + $0xf40] ss:$8 sps:$4 sm:$0xff]  }
 0x3eb   : > { %6134 = vst.msk [vmem:[%s8574_s25 + $0x558] sm:$0xff] %vm5962_vm3, %v4599_v48  ;;  %6390 = vst.msk [vmem:[%s8574_s25 + $0xd58] sm:$0xff] %vm5962_vm3, %v5623_v15  ;;  %4810 = vmatmul.mubr.bf16.gmra.mrb[192].mxu0 %v8084_v41  ;;  %5834 = vmatmul.mubr.bf16.gmra.mrb[192].mxu1 %v8087_v42  ;;  %v8108_v42 = vld [vmem:[%s8385_s20 + $0x740] ss:$8 sps:$4 sm:$0xff]   ;;  %v8119_v48 = vld [vmem:[%s8385_s20 + $0xf54] ss:$8 sps:$4 sm:$0xff]  }
 0x3ec   : > { %7203 = vmatprep.mubr.msk.bf16.mxu0 %vm3105_vm0, %v8092_v45  ;;  %7331 = vmatprep.mubr.msk.bf16.mxu1 %vm3105_vm0, %v8095_v46  ;;  %v8116_v46 = vld [vmem:[%s8385_s20 + $0x754] ss:$8 sps:$4 sm:$0xff]  }
 0x3ee   : > { %v4603_v51 = vpop.f32.mrb[88].mxu0  ;;  %v5627_v53 = vpop.f32.mrb[88].mxu1 }
 0x3ef   : > { %v4604_v22 = vadd.f32 %v10122_v47, %v4603_v51  ;;  %v5628_v54 = vadd.f32 %v10122_v47, %v5627_v53  ;;  %v4605_v55 = vpop.f32.mrb[89].mxu0  ;;  %v5629_v56 = vpop.f32.mrb[89].mxu1 }
 0x3f0   : > { %v4606_v59 = vpop.f32.mrb[90].mxu0  ;;  %v5630_v60 = vpop.f32.mrb[90].mxu1 }
 0x3f1   : > { %6135 = vst.msk [vmem:[%s8574_s25 + $0x560] sm:$0xff] %vm5962_vm3, %v4604_v22  ;;  %6391 = vst.msk [vmem:[%s8574_s25 + $0xd60] sm:$0xff] %vm5962_vm3, %v5628_v54  ;;  %v4607_v0 = vadd.f32 %v10122_v47, %v4606_v59  ;;  %v5631_v1 = vadd.f32 %v10122_v47, %v5630_v60  ;;  %v4608_v2 = vpop.f32.mrb[91].mxu0  ;;  %v5632_v3 = vpop.f32.mrb[91].mxu1  ;;  %v8117_v59 = vld [vmem:[%s8385_s20 + $0xf50] ss:$8 sps:$4 sm:$0xff]  }
 0x3f3   : > { %6136 = vst.msk [vmem:[%s8574_s25 + $0x568] sm:$0xff] %vm5962_vm3, %v4607_v0  ;;  %6392 = vst.msk [vmem:[%s8574_s25 + $0xd68] sm:$0xff] %vm5962_vm3, %v5631_v1  ;;  %4818 = vmatmul.mubr.bf16.gmra.mrb[196].mxu0 %v8090_v57  ;;  %5842 = vmatmul.mubr.bf16.gmra.mrb[196].mxu1 %v8093_v58  ;;  %v8114_v58 = vld [vmem:[%s8385_s20 + $0x750] ss:$8 sps:$4 sm:$0xff]   ;;  %v8125_v0 = vld [vmem:[%s8385_s20 + $0xf64] ss:$8 sps:$4 sm:$0xff]  }
 0x3f4   : > { %7204 = vmatprep.mubr.msk.bf16.mxu0 %vm3105_vm0, %v8098_v62  ;;  %7332 = vmatprep.mubr.msk.bf16.mxu1 %vm3105_vm0, %v8101_v63  ;;  %v8122_v63 = vld [vmem:[%s8385_s20 + $0x764] ss:$8 sps:$4 sm:$0xff]  }
 0x3f6   : > { %v4611_v4 = vpop.f32.mrb[92].mxu0  ;;  %v5635_v5 = vpop.f32.mrb[92].mxu1 }
 0x3f7   : > { %v4612_v6 = vadd.f32 %v10122_v47, %v4611_v4  ;;  %v5636_v7 = vadd.f32 %v10122_v47, %v5635_v5  ;;  %v4613_v8 = vpop.f32.mrb[93].mxu0  ;;  %v5637_v9 = vpop.f32.mrb[93].mxu1 }
 0x3f8   : > { %v4614_v12 = vpop.f32.mrb[94].mxu0  ;;  %v5638_v13 = vpop.f32.mrb[94].mxu1 }
 0x3f9   : > { %6137 = vst.msk [vmem:[%s8574_s25 + $0x570] sm:$0xff] %vm5962_vm3, %v4612_v6  ;;  %6393 = vst.msk [vmem:[%s8574_s25 + $0xd70] sm:$0xff] %vm5962_vm3, %v5636_v7  ;;  %v4615_v16 = vadd.f32 %v10122_v47, %v4614_v12  ;;  %v5639_v17 = vadd.f32 %v10122_v47, %v5638_v13  ;;  %v4616_v18 = vpop.f32.mrb[95].mxu0  ;;  %v5640_v19 = vpop.f32.mrb[95].mxu1  ;;  %v8123_v12 = vld [vmem:[%s8385_s20 + $0xf60] ss:$8 sps:$4 sm:$0xff]  }
 0x3fb   : > { %6138 = vst.msk [vmem:[%s8574_s25 + $0x578] sm:$0xff] %vm5962_vm3, %v4615_v16  ;;  %6394 = vst.msk [vmem:[%s8574_s25 + $0xd78] sm:$0xff] %vm5962_vm3, %v5639_v17  ;;  %4826 = vmatmul.mubr.bf16.gmra.mrb[200].mxu0 %v8096_v10  ;;  %5850 = vmatmul.mubr.bf16.gmra.mrb[200].mxu1 %v8099_v11  ;;  %v8120_v11 = vld [vmem:[%s8385_s20 + $0x760] ss:$8 sps:$4 sm:$0xff]   ;;  %v8131_v16 = vld [vmem:[%s8385_s20 + $0xf74] ss:$8 sps:$4 sm:$0xff]  }
 0x3fc   : > { %7205 = vmatprep.mubr.msk.bf16.mxu0 %vm3105_vm0, %v8104_v14  ;;  %7333 = vmatprep.mubr.msk.bf16.mxu1 %vm3105_vm0, %v8107_v52  ;;  %v8128_v52 = vld [vmem:[%s8385_s20 + $0x774] ss:$8 sps:$4 sm:$0xff]  }
 0x3fe   : > { %v4619_v20 = vpop.f32.mrb[96].mxu0  ;;  %v5643_v21 = vpop.f32.mrb[96].mxu1 }
 0x3ff   : > { %v4620_v23 = vadd.f32 %v10122_v47, %v4619_v20  ;;  %v5644_v24 = vadd.f32 %v10122_v47, %v5643_v21  ;;  %v4621_v25 = vpop.f32.mrb[97].mxu0  ;;  %v5645_v26 = vpop.f32.mrb[97].mxu1 }
 0x400   : > { %v4622_v29 = vpop.f32.mrb[98].mxu0  ;;  %v5646_v30 = vpop.f32.mrb[98].mxu1 }
 0x401   : > { %6139 = vst.msk [vmem:[%s8574_s25 + $0x580] sm:$0xff] %vm5962_vm3, %v4620_v23  ;;  %6395 = vst.msk [vmem:[%s8574_s25 + $0xd80] sm:$0xff] %vm5962_vm3, %v5644_v24  ;;  %v4623_v32 = vadd.f32 %v10122_v47, %v4622_v29  ;;  %v5647_v33 = vadd.f32 %v10122_v47, %v5646_v30  ;;  %v4624_v34 = vpop.f32.mrb[99].mxu0  ;;  %v5648_v35 = vpop.f32.mrb[99].mxu1  ;;  %v8129_v29 = vld [vmem:[%s8385_s20 + $0xf70] ss:$8 sps:$4 sm:$0xff]  }
 0x403   : > { %6140 = vst.msk [vmem:[%s8574_s25 + $0x588] sm:$0xff] %vm5962_vm3, %v4623_v32  ;;  %6396 = vst.msk [vmem:[%s8574_s25 + $0xd88] sm:$0xff] %vm5962_vm3, %v5647_v33  ;;  %4834 = vmatmul.mubr.bf16.gmra.mrb[204].mxu0 %v8102_v27  ;;  %5858 = vmatmul.mubr.bf16.gmra.mrb[204].mxu1 %v8105_v28  ;;  %v8126_v28 = vld [vmem:[%s8385_s20 + $0x770] ss:$8 sps:$4 sm:$0xff]   ;;  %v8137_v32 = vld [vmem:[%s8385_s20 + $0xf84] ss:$8 sps:$4 sm:$0xff]  }
 0x404   : > { %7206 = vmatprep.mubr.msk.bf16.mxu0 %vm3105_vm0, %v8110_v31  ;;  %7334 = vmatprep.mubr.msk.bf16.mxu1 %vm3105_vm0, %v8113_v61  ;;  %v8134_v61 = vld [vmem:[%s8385_s20 + $0x784] ss:$8 sps:$4 sm:$0xff]  }
 0x406   : > { %v4627_v36 = vpop.f32.mrb[100].mxu0  ;;  %v5651_v37 = vpop.f32.mrb[100].mxu1 }
 0x407   : > { %v4628_v38 = vadd.f32 %v10122_v47, %v4627_v36  ;;  %v5652_v39 = vadd.f32 %v10122_v47, %v5651_v37  ;;  %v4629_v40 = vpop.f32.mrb[101].mxu0  ;;  %v5653_v41 = vpop.f32.mrb[101].mxu1 }
 0x408   : > { %v4630_v44 = vpop.f32.mrb[102].mxu0  ;;  %v5654_v45 = vpop.f32.mrb[102].mxu1 }
 0x409   : > { %6141 = vst.msk [vmem:[%s8574_s25 + $0x590] sm:$0xff] %vm5962_vm3, %v4628_v38  ;;  %6397 = vst.msk [vmem:[%s8574_s25 + $0xd90] sm:$0xff] %vm5962_vm3, %v5652_v39  ;;  %v4631_v15 = vadd.f32 %v10122_v47, %v4630_v44  ;;  %v5655_v49 = vadd.f32 %v10122_v47, %v5654_v45  ;;  %v4632_v50 = vpop.f32.mrb[103].mxu0  ;;  %v5656_v51 = vpop.f32.mrb[103].mxu1  ;;  %v8135_v44 = vld [vmem:[%s8385_s20 + $0xf80] ss:$8 sps:$4 sm:$0xff]  }
 0x40b   : > { %6142 = vst.msk [vmem:[%s8574_s25 + $0x598] sm:$0xff] %vm5962_vm3, %v4631_v15  ;;  %6398 = vst.msk [vmem:[%s8574_s25 + $0xd98] sm:$0xff] %vm5962_vm3, %v5655_v49  ;;  %4842 = vmatmul.mubr.bf16.gmra.mrb[208].mxu0 %v8108_v42  ;;  %5866 = vmatmul.mubr.bf16.gmra.mrb[208].mxu1 %v8111_v43  ;;  %v8132_v43 = vld [vmem:[%s8385_s20 + $0x780] ss:$8 sps:$4 sm:$0xff]   ;;  %v8143_v15 = vld [vmem:[%s8385_s20 + $0xf94] ss:$8 sps:$4 sm:$0xff]  }
 0x40c   : > { %7207 = vmatprep.mubr.msk.bf16.mxu0 %vm3105_vm0, %v8116_v46  ;;  %7335 = vmatprep.mubr.msk.bf16.mxu1 %vm3105_vm0, %v8119_v48  ;;  %v8140_v48 = vld [vmem:[%s8385_s20 + $0x794] ss:$8 sps:$4 sm:$0xff]  }
 0x40e   : > { %v4635_v53 = vpop.f32.mrb[104].mxu0  ;;  %v5659_v22 = vpop.f32.mrb[104].mxu1 }
 0x40f   : > { %v4636_v54 = vadd.f32 %v10122_v47, %v4635_v53  ;;  %v5660_v55 = vadd.f32 %v10122_v47, %v5659_v22  ;;  %v4637_v56 = vpop.f32.mrb[105].mxu0  ;;  %v5661_v57 = vpop.f32.mrb[105].mxu1 }
 0x410   : > { %v4638_v60 = vpop.f32.mrb[106].mxu0  ;;  %v5662_v62 = vpop.f32.mrb[106].mxu1 }
 0x411   : > { %6143 = vst.msk [vmem:[%s8574_s25 + $0x5a0] sm:$0xff] %vm5962_vm3, %v4636_v54  ;;  %6399 = vst.msk [vmem:[%s8574_s25 + $0xda0] sm:$0xff] %vm5962_vm3, %v5660_v55  ;;  %v4639_v1 = vadd.f32 %v10122_v47, %v4638_v60  ;;  %v5663_v2 = vadd.f32 %v10122_v47, %v5662_v62  ;;  %v4640_v3 = vpop.f32.mrb[107].mxu0  ;;  %v5664_v4 = vpop.f32.mrb[107].mxu1  ;;  %v8141_v60 = vld [vmem:[%s8385_s20 + $0xf90] ss:$8 sps:$4 sm:$0xff]  }
 0x413   : > { %6144 = vst.msk [vmem:[%s8574_s25 + $0x5a8] sm:$0xff] %vm5962_vm3, %v4639_v1  ;;  %6400 = vst.msk [vmem:[%s8574_s25 + $0xda8] sm:$0xff] %vm5962_vm3, %v5663_v2  ;;  %4850 = vmatmul.mubr.bf16.gmra.mrb[212].mxu0 %v8114_v58  ;;  %5874 = vmatmul.mubr.bf16.gmra.mrb[212].mxu1 %v8117_v59  ;;  %v8138_v59 = vld [vmem:[%s8385_s20 + $0x790] ss:$8 sps:$4 sm:$0xff]   ;;  %v8149_v1 = vld [vmem:[%s8385_s20 + $0xfa4] ss:$8 sps:$4 sm:$0xff]  }
 0x414   : > { %7208 = vmatprep.mubr.msk.bf16.mxu0 %vm3105_vm0, %v8122_v63  ;;  %7336 = vmatprep.mubr.msk.bf16.mxu1 %vm3105_vm0, %v8125_v0  ;;  %v8146_v0 = vld [vmem:[%s8385_s20 + $0x7a4] ss:$8 sps:$4 sm:$0xff]  }
 0x416   : > { %v4643_v5 = vpop.f32.mrb[108].mxu0  ;;  %v5667_v6 = vpop.f32.mrb[108].mxu1 }
 0x417   : > { %v4644_v7 = vadd.f32 %v10122_v47, %v4643_v5  ;;  %v5668_v8 = vadd.f32 %v10122_v47, %v5667_v6  ;;  %v4645_v9 = vpop.f32.mrb[109].mxu0  ;;  %v5669_v10 = vpop.f32.mrb[109].mxu1 }
 0x418   : > { %v4646_v13 = vpop.f32.mrb[110].mxu0  ;;  %v5670_v14 = vpop.f32.mrb[110].mxu1 }
 0x419   : > { %6145 = vst.msk [vmem:[%s8574_s25 + $0x5b0] sm:$0xff] %vm5962_vm3, %v4644_v7  ;;  %6401 = vst.msk [vmem:[%s8574_s25 + $0xdb0] sm:$0xff] %vm5962_vm3, %v5668_v8  ;;  %v4647_v17 = vadd.f32 %v10122_v47, %v4646_v13  ;;  %v5671_v18 = vadd.f32 %v10122_v47, %v5670_v14  ;;  %v4648_v19 = vpop.f32.mrb[111].mxu0  ;;  %v5672_v20 = vpop.f32.mrb[111].mxu1  ;;  %v8147_v13 = vld [vmem:[%s8385_s20 + $0xfa0] ss:$8 sps:$4 sm:$0xff]  }
 0x41b   : > { %6146 = vst.msk [vmem:[%s8574_s25 + $0x5b8] sm:$0xff] %vm5962_vm3, %v4647_v17  ;;  %6402 = vst.msk [vmem:[%s8574_s25 + $0xdb8] sm:$0xff] %vm5962_vm3, %v5671_v18  ;;  %4858 = vmatmul.mubr.bf16.gmra.mrb[216].mxu0 %v8120_v11  ;;  %5882 = vmatmul.mubr.bf16.gmra.mrb[216].mxu1 %v8123_v12  ;;  %v8144_v12 = vld [vmem:[%s8385_s20 + $0x7a0] ss:$8 sps:$4 sm:$0xff]   ;;  %v8155_v17 = vld [vmem:[%s8385_s20 + $0xfb4] ss:$8 sps:$4 sm:$0xff]  }
 0x41c   : > { %7209 = vmatprep.mubr.msk.bf16.mxu0 %vm3105_vm0, %v8128_v52  ;;  %7337 = vmatprep.mubr.msk.bf16.mxu1 %vm3105_vm0, %v8131_v16  ;;  %v8152_v16 = vld [vmem:[%s8385_s20 + $0x7b4] ss:$8 sps:$4 sm:$0xff]  }
 0x41e   : > { %v4651_v21 = vpop.f32.mrb[112].mxu0  ;;  %v5675_v23 = vpop.f32.mrb[112].mxu1 }
 0x41f   : > { %v4652_v24 = vadd.f32 %v10122_v47, %v4651_v21  ;;  %v5676_v25 = vadd.f32 %v10122_v47, %v5675_v23  ;;  %v4653_v26 = vpop.f32.mrb[113].mxu0  ;;  %v5677_v27 = vpop.f32.mrb[113].mxu1 }
 0x420   : > { %v4654_v30 = vpop.f32.mrb[114].mxu0  ;;  %v5678_v31 = vpop.f32.mrb[114].mxu1 }
 0x421   : > { %6147 = vst.msk [vmem:[%s8574_s25 + $0x5c0] sm:$0xff] %vm5962_vm3, %v4652_v24  ;;  %6403 = vst.msk [vmem:[%s8574_s25 + $0xdc0] sm:$0xff] %vm5962_vm3, %v5676_v25  ;;  %v4655_v33 = vadd.f32 %v10122_v47, %v4654_v30  ;;  %v5679_v34 = vadd.f32 %v10122_v47, %v5678_v31  ;;  %v4656_v35 = vpop.f32.mrb[115].mxu0  ;;  %v5680_v36 = vpop.f32.mrb[115].mxu1  ;;  %v8153_v30 = vld [vmem:[%s8385_s20 + $0xfb0] ss:$8 sps:$4 sm:$0xff]  }
 0x423   : > { %6148 = vst.msk [vmem:[%s8574_s25 + $0x5c8] sm:$0xff] %vm5962_vm3, %v4655_v33  ;;  %6404 = vst.msk [vmem:[%s8574_s25 + $0xdc8] sm:$0xff] %vm5962_vm3, %v5679_v34  ;;  %4866 = vmatmul.mubr.bf16.gmra.mrb[220].mxu0 %v8126_v28  ;;  %5890 = vmatmul.mubr.bf16.gmra.mrb[220].mxu1 %v8129_v29  ;;  %v8150_v29 = vld [vmem:[%s8385_s20 + $0x7b0] ss:$8 sps:$4 sm:$0xff]   ;;  %v8161_v33 = vld [vmem:[%s8385_s20 + $0xfc4] ss:$8 sps:$4 sm:$0xff]  }
 0x424   : > { %7210 = vmatprep.mubr.msk.bf16.mxu0 %vm3105_vm0, %v8134_v61  ;;  %7338 = vmatprep.mubr.msk.bf16.mxu1 %vm3105_vm0, %v8137_v32  ;;  %v8158_v32 = vld [vmem:[%s8385_s20 + $0x7c4] ss:$8 sps:$4 sm:$0xff]  }
 0x426   : > { %v4659_v37 = vpop.f32.mrb[116].mxu0  ;;  %v5683_v38 = vpop.f32.mrb[116].mxu1 }
 0x427   : > { %v4660_v39 = vadd.f32 %v10122_v47, %v4659_v37  ;;  %v5684_v40 = vadd.f32 %v10122_v47, %v5683_v38  ;;  %v4661_v41 = vpop.f32.mrb[117].mxu0  ;;  %v5685_v42 = vpop.f32.mrb[117].mxu1 }
 0x428   : > { %v4662_v45 = vpop.f32.mrb[118].mxu0  ;;  %v5686_v46 = vpop.f32.mrb[118].mxu1 }
 0x429   : > { %6149 = vst.msk [vmem:[%s8574_s25 + $0x5d0] sm:$0xff] %vm5962_vm3, %v4660_v39  ;;  %6405 = vst.msk [vmem:[%s8574_s25 + $0xdd0] sm:$0xff] %vm5962_vm3, %v5684_v40  ;;  %v4663_v49 = vadd.f32 %v10122_v47, %v4662_v45  ;;  %v5687_v50 = vadd.f32 %v10122_v47, %v5686_v46  ;;  %v4664_v51 = vpop.f32.mrb[119].mxu0  ;;  %v5688_v53 = vpop.f32.mrb[119].mxu1  ;;  %v8159_v45 = vld [vmem:[%s8385_s20 + $0xfc0] ss:$8 sps:$4 sm:$0xff]  }
 0x42b   : > { %6150 = vst.msk [vmem:[%s8574_s25 + $0x5d8] sm:$0xff] %vm5962_vm3, %v4663_v49  ;;  %6406 = vst.msk [vmem:[%s8574_s25 + $0xdd8] sm:$0xff] %vm5962_vm3, %v5687_v50  ;;  %4874 = vmatmul.mubr.bf16.gmra.mrb[224].mxu0 %v8132_v43  ;;  %5898 = vmatmul.mubr.bf16.gmra.mrb[224].mxu1 %v8135_v44  ;;  %v8156_v44 = vld [vmem:[%s8385_s20 + $0x7c0] ss:$8 sps:$4 sm:$0xff]   ;;  %v8167_v49 = vld [vmem:[%s8385_s20 + $0xfd4] ss:$8 sps:$4 sm:$0xff]  }
 0x42c   : > { %7211 = vmatprep.mubr.msk.bf16.mxu0 %vm3105_vm0, %v8140_v48  ;;  %7339 = vmatprep.mubr.msk.bf16.mxu1 %vm3105_vm0, %v8143_v15  ;;  %v8164_v15 = vld [vmem:[%s8385_s20 + $0x7d4] ss:$8 sps:$4 sm:$0xff]  }
 0x42e   : > { %v4667_v22 = vpop.f32.mrb[120].mxu0  ;;  %v5691_v54 = vpop.f32.mrb[120].mxu1 }
 0x42f   : > { %v4668_v55 = vadd.f32 %v10122_v47, %v4667_v22  ;;  %v5692_v56 = vadd.f32 %v10122_v47, %v5691_v54  ;;  %v4669_v57 = vpop.f32.mrb[121].mxu0  ;;  %v5693_v58 = vpop.f32.mrb[121].mxu1 }
 0x430   : > { %v4670_v62 = vpop.f32.mrb[122].mxu0  ;;  %v5694_v63 = vpop.f32.mrb[122].mxu1 }
 0x431   : > { %6151 = vst.msk [vmem:[%s8574_s25 + $0x5e0] sm:$0xff] %vm5962_vm3, %v4668_v55  ;;  %6407 = vst.msk [vmem:[%s8574_s25 + $0xde0] sm:$0xff] %vm5962_vm3, %v5692_v56  ;;  %v4671_v2 = vadd.f32 %v10122_v47, %v4670_v62  ;;  %v5695_v3 = vadd.f32 %v10122_v47, %v5694_v63  ;;  %v4672_v4 = vpop.f32.mrb[123].mxu0  ;;  %v5696_v5 = vpop.f32.mrb[123].mxu1  ;;  %v8165_v62 = vld [vmem:[%s8385_s20 + $0xfd0] ss:$8 sps:$4 sm:$0xff]  }
 0x433   : > { %6152 = vst.msk [vmem:[%s8574_s25 + $0x5e8] sm:$0xff] %vm5962_vm3, %v4671_v2  ;;  %6408 = vst.msk [vmem:[%s8574_s25 + $0xde8] sm:$0xff] %vm5962_vm3, %v5695_v3  ;;  %4882 = vmatmul.mubr.bf16.gmra.mrb[228].mxu0 %v8138_v59  ;;  %5906 = vmatmul.mubr.bf16.gmra.mrb[228].mxu1 %v8141_v60  ;;  %v8162_v60 = vld [vmem:[%s8385_s20 + $0x7d0] ss:$8 sps:$4 sm:$0xff]   ;;  %v8173_v2 = vld [vmem:[%s8385_s20 + $0xfe4] ss:$8 sps:$4 sm:$0xff]  }
 0x434   : > { %7212 = vmatprep.mubr.msk.bf16.mxu0 %vm3105_vm0, %v8146_v0  ;;  %7340 = vmatprep.mubr.msk.bf16.mxu1 %vm3105_vm0, %v8149_v1  ;;  %v8170_v1 = vld [vmem:[%s8385_s20 + $0x7e4] ss:$8 sps:$4 sm:$0xff]  }
 0x436   : > { %v4675_v6 = vpop.f32.mrb[124].mxu0  ;;  %v5699_v7 = vpop.f32.mrb[124].mxu1 }
 0x437   : > { %v4676_v8 = vadd.f32 %v10122_v47, %v4675_v6  ;;  %v5700_v9 = vadd.f32 %v10122_v47, %v5699_v7  ;;  %v4677_v10 = vpop.f32.mrb[125].mxu0  ;;  %v5701_v11 = vpop.f32.mrb[125].mxu1 }
 0x438   : > { %v4678_v14 = vpop.f32.mrb[126].mxu0  ;;  %v5702_v52 = vpop.f32.mrb[126].mxu1 }
 0x439   : > { %6153 = vst.msk [vmem:[%s8574_s25 + $0x5f0] sm:$0xff] %vm5962_vm3, %v4676_v8  ;;  %6409 = vst.msk [vmem:[%s8574_s25 + $0xdf0] sm:$0xff] %vm5962_vm3, %v5700_v9  ;;  %v4679_v18 = vadd.f32 %v10122_v47, %v4678_v14  ;;  %v5703_v19 = vadd.f32 %v10122_v47, %v5702_v52  ;;  %v4680_v20 = vpop.f32.mrb[127].mxu0  ;;  %v5704_v21 = vpop.f32.mrb[127].mxu1  ;;  %v8171_v14 = vld [vmem:[%s8385_s20 + $0xfe0] ss:$8 sps:$4 sm:$0xff]  }
 0x43b   : > { %6154 = vst.msk [vmem:[%s8574_s25 + $0x5f8] sm:$0xff] %vm5962_vm3, %v4679_v18  ;;  %6410 = vst.msk [vmem:[%s8574_s25 + $0xdf8] sm:$0xff] %vm5962_vm3, %v5703_v19  ;;  %4890 = vmatmul.mubr.bf16.gmra.mrb[232].mxu0 %v8144_v12  ;;  %5914 = vmatmul.mubr.bf16.gmra.mrb[232].mxu1 %v8147_v13  ;;  %v8168_v13 = vld [vmem:[%s8385_s20 + $0x7e0] ss:$8 sps:$4 sm:$0xff]   ;;  %v8179_v18 = vld [vmem:[%s8385_s20 + $0xff4] ss:$8 sps:$4 sm:$0xff]  }
 0x43c   : > { %7213 = vmatprep.mubr.msk.bf16.mxu0 %vm3105_vm0, %v8152_v16  ;;  %7341 = vmatprep.mubr.msk.bf16.mxu1 %vm3105_vm0, %v8155_v17  ;;  %v8176_v17 = vld [vmem:[%s8385_s20 + $0x7f4] ss:$8 sps:$4 sm:$0xff]  }
 0x43e   : > { %v4683_v23 = vpop.f32.mrb[128].mxu0  ;;  %v5707_v24 = vpop.f32.mrb[128].mxu1 }
 0x43f   : > { %v4684_v25 = vadd.f32 %v10122_v47, %v4683_v23  ;;  %v5708_v26 = vadd.f32 %v10122_v47, %v5707_v24  ;;  %v4685_v27 = vpop.f32.mrb[129].mxu0  ;;  %v5709_v28 = vpop.f32.mrb[129].mxu1 }
 0x440   : > { %v4686_v31 = vpop.f32.mrb[130].mxu0  ;;  %v5710_v61 = vpop.f32.mrb[130].mxu1 }
 0x441   : > { %6155 = vst.msk [vmem:[%s8574_s25 + $0x600] sm:$0xff] %vm5962_vm3, %v4684_v25  ;;  %6411 = vst.msk [vmem:[%s8574_s25 + $0xe00] sm:$0xff] %vm5962_vm3, %v5708_v26  ;;  %v4687_v34 = vadd.f32 %v10122_v47, %v4686_v31  ;;  %v5711_v35 = vadd.f32 %v10122_v47, %v5710_v61  ;;  %v4688_v36 = vpop.f32.mrb[131].mxu0  ;;  %v5712_v37 = vpop.f32.mrb[131].mxu1  ;;  %v8177_v31 = vld [vmem:[%s8385_s20 + $0xff0] ss:$8 sps:$4 sm:$0xff]  }
 0x443   : > { %6156 = vst.msk [vmem:[%s8574_s25 + $0x608] sm:$0xff] %vm5962_vm3, %v4687_v34  ;;  %6412 = vst.msk [vmem:[%s8574_s25 + $0xe08] sm:$0xff] %vm5962_vm3, %v5711_v35  ;;  %4898 = vmatmul.mubr.bf16.gmra.mrb[236].mxu0 %v8150_v29  ;;  %5922 = vmatmul.mubr.bf16.gmra.mrb[236].mxu1 %v8153_v30  ;;  %v8174_v30 = vld [vmem:[%s8385_s20 + $0x7f0] ss:$8 sps:$4 sm:$0xff]  }
 0x444   : > { %7214 = vmatprep.mubr.msk.bf16.mxu0 %vm3105_vm0, %v8158_v32  ;;  %7342 = vmatprep.mubr.msk.bf16.mxu1 %vm3105_vm0, %v8161_v33 }
 0x446   : > { %v4691_v38 = vpop.f32.mrb[132].mxu0  ;;  %v5715_v39 = vpop.f32.mrb[132].mxu1 }
 0x447   : > { %v4692_v40 = vadd.f32 %v10122_v47, %v4691_v38  ;;  %v5716_v41 = vadd.f32 %v10122_v47, %v5715_v39  ;;  %v4693_v42 = vpop.f32.mrb[133].mxu0  ;;  %v5717_v43 = vpop.f32.mrb[133].mxu1 }
 0x448   : > { %v4694_v46 = vpop.f32.mrb[134].mxu0  ;;  %v5718_v48 = vpop.f32.mrb[134].mxu1 }
 0x449   : > { %6157 = vst.msk [vmem:[%s8574_s25 + $0x610] sm:$0xff] %vm5962_vm3, %v4692_v40  ;;  %6413 = vst.msk [vmem:[%s8574_s25 + $0xe10] sm:$0xff] %vm5962_vm3, %v5716_v41  ;;  %v4695_v50 = vadd.f32 %v10122_v47, %v4694_v46  ;;  %v5719_v51 = vadd.f32 %v10122_v47, %v5718_v48  ;;  %v4696_v53 = vpop.f32.mrb[135].mxu0  ;;  %v5720_v22 = vpop.f32.mrb[135].mxu1 }
 0x44b   : > { %6158 = vst.msk [vmem:[%s8574_s25 + $0x618] sm:$0xff] %vm5962_vm3, %v4695_v50  ;;  %6414 = vst.msk [vmem:[%s8574_s25 + $0xe18] sm:$0xff] %vm5962_vm3, %v5719_v51  ;;  %4906 = vmatmul.mubr.bf16.gmra.mrb[240].mxu0 %v8156_v44  ;;  %5930 = vmatmul.mubr.bf16.gmra.mrb[240].mxu1 %v8159_v45 }
 0x44c   : > { %7215 = vmatprep.mubr.msk.bf16.mxu0 %vm3105_vm0, %v8164_v15  ;;  %7343 = vmatprep.mubr.msk.bf16.mxu1 %vm3105_vm0, %v8167_v49 }
 0x44e   : > { %v4699_v54 = vpop.f32.mrb[136].mxu0  ;;  %v5723_v55 = vpop.f32.mrb[136].mxu1 }
 0x44f   : > { %v4700_v56 = vadd.f32 %v10122_v47, %v4699_v54  ;;  %v5724_v57 = vadd.f32 %v10122_v47, %v5723_v55  ;;  %v4701_v58 = vpop.f32.mrb[137].mxu0  ;;  %v5725_v59 = vpop.f32.mrb[137].mxu1 }
 0x450   : > { %v4702_v63 = vpop.f32.mrb[138].mxu0  ;;  %v5726_v0 = vpop.f32.mrb[138].mxu1 }
 0x451   : > { %6159 = vst.msk [vmem:[%s8574_s25 + $0x620] sm:$0xff] %vm5962_vm3, %v4700_v56  ;;  %6415 = vst.msk [vmem:[%s8574_s25 + $0xe20] sm:$0xff] %vm5962_vm3, %v5724_v57  ;;  %v4703_v3 = vadd.f32 %v10122_v47, %v4702_v63  ;;  %v5727_v4 = vadd.f32 %v10122_v47, %v5726_v0  ;;  %v4704_v5 = vpop.f32.mrb[139].mxu0  ;;  %v5728_v6 = vpop.f32.mrb[139].mxu1 }
 0x453   : > { %6160 = vst.msk [vmem:[%s8574_s25 + $0x628] sm:$0xff] %vm5962_vm3, %v4703_v3  ;;  %6416 = vst.msk [vmem:[%s8574_s25 + $0xe28] sm:$0xff] %vm5962_vm3, %v5727_v4  ;;  %4914 = vmatmul.mubr.bf16.gmra.mrb[244].mxu0 %v8162_v60  ;;  %5938 = vmatmul.mubr.bf16.gmra.mrb[244].mxu1 %v8165_v62 }
 0x454   : > { %7216 = vmatprep.mubr.msk.bf16.mxu0 %vm3105_vm0, %v8170_v1  ;;  %7344 = vmatprep.mubr.msk.bf16.mxu1 %vm3105_vm0, %v8173_v2 }
 0x456   : > { %v4707_v7 = vpop.f32.mrb[140].mxu0  ;;  %v5731_v8 = vpop.f32.mrb[140].mxu1 }
 0x457   : > { %v4708_v9 = vadd.f32 %v10122_v47, %v4707_v7  ;;  %v5732_v10 = vadd.f32 %v10122_v47, %v5731_v8  ;;  %v4709_v11 = vpop.f32.mrb[141].mxu0  ;;  %v5733_v12 = vpop.f32.mrb[141].mxu1 }
 0x458   : > { %v4710_v52 = vpop.f32.mrb[142].mxu0  ;;  %v5734_v16 = vpop.f32.mrb[142].mxu1 }
 0x459   : > { %6161 = vst.msk [vmem:[%s8574_s25 + $0x630] sm:$0xff] %vm5962_vm3, %v4708_v9  ;;  %6417 = vst.msk [vmem:[%s8574_s25 + $0xe30] sm:$0xff] %vm5962_vm3, %v5732_v10  ;;  %v4711_v19 = vadd.f32 %v10122_v47, %v4710_v52  ;;  %v5735_v20 = vadd.f32 %v10122_v47, %v5734_v16  ;;  %v4712_v21 = vpop.f32.mrb[143].mxu0  ;;  %v5736_v23 = vpop.f32.mrb[143].mxu1 }
 0x45b   : > { %6162 = vst.msk [vmem:[%s8574_s25 + $0x638] sm:$0xff] %vm5962_vm3, %v4711_v19  ;;  %6418 = vst.msk [vmem:[%s8574_s25 + $0xe38] sm:$0xff] %vm5962_vm3, %v5735_v20  ;;  %4922 = vmatmul.mubr.bf16.gmra.mrb[248].mxu0 %v8168_v13  ;;  %5946 = vmatmul.mubr.bf16.gmra.mrb[248].mxu1 %v8171_v14 }
 0x45c   : > { %7217 = vmatprep.mubr.msk.bf16.mxu0 %vm3105_vm0, %v8176_v17  ;;  %7345 = vmatprep.mubr.msk.bf16.mxu1 %vm3105_vm0, %v8179_v18 }
 0x45e   : > { %v4715_v24 = vpop.f32.mrb[144].mxu0  ;;  %v5739_v25 = vpop.f32.mrb[144].mxu1 }
 0x45f   : > { %v4716_v26 = vadd.f32 %v10122_v47, %v4715_v24  ;;  %v5740_v27 = vadd.f32 %v10122_v47, %v5739_v25  ;;  %v4717_v28 = vpop.f32.mrb[145].mxu0  ;;  %v5741_v29 = vpop.f32.mrb[145].mxu1 }
 0x460   : > { %v4718_v61 = vpop.f32.mrb[146].mxu0  ;;  %v5742_v32 = vpop.f32.mrb[146].mxu1 }
 0x461   : > { %6163 = vst.msk [vmem:[%s8574_s25 + $0x640] sm:$0xff] %vm5962_vm3, %v4716_v26  ;;  %6419 = vst.msk [vmem:[%s8574_s25 + $0xe40] sm:$0xff] %vm5962_vm3, %v5740_v27  ;;  %v4719_v33 = vadd.f32 %v10122_v47, %v4718_v61  ;;  %v5743_v34 = vadd.f32 %v10122_v47, %v5742_v32  ;;  %v4720_v35 = vpop.f32.mrb[147].mxu0  ;;  %v5744_v36 = vpop.f32.mrb[147].mxu1 }
 0x463   : > { %6164 = vst.msk [vmem:[%s8574_s25 + $0x648] sm:$0xff] %vm5962_vm3, %v4719_v33  ;;  %6420 = vst.msk [vmem:[%s8574_s25 + $0xe48] sm:$0xff] %vm5962_vm3, %v5743_v34  ;;  %4930 = vmatmul.mubr.bf16.gmra.mrb[252].mxu0 %v8174_v30  ;;  %5954 = vmatmul.mubr.bf16.gmra.mrb[252].mxu1 %v8177_v31 }
 0x466   : > { %v4723_v37 = vpop.f32.mrb[148].mxu0  ;;  %v5747_v38 = vpop.f32.mrb[148].mxu1 }
 0x467   : > { %v4724_v39 = vadd.f32 %v10122_v47, %v4723_v37  ;;  %v5748_v40 = vadd.f32 %v10122_v47, %v5747_v38  ;;  %v4725_v41 = vpop.f32.mrb[149].mxu0  ;;  %v5749_v42 = vpop.f32.mrb[149].mxu1 }
 0x468   : > { %v4726_v43 = vpop.f32.mrb[150].mxu0  ;;  %v5750_v44 = vpop.f32.mrb[150].mxu1 }
 0x469   : > { %6165 = vst.msk [vmem:[%s8574_s25 + $0x650] sm:$0xff] %vm5962_vm3, %v4724_v39  ;;  %6421 = vst.msk [vmem:[%s8574_s25 + $0xe50] sm:$0xff] %vm5962_vm3, %v5748_v40  ;;  %v4727_v45 = vadd.f32 %v10122_v47, %v4726_v43  ;;  %v5751_v46 = vadd.f32 %v10122_v47, %v5750_v44  ;;  %v4728_v48 = vpop.f32.mrb[151].mxu0  ;;  %v5752_v15 = vpop.f32.mrb[151].mxu1 }
 0x46b   : > { %6166 = vst.msk [vmem:[%s8574_s25 + $0x658] sm:$0xff] %vm5962_vm3, %v4727_v45  ;;  %6422 = vst.msk [vmem:[%s8574_s25 + $0xe58] sm:$0xff] %vm5962_vm3, %v5751_v46 }
 0x46e   : > { %v4731_v49 = vpop.f32.mrb[152].mxu0  ;;  %v5755_v50 = vpop.f32.mrb[152].mxu1 }
 0x46f   : > { %v4732_v51 = vadd.f32 %v10122_v47, %v4731_v49  ;;  %v5756_v53 = vadd.f32 %v10122_v47, %v5755_v50  ;;  %v4733_v22 = vpop.f32.mrb[153].mxu0  ;;  %v5757_v54 = vpop.f32.mrb[153].mxu1 }
 0x470   : > { %v4734_v55 = vpop.f32.mrb[154].mxu0  ;;  %v5758_v56 = vpop.f32.mrb[154].mxu1 }
 0x471   : > { %6167 = vst.msk [vmem:[%s8574_s25 + $0x660] sm:$0xff] %vm5962_vm3, %v4732_v51  ;;  %6423 = vst.msk [vmem:[%s8574_s25 + $0xe60] sm:$0xff] %vm5962_vm3, %v5756_v53  ;;  %v4735_v57 = vadd.f32 %v10122_v47, %v4734_v55  ;;  %v5759_v58 = vadd.f32 %v10122_v47, %v5758_v56  ;;  %v4736_v59 = vpop.f32.mrb[155].mxu0  ;;  %v5760_v60 = vpop.f32.mrb[155].mxu1 }
 0x473   : > { %6168 = vst.msk [vmem:[%s8574_s25 + $0x668] sm:$0xff] %vm5962_vm3, %v4735_v57  ;;  %6424 = vst.msk [vmem:[%s8574_s25 + $0xe68] sm:$0xff] %vm5962_vm3, %v5759_v58 }
 0x476   : > { %v4739_v62 = vpop.f32.mrb[156].mxu0  ;;  %v5763_v63 = vpop.f32.mrb[156].mxu1 }
 0x477   : > { %v4740_v0 = vadd.f32 %v10122_v47, %v4739_v62  ;;  %v5764_v1 = vadd.f32 %v10122_v47, %v5763_v63  ;;  %v4741_v2 = vpop.f32.mrb[157].mxu0  ;;  %v5765_v3 = vpop.f32.mrb[157].mxu1 }
 0x478   : > { %v4742_v4 = vpop.f32.mrb[158].mxu0  ;;  %v5766_v5 = vpop.f32.mrb[158].mxu1 }
 0x479   : > { %6169 = vst.msk [vmem:[%s8574_s25 + $0x670] sm:$0xff] %vm5962_vm3, %v4740_v0  ;;  %6425 = vst.msk [vmem:[%s8574_s25 + $0xe70] sm:$0xff] %vm5962_vm3, %v5764_v1  ;;  %v4743_v6 = vadd.f32 %v10122_v47, %v4742_v4  ;;  %v5767_v7 = vadd.f32 %v10122_v47, %v5766_v5  ;;  %v4744_v8 = vpop.f32.mrb[159].mxu0  ;;  %v5768_v9 = vpop.f32.mrb[159].mxu1 }
 0x47b   : > { %6170 = vst.msk [vmem:[%s8574_s25 + $0x678] sm:$0xff] %vm5962_vm3, %v4743_v6  ;;  %6426 = vst.msk [vmem:[%s8574_s25 + $0xe78] sm:$0xff] %vm5962_vm3, %v5767_v7 }
 0x47e   : > { %v4747_v10 = vpop.f32.mrb[160].mxu0  ;;  %v5771_v11 = vpop.f32.mrb[160].mxu1 }
 0x47f   : > { %v4748_v12 = vadd.f32 %v10122_v47, %v4747_v10  ;;  %v5772_v13 = vadd.f32 %v10122_v47, %v5771_v11  ;;  %v4749_v14 = vpop.f32.mrb[161].mxu0  ;;  %v5773_v52 = vpop.f32.mrb[161].mxu1 }
 0x480   : > { %v4750_v16 = vpop.f32.mrb[162].mxu0  ;;  %v5774_v17 = vpop.f32.mrb[162].mxu1 }
 0x481   : > { %6171 = vst.msk [vmem:[%s8574_s25 + $0x680] sm:$0xff] %vm5962_vm3, %v4748_v12  ;;  %6427 = vst.msk [vmem:[%s8574_s25 + $0xe80] sm:$0xff] %vm5962_vm3, %v5772_v13  ;;  %v4751_v18 = vadd.f32 %v10122_v47, %v4750_v16  ;;  %v5775_v19 = vadd.f32 %v10122_v47, %v5774_v17  ;;  %v4752_v20 = vpop.f32.mrb[163].mxu0  ;;  %v5776_v21 = vpop.f32.mrb[163].mxu1 }
 0x482   : > { %v10506_v21 = vld [vmem:[#allocation4] ss:$0 sm:$0xff] }
 0x483   : > { %6172 = vst.msk [vmem:[%s8574_s25 + $0x688] sm:$0xff] %vm5962_vm3, %v4751_v18  ;;  %6428 = vst.msk [vmem:[%s8574_s25 + $0xe88] sm:$0xff] %vm5962_vm3, %v5775_v19 }
 0x486   : > { %v4755_v23 = vpop.f32.mrb[164].mxu0  ;;  %v5779_v24 = vpop.f32.mrb[164].mxu1 }
 0x487   : > { %v4756_v25 = vadd.f32 %v10122_v47, %v4755_v23  ;;  %v5780_v26 = vadd.f32 %v10122_v47, %v5779_v24  ;;  %v4757_v27 = vpop.f32.mrb[165].mxu0  ;;  %v5781_v28 = vpop.f32.mrb[165].mxu1 }
 0x488   : > { %v4758_v29 = vpop.f32.mrb[166].mxu0  ;;  %v5782_v30 = vpop.f32.mrb[166].mxu1 }
 0x489   : > { %6173 = vst.msk [vmem:[%s8574_s25 + $0x690] sm:$0xff] %vm5962_vm3, %v4756_v25  ;;  %6429 = vst.msk [vmem:[%s8574_s25 + $0xe90] sm:$0xff] %vm5962_vm3, %v5780_v26  ;;  %v4759_v31 = vadd.f32 %v10122_v47, %v4758_v29  ;;  %v5783_v61 = vadd.f32 %v10122_v47, %v5782_v30  ;;  %v4760_v32 = vpop.f32.mrb[167].mxu0  ;;  %v5784_v33 = vpop.f32.mrb[167].mxu1 }
 0x48b   : > { %6174 = vst.msk [vmem:[%s8574_s25 + $0x698] sm:$0xff] %vm5962_vm3, %v4759_v31  ;;  %6430 = vst.msk [vmem:[%s8574_s25 + $0xe98] sm:$0xff] %vm5962_vm3, %v5783_v61 }
 0x48e   : > { %v4763_v34 = vpop.f32.mrb[168].mxu0  ;;  %v5787_v35 = vpop.f32.mrb[168].mxu1 }
 0x48f   : > { %v4764_v36 = vadd.f32 %v10122_v47, %v4763_v34  ;;  %v5788_v37 = vadd.f32 %v10122_v47, %v5787_v35  ;;  %v4765_v38 = vpop.f32.mrb[169].mxu0  ;;  %v5789_v39 = vpop.f32.mrb[169].mxu1 }
 0x490   : > { %v4766_v40 = vpop.f32.mrb[170].mxu0  ;;  %v5790_v41 = vpop.f32.mrb[170].mxu1 }
 0x491   : > { %6175 = vst.msk [vmem:[%s8574_s25 + $0x6a0] sm:$0xff] %vm5962_vm3, %v4764_v36  ;;  %6431 = vst.msk [vmem:[%s8574_s25 + $0xea0] sm:$0xff] %vm5962_vm3, %v5788_v37  ;;  %v4767_v42 = vadd.f32 %v10122_v47, %v4766_v40  ;;  %v5791_v43 = vadd.f32 %v10122_v47, %v5790_v41  ;;  %v4768_v44 = vpop.f32.mrb[171].mxu0  ;;  %v5792_v45 = vpop.f32.mrb[171].mxu1 }
 0x493   : > { %6176 = vst.msk [vmem:[%s8574_s25 + $0x6a8] sm:$0xff] %vm5962_vm3, %v4767_v42  ;;  %6432 = vst.msk [vmem:[%s8574_s25 + $0xea8] sm:$0xff] %vm5962_vm3, %v5791_v43 }
 0x496   : > { %v4771_v46 = vpop.f32.mrb[172].mxu0  ;;  %v5795_v48 = vpop.f32.mrb[172].mxu1 }
 0x497   : > { %v4772_v15 = vadd.f32 %v10122_v47, %v4771_v46  ;;  %v5796_v49 = vadd.f32 %v10122_v47, %v5795_v48  ;;  %v4773_v50 = vpop.f32.mrb[173].mxu0  ;;  %v5797_v51 = vpop.f32.mrb[173].mxu1 }
 0x498   : > { %v4774_v53 = vpop.f32.mrb[174].mxu0  ;;  %v5798_v22 = vpop.f32.mrb[174].mxu1 }
 0x499   : > { %6177 = vst.msk [vmem:[%s8574_s25 + $0x6b0] sm:$0xff] %vm5962_vm3, %v4772_v15  ;;  %6433 = vst.msk [vmem:[%s8574_s25 + $0xeb0] sm:$0xff] %vm5962_vm3, %v5796_v49  ;;  %v4775_v54 = vadd.f32 %v10122_v47, %v4774_v53  ;;  %v5799_v55 = vadd.f32 %v10122_v47, %v5798_v22  ;;  %v4776_v56 = vpop.f32.mrb[175].mxu0  ;;  %v5800_v57 = vpop.f32.mrb[175].mxu1 }
 0x49b   : > { %6178 = vst.msk [vmem:[%s8574_s25 + $0x6b8] sm:$0xff] %vm5962_vm3, %v4775_v54  ;;  %6434 = vst.msk [vmem:[%s8574_s25 + $0xeb8] sm:$0xff] %vm5962_vm3, %v5799_v55 }
 0x49e   : > { %v4779_v58 = vpop.f32.mrb[176].mxu0  ;;  %v5803_v59 = vpop.f32.mrb[176].mxu1 }
 0x49f   : > { %v4780_v60 = vadd.f32 %v10122_v47, %v4779_v58  ;;  %v5804_v62 = vadd.f32 %v10122_v47, %v5803_v59  ;;  %v4781_v63 = vpop.f32.mrb[177].mxu0  ;;  %v5805_v0 = vpop.f32.mrb[177].mxu1 }
 0x4a0   : > { %v4782_v1 = vpop.f32.mrb[178].mxu0  ;;  %v5806_v2 = vpop.f32.mrb[178].mxu1 }
 0x4a1   : > { %6179 = vst.msk [vmem:[%s8574_s25 + $0x6c0] sm:$0xff] %vm5962_vm3, %v4780_v60  ;;  %6435 = vst.msk [vmem:[%s8574_s25 + $0xec0] sm:$0xff] %vm5962_vm3, %v5804_v62  ;;  %v4783_v3 = vadd.f32 %v10122_v47, %v4782_v1  ;;  %v5807_v4 = vadd.f32 %v10122_v47, %v5806_v2  ;;  %v4784_v5 = vpop.f32.mrb[179].mxu0  ;;  %v5808_v6 = vpop.f32.mrb[179].mxu1 }
 0x4a3   : > { %6180 = vst.msk [vmem:[%s8574_s25 + $0x6c8] sm:$0xff] %vm5962_vm3, %v4783_v3  ;;  %6436 = vst.msk [vmem:[%s8574_s25 + $0xec8] sm:$0xff] %vm5962_vm3, %v5807_v4 }
 0x4a6   : > { %v4787_v7 = vpop.f32.mrb[180].mxu0  ;;  %v5811_v8 = vpop.f32.mrb[180].mxu1 }
 0x4a7   : > { %v4788_v9 = vadd.f32 %v10122_v47, %v4787_v7  ;;  %v5812_v10 = vadd.f32 %v10122_v47, %v5811_v8  ;;  %v4789_v11 = vpop.f32.mrb[181].mxu0  ;;  %v5813_v12 = vpop.f32.mrb[181].mxu1 }
 0x4a8   : > { %v4790_v13 = vpop.f32.mrb[182].mxu0  ;;  %v5814_v14 = vpop.f32.mrb[182].mxu1 }
 0x4a9   : > { %6181 = vst.msk [vmem:[%s8574_s25 + $0x6d0] sm:$0xff] %vm5962_vm3, %v4788_v9  ;;  %6437 = vst.msk [vmem:[%s8574_s25 + $0xed0] sm:$0xff] %vm5962_vm3, %v5812_v10  ;;  %v4791_v52 = vadd.f32 %v10122_v47, %v4790_v13  ;;  %v5815_v16 = vadd.f32 %v10122_v47, %v5814_v14  ;;  %v4792_v17 = vpop.f32.mrb[183].mxu0  ;;  %v5816_v18 = vpop.f32.mrb[183].mxu1 }
 0x4ab   : > { %6182 = vst.msk [vmem:[%s8574_s25 + $0x6d8] sm:$0xff] %vm5962_vm3, %v4791_v52  ;;  %6438 = vst.msk [vmem:[%s8574_s25 + $0xed8] sm:$0xff] %vm5962_vm3, %v5815_v16 }
 0x4ae   : > { %v4795_v19 = vpop.f32.mrb[184].mxu0  ;;  %v5819_v20 = vpop.f32.mrb[184].mxu1 }
 0x4af   : > { %v4796_v23 = vadd.f32 %v10506_v21, %v4795_v19  ;;  %v5820_v24 = vadd.f32 %v10506_v21, %v5819_v20  ;;  %v4797_v25 = vpop.f32.mrb[185].mxu0  ;;  %v5821_v26 = vpop.f32.mrb[185].mxu1 }
 0x4b0   : > { %v4798_v27 = vpop.f32.mrb[186].mxu0  ;;  %v5822_v47 = vpop.f32.mrb[186].mxu1 }
 0x4b1   : > { %6183 = vst.msk [vmem:[%s8574_s25 + $0x6e0] sm:$0xff] %vm5962_vm3, %v4796_v23  ;;  %6439 = vst.msk [vmem:[%s8574_s25 + $0xee0] sm:$0xff] %vm5962_vm3, %v5820_v24  ;;  %v4799_v28 = vadd.f32 %v10506_v21, %v4798_v27  ;;  %v5823_v29 = vadd.f32 %v10506_v21, %v5822_v47  ;;  %v4800_v30 = vpop.f32.mrb[187].mxu0  ;;  %v5824_v31 = vpop.f32.mrb[187].mxu1 }
 0x4b3   : > { %6184 = vst.msk [vmem:[%s8574_s25 + $0x6e8] sm:$0xff] %vm5962_vm3, %v4799_v28  ;;  %6440 = vst.msk [vmem:[%s8574_s25 + $0xee8] sm:$0xff] %vm5962_vm3, %v5823_v29 }
 0x4b6   : > { %v4803_v61 = vpop.f32.mrb[188].mxu0  ;;  %v5827_v32 = vpop.f32.mrb[188].mxu1 }
 0x4b7   : > { %v4804_v33 = vadd.f32 %v10506_v21, %v4803_v61  ;;  %v5828_v34 = vadd.f32 %v10506_v21, %v5827_v32  ;;  %v4805_v35 = vpop.f32.mrb[189].mxu0  ;;  %v5829_v36 = vpop.f32.mrb[189].mxu1 }
 0x4b8   : > { %v4806_v37 = vpop.f32.mrb[190].mxu0  ;;  %v5830_v38 = vpop.f32.mrb[190].mxu1 }
 0x4b9   : > { %6185 = vst.msk [vmem:[%s8574_s25 + $0x6f0] sm:$0xff] %vm5962_vm3, %v4804_v33  ;;  %6441 = vst.msk [vmem:[%s8574_s25 + $0xef0] sm:$0xff] %vm5962_vm3, %v5828_v34  ;;  %v4807_v39 = vadd.f32 %v10506_v21, %v4806_v37  ;;  %v5831_v40 = vadd.f32 %v10506_v21, %v5830_v38  ;;  %v4808_v41 = vpop.f32.mrb[191].mxu0  ;;  %v5832_v42 = vpop.f32.mrb[191].mxu1 }
 0x4bb   : > { %6186 = vst.msk [vmem:[%s8574_s25 + $0x6f8] sm:$0xff] %vm5962_vm3, %v4807_v39  ;;  %6442 = vst.msk [vmem:[%s8574_s25 + $0xef8] sm:$0xff] %vm5962_vm3, %v5831_v40 }
 0x4be   : > { %v4811_v43 = vpop.f32.mrb[192].mxu0  ;;  %v5835_v44 = vpop.f32.mrb[192].mxu1 }
 0x4bf   : > { %v4812_v45 = vadd.f32 %v10506_v21, %v4811_v43  ;;  %v5836_v46 = vadd.f32 %v10506_v21, %v5835_v44  ;;  %v4813_v48 = vpop.f32.mrb[193].mxu0  ;;  %v5837_v15 = vpop.f32.mrb[193].mxu1 }
 0x4c0   : > { %v4814_v49 = vpop.f32.mrb[194].mxu0  ;;  %v5838_v50 = vpop.f32.mrb[194].mxu1 }
 0x4c1   : > { %6187 = vst.msk [vmem:[%s8574_s25 + $0x700] sm:$0xff] %vm5962_vm3, %v4812_v45  ;;  %6443 = vst.msk [vmem:[%s8574_s25 + $0xf00] sm:$0xff] %vm5962_vm3, %v5836_v46  ;;  %v4815_v51 = vadd.f32 %v10506_v21, %v4814_v49  ;;  %v5839_v53 = vadd.f32 %v10506_v21, %v5838_v50  ;;  %v4816_v22 = vpop.f32.mrb[195].mxu0  ;;  %v5840_v54 = vpop.f32.mrb[195].mxu1 }
 0x4c3   : > { %6188 = vst.msk [vmem:[%s8574_s25 + $0x708] sm:$0xff] %vm5962_vm3, %v4815_v51  ;;  %6444 = vst.msk [vmem:[%s8574_s25 + $0xf08] sm:$0xff] %vm5962_vm3, %v5839_v53 }
 0x4c6   : > { %v4819_v55 = vpop.f32.mrb[196].mxu0  ;;  %v5843_v56 = vpop.f32.mrb[196].mxu1 }
 0x4c7   : > { %v4820_v57 = vadd.f32 %v10506_v21, %v4819_v55  ;;  %v5844_v58 = vadd.f32 %v10506_v21, %v5843_v56  ;;  %v4821_v59 = vpop.f32.mrb[197].mxu0  ;;  %v5845_v60 = vpop.f32.mrb[197].mxu1 }
 0x4c8   : > { %v4822_v62 = vpop.f32.mrb[198].mxu0  ;;  %v5846_v63 = vpop.f32.mrb[198].mxu1 }
 0x4c9   : > { %6189 = vst.msk [vmem:[%s8574_s25 + $0x710] sm:$0xff] %vm5962_vm3, %v4820_v57  ;;  %6445 = vst.msk [vmem:[%s8574_s25 + $0xf10] sm:$0xff] %vm5962_vm3, %v5844_v58  ;;  %v4823_v0 = vadd.f32 %v10506_v21, %v4822_v62  ;;  %v5847_v1 = vadd.f32 %v10506_v21, %v5846_v63  ;;  %v4824_v2 = vpop.f32.mrb[199].mxu0  ;;  %v5848_v3 = vpop.f32.mrb[199].mxu1 }
 0x4cb   : > { %6190 = vst.msk [vmem:[%s8574_s25 + $0x718] sm:$0xff] %vm5962_vm3, %v4823_v0  ;;  %6446 = vst.msk [vmem:[%s8574_s25 + $0xf18] sm:$0xff] %vm5962_vm3, %v5847_v1 }
 0x4ce   : > { %v4827_v4 = vpop.f32.mrb[200].mxu0  ;;  %v5851_v5 = vpop.f32.mrb[200].mxu1 }
 0x4cf   : > { %v4828_v6 = vadd.f32 %v10506_v21, %v4827_v4  ;;  %v5852_v7 = vadd.f32 %v10506_v21, %v5851_v5  ;;  %v4829_v8 = vpop.f32.mrb[201].mxu0  ;;  %v5853_v9 = vpop.f32.mrb[201].mxu1 }
 0x4d0   : > { %v4830_v10 = vpop.f32.mrb[202].mxu0  ;;  %v5854_v11 = vpop.f32.mrb[202].mxu1 }
 0x4d1   : > { %6191 = vst.msk [vmem:[%s8574_s25 + $0x720] sm:$0xff] %vm5962_vm3, %v4828_v6  ;;  %6447 = vst.msk [vmem:[%s8574_s25 + $0xf20] sm:$0xff] %vm5962_vm3, %v5852_v7  ;;  %v4831_v12 = vadd.f32 %v10506_v21, %v4830_v10  ;;  %v5855_v13 = vadd.f32 %v10506_v21, %v5854_v11  ;;  %v4832_v14 = vpop.f32.mrb[203].mxu0  ;;  %v5856_v52 = vpop.f32.mrb[203].mxu1 }
 0x4d3   : > { %6192 = vst.msk [vmem:[%s8574_s25 + $0x728] sm:$0xff] %vm5962_vm3, %v4831_v12  ;;  %6448 = vst.msk [vmem:[%s8574_s25 + $0xf28] sm:$0xff] %vm5962_vm3, %v5855_v13 }
 0x4d6   : > { %v4835_v16 = vpop.f32.mrb[204].mxu0  ;;  %v5859_v17 = vpop.f32.mrb[204].mxu1 }
 0x4d7   : > { %v4836_v18 = vadd.f32 %v10506_v21, %v4835_v16  ;;  %v5860_v19 = vadd.f32 %v10506_v21, %v5859_v17  ;;  %v4837_v20 = vpop.f32.mrb[205].mxu0  ;;  %v5861_v23 = vpop.f32.mrb[205].mxu1 }
 0x4d8   : > { %v4838_v24 = vpop.f32.mrb[206].mxu0  ;;  %v5862_v25 = vpop.f32.mrb[206].mxu1 }
 0x4d9   : > { %6193 = vst.msk [vmem:[%s8574_s25 + $0x730] sm:$0xff] %vm5962_vm3, %v4836_v18  ;;  %6449 = vst.msk [vmem:[%s8574_s25 + $0xf30] sm:$0xff] %vm5962_vm3, %v5860_v19  ;;  %v4839_v26 = vadd.f32 %v10506_v21, %v4838_v24  ;;  %v5863_v27 = vadd.f32 %v10506_v21, %v5862_v25  ;;  %v4840_v47 = vpop.f32.mrb[207].mxu0  ;;  %v5864_v28 = vpop.f32.mrb[207].mxu1 }
 0x4db   : > { %6194 = vst.msk [vmem:[%s8574_s25 + $0x738] sm:$0xff] %vm5962_vm3, %v4839_v26  ;;  %6450 = vst.msk [vmem:[%s8574_s25 + $0xf38] sm:$0xff] %vm5962_vm3, %v5863_v27 }
 0x4de   : > { %v4843_v29 = vpop.f32.mrb[208].mxu0  ;;  %v5867_v30 = vpop.f32.mrb[208].mxu1 }
 0x4df   : > { %v4844_v31 = vadd.f32 %v10506_v21, %v4843_v29  ;;  %v5868_v61 = vadd.f32 %v10506_v21, %v5867_v30  ;;  %v4845_v32 = vpop.f32.mrb[209].mxu0  ;;  %v5869_v33 = vpop.f32.mrb[209].mxu1 }
 0x4e0   : > { %v4846_v34 = vpop.f32.mrb[210].mxu0  ;;  %v5870_v35 = vpop.f32.mrb[210].mxu1 }
 0x4e1   : > { %6195 = vst.msk [vmem:[%s8574_s25 + $0x740] sm:$0xff] %vm5962_vm3, %v4844_v31  ;;  %6451 = vst.msk [vmem:[%s8574_s25 + $0xf40] sm:$0xff] %vm5962_vm3, %v5868_v61  ;;  %v4847_v36 = vadd.f32 %v10506_v21, %v4846_v34  ;;  %v5871_v37 = vadd.f32 %v10506_v21, %v5870_v35  ;;  %v4848_v38 = vpop.f32.mrb[211].mxu0  ;;  %v5872_v39 = vpop.f32.mrb[211].mxu1 }
 0x4e3   : > { %6196 = vst.msk [vmem:[%s8574_s25 + $0x748] sm:$0xff] %vm5962_vm3, %v4847_v36  ;;  %6452 = vst.msk [vmem:[%s8574_s25 + $0xf48] sm:$0xff] %vm5962_vm3, %v5871_v37 }
 0x4e6   : > { %v4851_v40 = vpop.f32.mrb[212].mxu0  ;;  %v5875_v41 = vpop.f32.mrb[212].mxu1 }
 0x4e7   : > { %v4852_v42 = vadd.f32 %v10506_v21, %v4851_v40  ;;  %v5876_v43 = vadd.f32 %v10506_v21, %v5875_v41  ;;  %v4853_v44 = vpop.f32.mrb[213].mxu0  ;;  %v5877_v45 = vpop.f32.mrb[213].mxu1 }
 0x4e8   : > { %v4854_v46 = vpop.f32.mrb[214].mxu0  ;;  %v5878_v48 = vpop.f32.mrb[214].mxu1 }
 0x4e9   : > { %6197 = vst.msk [vmem:[%s8574_s25 + $0x750] sm:$0xff] %vm5962_vm3, %v4852_v42  ;;  %6453 = vst.msk [vmem:[%s8574_s25 + $0xf50] sm:$0xff] %vm5962_vm3, %v5876_v43  ;;  %v4855_v15 = vadd.f32 %v10506_v21, %v4854_v46  ;;  %v5879_v49 = vadd.f32 %v10506_v21, %v5878_v48  ;;  %v4856_v50 = vpop.f32.mrb[215].mxu0  ;;  %v5880_v51 = vpop.f32.mrb[215].mxu1 }
 0x4eb   : > { %6198 = vst.msk [vmem:[%s8574_s25 + $0x758] sm:$0xff] %vm5962_vm3, %v4855_v15  ;;  %6454 = vst.msk [vmem:[%s8574_s25 + $0xf58] sm:$0xff] %vm5962_vm3, %v5879_v49 }
 0x4ee   : > { %v4859_v53 = vpop.f32.mrb[216].mxu0  ;;  %v5883_v22 = vpop.f32.mrb[216].mxu1 }
 0x4ef   : > { %v4860_v54 = vadd.f32 %v10506_v21, %v4859_v53  ;;  %v5884_v55 = vadd.f32 %v10506_v21, %v5883_v22  ;;  %v4861_v56 = vpop.f32.mrb[217].mxu0  ;;  %v5885_v57 = vpop.f32.mrb[217].mxu1 }
 0x4f0   : > { %v4862_v58 = vpop.f32.mrb[218].mxu0  ;;  %v5886_v59 = vpop.f32.mrb[218].mxu1 }
 0x4f1   : > { %6199 = vst.msk [vmem:[%s8574_s25 + $0x760] sm:$0xff] %vm5962_vm3, %v4860_v54  ;;  %6455 = vst.msk [vmem:[%s8574_s25 + $0xf60] sm:$0xff] %vm5962_vm3, %v5884_v55  ;;  %v4863_v60 = vadd.f32 %v10506_v21, %v4862_v58  ;;  %v5887_v62 = vadd.f32 %v10506_v21, %v5886_v59  ;;  %v4864_v63 = vpop.f32.mrb[219].mxu0  ;;  %v5888_v0 = vpop.f32.mrb[219].mxu1 }
 0x4f3   : > { %6200 = vst.msk [vmem:[%s8574_s25 + $0x768] sm:$0xff] %vm5962_vm3, %v4863_v60  ;;  %6456 = vst.msk [vmem:[%s8574_s25 + $0xf68] sm:$0xff] %vm5962_vm3, %v5887_v62 }
 0x4f6   : > { %v4867_v1 = vpop.f32.mrb[220].mxu0  ;;  %v5891_v2 = vpop.f32.mrb[220].mxu1 }
 0x4f7   : > { %v4868_v3 = vadd.f32 %v10506_v21, %v4867_v1  ;;  %v5892_v4 = vadd.f32 %v10506_v21, %v5891_v2  ;;  %v4869_v5 = vpop.f32.mrb[221].mxu0  ;;  %v5893_v6 = vpop.f32.mrb[221].mxu1 }
 0x4f8   : > { %v4870_v7 = vpop.f32.mrb[222].mxu0  ;;  %v5894_v8 = vpop.f32.mrb[222].mxu1 }
 0x4f9   : > { %6201 = vst.msk [vmem:[%s8574_s25 + $0x770] sm:$0xff] %vm5962_vm3, %v4868_v3  ;;  %6457 = vst.msk [vmem:[%s8574_s25 + $0xf70] sm:$0xff] %vm5962_vm3, %v5892_v4  ;;  %v4871_v9 = vadd.f32 %v10506_v21, %v4870_v7  ;;  %v5895_v10 = vadd.f32 %v10506_v21, %v5894_v8  ;;  %v4872_v11 = vpop.f32.mrb[223].mxu0  ;;  %v5896_v12 = vpop.f32.mrb[223].mxu1 }
 0x4fb   : > { %6202 = vst.msk [vmem:[%s8574_s25 + $0x778] sm:$0xff] %vm5962_vm3, %v4871_v9  ;;  %6458 = vst.msk [vmem:[%s8574_s25 + $0xf78] sm:$0xff] %vm5962_vm3, %v5895_v10 }
 0x4fe   : > { %v4875_v13 = vpop.f32.mrb[224].mxu0  ;;  %v5899_v14 = vpop.f32.mrb[224].mxu1 }
 0x4ff   : > { %v4876_v52 = vadd.f32 %v10506_v21, %v4875_v13  ;;  %v5900_v16 = vadd.f32 %v10506_v21, %v5899_v14  ;;  %v4877_v17 = vpop.f32.mrb[225].mxu0  ;;  %v5901_v18 = vpop.f32.mrb[225].mxu1 }
 0x500   : > { %v4878_v19 = vpop.f32.mrb[226].mxu0  ;;  %v5902_v20 = vpop.f32.mrb[226].mxu1 }
 0x501   : > { %6203 = vst.msk [vmem:[%s8574_s25 + $0x780] sm:$0xff] %vm5962_vm3, %v4876_v52  ;;  %6459 = vst.msk [vmem:[%s8574_s25 + $0xf80] sm:$0xff] %vm5962_vm3, %v5900_v16  ;;  %v4879_v23 = vadd.f32 %v10506_v21, %v4878_v19  ;;  %v5903_v24 = vadd.f32 %v10506_v21, %v5902_v20  ;;  %v4880_v25 = vpop.f32.mrb[227].mxu0  ;;  %v5904_v26 = vpop.f32.mrb[227].mxu1 }
 0x503   : > { %6204 = vst.msk [vmem:[%s8574_s25 + $0x788] sm:$0xff] %vm5962_vm3, %v4879_v23  ;;  %6460 = vst.msk [vmem:[%s8574_s25 + $0xf88] sm:$0xff] %vm5962_vm3, %v5903_v24 }
 0x506   : > { %v4883_v27 = vpop.f32.mrb[228].mxu0  ;;  %v5907_v47 = vpop.f32.mrb[228].mxu1 }
 0x507   : > { %v4884_v28 = vadd.f32 %v10506_v21, %v4883_v27  ;;  %v5908_v29 = vadd.f32 %v10506_v21, %v5907_v47  ;;  %v4885_v30 = vpop.f32.mrb[229].mxu0  ;;  %v5909_v31 = vpop.f32.mrb[229].mxu1 }
 0x508   : > { %v4886_v61 = vpop.f32.mrb[230].mxu0  ;;  %v5910_v32 = vpop.f32.mrb[230].mxu1 }
 0x509   : > { %6205 = vst.msk [vmem:[%s8574_s25 + $0x790] sm:$0xff] %vm5962_vm3, %v4884_v28  ;;  %6461 = vst.msk [vmem:[%s8574_s25 + $0xf90] sm:$0xff] %vm5962_vm3, %v5908_v29  ;;  %v4887_v33 = vadd.f32 %v10506_v21, %v4886_v61  ;;  %v5911_v34 = vadd.f32 %v10506_v21, %v5910_v32  ;;  %v4888_v35 = vpop.f32.mrb[231].mxu0  ;;  %v5912_v36 = vpop.f32.mrb[231].mxu1 }
 0x50b   : > { %6206 = vst.msk [vmem:[%s8574_s25 + $0x798] sm:$0xff] %vm5962_vm3, %v4887_v33  ;;  %6462 = vst.msk [vmem:[%s8574_s25 + $0xf98] sm:$0xff] %vm5962_vm3, %v5911_v34 }
 0x50e   : > { %v4891_v37 = vpop.f32.mrb[232].mxu0  ;;  %v5915_v38 = vpop.f32.mrb[232].mxu1 }
 0x50f   : > { %v4892_v39 = vadd.f32 %v10506_v21, %v4891_v37  ;;  %v5916_v40 = vadd.f32 %v10506_v21, %v5915_v38  ;;  %v4893_v41 = vpop.f32.mrb[233].mxu0  ;;  %v5917_v42 = vpop.f32.mrb[233].mxu1 }
 0x510   : > { %v4894_v43 = vpop.f32.mrb[234].mxu0  ;;  %v5918_v44 = vpop.f32.mrb[234].mxu1 }
 0x511   : > { %6207 = vst.msk [vmem:[%s8574_s25 + $0x7a0] sm:$0xff] %vm5962_vm3, %v4892_v39  ;;  %6463 = vst.msk [vmem:[%s8574_s25 + $0xfa0] sm:$0xff] %vm5962_vm3, %v5916_v40  ;;  %v4895_v45 = vadd.f32 %v10506_v21, %v4894_v43  ;;  %v5919_v46 = vadd.f32 %v10506_v21, %v5918_v44  ;;  %v4896_v48 = vpop.f32.mrb[235].mxu0  ;;  %v5920_v15 = vpop.f32.mrb[235].mxu1 }
 0x513   : > { %6208 = vst.msk [vmem:[%s8574_s25 + $0x7a8] sm:$0xff] %vm5962_vm3, %v4895_v45  ;;  %6464 = vst.msk [vmem:[%s8574_s25 + $0xfa8] sm:$0xff] %vm5962_vm3, %v5919_v46 }
 0x516   : > { %v4899_v49 = vpop.f32.mrb[236].mxu0  ;;  %v5923_v50 = vpop.f32.mrb[236].mxu1 }
 0x517   : > { %v4900_v51 = vadd.f32 %v10506_v21, %v4899_v49  ;;  %v5924_v53 = vadd.f32 %v10506_v21, %v5923_v50  ;;  %v4901_v22 = vpop.f32.mrb[237].mxu0  ;;  %v5925_v54 = vpop.f32.mrb[237].mxu1 }
 0x518   : > { %v4902_v55 = vpop.f32.mrb[238].mxu0  ;;  %v5926_v56 = vpop.f32.mrb[238].mxu1 }
 0x519   : > { %6209 = vst.msk [vmem:[%s8574_s25 + $0x7b0] sm:$0xff] %vm5962_vm3, %v4900_v51  ;;  %6465 = vst.msk [vmem:[%s8574_s25 + $0xfb0] sm:$0xff] %vm5962_vm3, %v5924_v53  ;;  %v4903_v57 = vadd.f32 %v10506_v21, %v4902_v55  ;;  %v5927_v58 = vadd.f32 %v10506_v21, %v5926_v56  ;;  %v4904_v59 = vpop.f32.mrb[239].mxu0  ;;  %v5928_v60 = vpop.f32.mrb[239].mxu1 }
 0x51b   : > { %6210 = vst.msk [vmem:[%s8574_s25 + $0x7b8] sm:$0xff] %vm5962_vm3, %v4903_v57  ;;  %6466 = vst.msk [vmem:[%s8574_s25 + $0xfb8] sm:$0xff] %vm5962_vm3, %v5927_v58 }
 0x51e   : > { %v4907_v62 = vpop.f32.mrb[240].mxu0  ;;  %v5931_v63 = vpop.f32.mrb[240].mxu1 }
 0x51f   : > { %v4908_v0 = vadd.f32 %v10506_v21, %v4907_v62  ;;  %v5932_v1 = vadd.f32 %v10506_v21, %v5931_v63  ;;  %v4909_v2 = vpop.f32.mrb[241].mxu0  ;;  %v5933_v3 = vpop.f32.mrb[241].mxu1 }
 0x520   : > { %v4910_v4 = vpop.f32.mrb[242].mxu0  ;;  %v5934_v5 = vpop.f32.mrb[242].mxu1 }
 0x521   : > { %6211 = vst.msk [vmem:[%s8574_s25 + $0x7c0] sm:$0xff] %vm5962_vm3, %v4908_v0  ;;  %6467 = vst.msk [vmem:[%s8574_s25 + $0xfc0] sm:$0xff] %vm5962_vm3, %v5932_v1  ;;  %v4911_v6 = vadd.f32 %v10506_v21, %v4910_v4  ;;  %v5935_v7 = vadd.f32 %v10506_v21, %v5934_v5  ;;  %v4912_v8 = vpop.f32.mrb[243].mxu0  ;;  %v5936_v9 = vpop.f32.mrb[243].mxu1 }
 0x523   : > { %6212 = vst.msk [vmem:[%s8574_s25 + $0x7c8] sm:$0xff] %vm5962_vm3, %v4911_v6  ;;  %6468 = vst.msk [vmem:[%s8574_s25 + $0xfc8] sm:$0xff] %vm5962_vm3, %v5935_v7 }
 0x526   : > { %v4915_v10 = vpop.f32.mrb[244].mxu0  ;;  %v5939_v11 = vpop.f32.mrb[244].mxu1 }
 0x527   : > { %v4916_v12 = vadd.f32 %v10506_v21, %v4915_v10  ;;  %v5940_v13 = vadd.f32 %v10506_v21, %v5939_v11  ;;  %v4917_v14 = vpop.f32.mrb[245].mxu0  ;;  %v5941_v52 = vpop.f32.mrb[245].mxu1 }
 0x528   : > { %v4918_v16 = vpop.f32.mrb[246].mxu0  ;;  %v5942_v17 = vpop.f32.mrb[246].mxu1 }
 0x529   : > { %6213 = vst.msk [vmem:[%s8574_s25 + $0x7d0] sm:$0xff] %vm5962_vm3, %v4916_v12  ;;  %6469 = vst.msk [vmem:[%s8574_s25 + $0xfd0] sm:$0xff] %vm5962_vm3, %v5940_v13  ;;  %v4919_v18 = vadd.f32 %v10506_v21, %v4918_v16  ;;  %v5943_v19 = vadd.f32 %v10506_v21, %v5942_v17  ;;  %v4920_v20 = vpop.f32.mrb[247].mxu0  ;;  %v5944_v23 = vpop.f32.mrb[247].mxu1 }
 0x52b   : > { %6214 = vst.msk [vmem:[%s8574_s25 + $0x7d8] sm:$0xff] %vm5962_vm3, %v4919_v18  ;;  %6470 = vst.msk [vmem:[%s8574_s25 + $0xfd8] sm:$0xff] %vm5962_vm3, %v5943_v19 }
 0x52e   : > { %v4923_v24 = vpop.f32.mrb[248].mxu0  ;;  %v5947_v25 = vpop.f32.mrb[248].mxu1 }
 0x52f   : > { %v4924_v26 = vadd.f32 %v10506_v21, %v4923_v24  ;;  %v5948_v27 = vadd.f32 %v10506_v21, %v5947_v25  ;;  %v4925_v47 = vpop.f32.mrb[249].mxu0  ;;  %v5949_v28 = vpop.f32.mrb[249].mxu1 }
 0x530   : > { %v4926_v29 = vpop.f32.mrb[250].mxu0  ;;  %v5950_v30 = vpop.f32.mrb[250].mxu1 }
 0x531   : > { %6215 = vst.msk [vmem:[%s8574_s25 + $0x7e0] sm:$0xff] %vm5962_vm3, %v4924_v26  ;;  %6471 = vst.msk [vmem:[%s8574_s25 + $0xfe0] sm:$0xff] %vm5962_vm3, %v5948_v27  ;;  %v4927_v31 = vadd.f32 %v10506_v21, %v4926_v29  ;;  %v5951_v61 = vadd.f32 %v10506_v21, %v5950_v30  ;;  %v4928_v32 = vpop.f32.mrb[251].mxu0  ;;  %v5952_v33 = vpop.f32.mrb[251].mxu1 }
 0x533   : > { %6216 = vst.msk [vmem:[%s8574_s25 + $0x7e8] sm:$0xff] %vm5962_vm3, %v4927_v31  ;;  %6472 = vst.msk [vmem:[%s8574_s25 + $0xfe8] sm:$0xff] %vm5962_vm3, %v5951_v61 }
 0x536   : > { %v4931_v34 = vpop.f32.mrb[252].mxu0  ;;  %v5955_v35 = vpop.f32.mrb[252].mxu1 }
 0x537   : > { %v4932_v36 = vadd.f32 %v10506_v21, %v4931_v34  ;;  %v5956_v37 = vadd.f32 %v10506_v21, %v5955_v35  ;;  %v4933_v38 = vpop.f32.mrb[253].mxu0  ;;  %v5957_v39 = vpop.f32.mrb[253].mxu1 }
 0x538   : > { %v4934_v40 = vpop.f32.mrb[254].mxu0  ;;  %v5958_v41 = vpop.f32.mrb[254].mxu1 }
 0x539   : > { %6217 = vst.msk [vmem:[%s8574_s25 + $0x7f0] sm:$0xff] %vm5962_vm3, %v4932_v36  ;;  %6473 = vst.msk [vmem:[%s8574_s25 + $0xff0] sm:$0xff] %vm5962_vm3, %v5956_v37  ;;  %v4935_v42 = vadd.f32 %v10506_v21, %v4934_v40  ;;  %v5959_v43 = vadd.f32 %v10506_v21, %v5958_v41  ;;  %v4936_v44 = vpop.f32.mrb[255].mxu0  ;;  %v5960_v45 = vpop.f32.mrb[255].mxu1 }
 0x53b   : > { %6218 = vst.msk [vmem:[%s8574_s25 + $0x7f8] sm:$0xff] %vm5962_vm3, %v4935_v42  ;;  %6474 = vst.msk [vmem:[%s8574_s25 + $0xff8] sm:$0xff] %vm5962_vm3, %v5959_v43 }
 0x53c PF: > { %s15_s12 = sadd.s32 1, %s8255_s12  }
 0x53d   : > { %p12_p2 = scmp.ge.s32.totalorder %s15_s12, 10  }
 0x53f   :  { %14 = sbr.rel (!%p12_p2) target bundleno = 2 (0x2), region = 71 }
 0x546   :  { %6497 = vsyncpa [#allocation3], 1 }
 0x547   :  { %6499 = vsyncpa [#allocation3 + $0x1], 1 }
 0x548   :  { %6500 = vsyncpa [#allocation5], 1 }

</bundles_post_ra>
